<compile_context>
chip_gen: v7x
topology: tpu7x:2x2x1
jax: 0.10.0
libtpu: 0.0.40
codegen_flags: <defaults>
</compile_context>

<pallas_src>
import functools

import jax
import jax.numpy as jnp
from jax.experimental import pallas as pl
from jax.experimental.pallas import tpu as pltpu


PATCH = 32
EMBED = 64
MLP_HIDDEN = 256
NEG_INF = -1e30


# ----------------------------------------------------------------------------
# Fused Pallas kernel: patch embed + attention + MLP + heads + weighted pooling
# ----------------------------------------------------------------------------
def _maniqa_fused_kernel(
    patch_ref,                       # (IPB, NPAD, K) bf16  -- per-step image patches
    pe_w_ref, pe_b_ref,              # (K, D) bf16, (1, D) f32
    qkv_w_ref, qkv_b_ref,            # (D, 3D) bf16 (attn scale pre-folded), (1, 3D) f32
    proj_w_ref, proj_b_ref,          # (D, D) bf16, (1, D) f32
    fc1_w_ref, fc1_b_ref,            # (D, H) bf16, (1, H) f32
    fc2_w_ref, fc2_b_ref,            # (H, D) bf16, (1, D) f32
    h1_w_ref, h1_b_ref,              # (D, 2D) bf16 fused [score|weight], (1, 2D) f32
    h2_w_ref, h2_b_ref,              # (2D, 2) bf16 block-diagonal, (1, 2) f32
    kmask_ref,                       # (1, NPAD) f32 additive key mask (0 / -1e30)
    rmask_ref,                       # (NPAD, 1) f32 pooling row mask (1 / 0)
    o_ref,                           # (IPB, 1, 1) f32 pooled scores
    *, ipb, npad,
):
    d = EMBED
    k_in = patch_ref.shape[-1]
    rows = ipb * npad

    # --- patch embedding (fused; token slab never leaves VMEM) ---------------
    patches = patch_ref[...].reshape(rows, k_in)                      # bf16
    tok = jnp.dot(patches, pe_w_ref[...],
                  preferred_element_type=jnp.float32) + pe_b_ref[...]

    # --- attention block ------------------------------------------------------
    qkv = jnp.dot(tok.astype(jnp.bfloat16), qkv_w_ref[...],
                  preferred_element_type=jnp.float32) + qkv_b_ref[...]
    q = qkv[:, :d]
    k = qkv[:, d:2 * d]
    v = qkv[:, 2 * d:]
    kmask = kmask_ref[...]                                            # (1, NPAD)

    att = []
    for i in range(ipb):                                              # static unroll
        r0, r1 = i * npad, (i + 1) * npad
        qi = q[r0:r1].astype(jnp.bfloat16)
        ki = k[r0:r1].astype(jnp.bfloat16)
        vi = v[r0:r1].astype(jnp.bfloat16)
        # scale already folded into qkv_w's q columns in the wrapper.
        s = jax.lax.dot_general(qi, ki, (((1,), (1,)), ((), ())),
                                preferred_element_type=jnp.float32)
        s = s + kmask                                                 # mask padded keys
        m = jnp.max(s, axis=-1, keepdims=True)
        p = jnp.exp(s - m)                                            # f32 exp (v5e-safe)
        l = jnp.sum(p, axis=-1, keepdims=True)
        a = jnp.dot(p.astype(jnp.bfloat16), vi,
                    preferred_element_type=jnp.float32)
        # normalize AFTER p@v: scale (NPAD, 64) instead of (NPAD, NPAD)
        att.append(a * pl.reciprocal(l, approx=True))                 # EUP reciprocal
    a_all = att[0] if ipb == 1 else jnp.concatenate(att, axis=0)

    tok = tok + jnp.dot(a_all.astype(jnp.bfloat16), proj_w_ref[...],
                        preferred_element_type=jnp.float32) + proj_b_ref[...]

    # --- MLP block --------------------------------------------------------------
    h = jnp.dot(tok.astype(jnp.bfloat16), fc1_w_ref[...],
                preferred_element_type=jnp.float32) + fc1_b_ref[...]
    h = jax.nn.gelu(h)   # TODO(synk): tanh approx; PyTorch nn.GELU default is exact erf
    tok = tok + jnp.dot(h.astype(jnp.bfloat16), fc2_w_ref[...],
                        preferred_element_type=jnp.float32) + fc2_b_ref[...]

    # --- fused dual heads (score | weight), lane-dense [rows, 128] --------------
    h1 = jnp.dot(tok.astype(jnp.bfloat16), h1_w_ref[...],
                 preferred_element_type=jnp.float32) + h1_b_ref[...]
    h1 = jnp.maximum(h1, 0.0)
    h2 = jnp.dot(h1.astype(jnp.bfloat16), h2_w_ref[...],
                 preferred_element_type=jnp.float32) + h2_b_ref[...]
    s_tok = jnp.maximum(h2[:, 0:1], 0.0)                              # (rows, 1)
    w_tok = jax.nn.sigmoid(h2[:, 1:2])                                # (rows, 1)

    # --- weighted pooling over valid tokens (padded rows masked) ----------------
    rmask = rmask_ref[...]                                            # (NPAD, 1)
    for i in range(ipb):
        r0, r1 = i * npad, (i + 1) * npad
        wi = w_tok[r0:r1] * rmask
        num = jnp.sum(s_tok[r0:r1] * wi, axis=0, keepdims=True)       # (1, 1)
        den = jnp.sum(wi, axis=0, keepdims=True)                      # (1, 1)
        o_ref[i] = (num / (den + 1e-8)).astype(o_ref.dtype)


def _items_per_step(batch):
    """2 images/step fills the 256-row MXU on v6e/v7x; keep >=2 grid steps so
    v7x's two TensorCores both get work (so only block when batch >= 4)."""
    if batch % 2 == 0 and batch >= 4:
        return 2
    return 1


def maniqa_fused(patches_padded, weights, masks):
    """patches_padded: [B, NPAD, K] bf16 -> pooled scores [B, 1] f32."""
    B, NPAD, K = patches_padded.shape
    ipb = _items_per_step(B)
    assert B % ipb == 0
    D = EMBED
    (pe_w, pe_b, qkv_w, qkv_b, proj_w, proj_b, fc1_w, fc1_b, fc2_w, fc2_b,
     h1_w, h1_b, h2_w, h2_b) = weights
    kmask, rmask = masks

    kernel = functools.partial(_maniqa_fused_kernel, ipb=ipb, npad=NPAD)
    const = lambda b: (0, 0)
    out = pl.pallas_call(
        kernel,
        out_shape=jax.ShapeDtypeStruct((B, 1, 1), jnp.float32),
        grid_spec=pltpu.PrefetchScalarGridSpec(
            num_scalar_prefetch=0,
            grid=(B // ipb,),
            in_specs=[
                pl.BlockSpec((ipb, NPAD, K), lambda b: (b, 0, 0)),   # patches
                pl.BlockSpec((K, D), const),                         # pe_w
                pl.BlockSpec((1, D), const),                         # pe_b
                pl.BlockSpec((D, 3 * D), const),                     # qkv_w
                pl.BlockSpec((1, 3 * D), const),                     # qkv_b
                pl.BlockSpec((D, D), const),                         # proj_w
                pl.BlockSpec((1, D), const),                         # proj_b
                pl.BlockSpec((D, MLP_HIDDEN), const),                # fc1_w
                pl.BlockSpec((1, MLP_HIDDEN), const),                # fc1_b
                pl.BlockSpec((MLP_HIDDEN, D), const),                # fc2_w
                pl.BlockSpec((1, D), const),                         # fc2_b
                pl.BlockSpec((D, 2 * D), const),                     # h1_w (score|weight)
                pl.BlockSpec((1, 2 * D), const),                     # h1_b
                pl.BlockSpec((2 * D, 2), const),                     # h2_w block-diag
                pl.BlockSpec((1, 2), const),                         # h2_b
                pl.BlockSpec((1, NPAD), const),                      # additive key mask
                pl.BlockSpec((NPAD, 1), const),                      # pooling row mask
            ],
            out_specs=pl.BlockSpec((ipb, 1, 1), lambda b: (b, 0, 0)),
        ),
        compiler_params=pltpu.CompilerParams(dimension_semantics=("parallel",)),
    )(patches_padded, pe_w, pe_b, qkv_w, qkv_b, proj_w, proj_b,
      fc1_w, fc1_b, fc2_w, fc2_b, h1_w, h1_b, h2_w, h2_b, kmask, rmask)
    return out.reshape(B, 1)


# ----------------------------------------------------------------------------
# MANIQA-style scoring network (self.net)
# ----------------------------------------------------------------------------
def init_params(key):
    keys = jax.random.split(key, 12)

    def w(i, shape, scale=0.02):
        return (scale * jax.random.normal(keys[i], shape)).astype(jnp.float32)

    def b(shape):
        return jnp.zeros(shape, jnp.float32)

    return {
        "pe_w": w(0, (3 * PATCH * PATCH, EMBED)), "pe_b": b((EMBED,)),
        "qkv_w": w(1, (EMBED, 3 * EMBED)), "qkv_b": b((3 * EMBED,)),
        "proj_w": w(2, (EMBED, EMBED)), "proj_b": b((EMBED,)),
        "fc1_w": w(3, (EMBED, MLP_HIDDEN)), "fc1_b": b((MLP_HIDDEN,)),
        "fc2_w": w(4, (MLP_HIDDEN, EMBED)), "fc2_b": b((EMBED,)),
        "s1_w": w(5, (EMBED, EMBED)), "s1_b": b((EMBED,)),
        "s2_w": w(6, (EMBED, 1)), "s2_b": b((1,)),
        "w1_w": w(7, (EMBED, EMBED)), "w1_b": b((EMBED,)),
        "w2_w": w(8, (EMBED, 1)), "w2_b": b((1,)),
    }


def maniqa_net(params, x):
    """x: [B, 3, 320, 320] f32 -> scores [B, 1] (num_outputs=1 like MANIQA)."""
    B, C, H, W = x.shape
    assert H % PATCH == 0 and W % PATCH == 0
    n = H // PATCH
    N = n * n
    NPAD = ((N + 127) // 128) * 128      # lane/sublane-aligned token count

    # bf16 image path for the whole patch pipeline (halves unfold/DMA bytes).
    xb = x.astype(jnp.bfloat16)
    # Conv2d(k=P, s=P)-style unfold (channel-major patch flatten).
    # TODO(synk): this relayout still makes one bf16 HBM copy; expressing it
    # through an index_map over the NCHW image would require an in-kernel 5-D
    # transpose that Mosaic lowers poorly, so the relayout stays in XLA.
    patches = (
        xb.reshape(B, C, n, PATCH, n, PATCH)
        .transpose(0, 2, 4, 1, 3, 5)
        .reshape(B, N, C * PATCH * PATCH)
    )
    patches = jnp.pad(patches, ((0, 0), (0, NPAD - N), (0, 0)))   # zero patches

    # Fuse dual heads: h1 = [s1 | w1] (lane-dense 128-wide), h2 block-diagonal.
    h1_w = jnp.concatenate([params["s1_w"], params["w1_w"]], axis=1)   # [64,128]
    h1_b = jnp.concatenate([params["s1_b"], params["w1_b"]], axis=0)   # [128]
    h2_w = jnp.zeros((2 * EMBED, 2), jnp.float32)
    h2_w = h2_w.at[:EMBED, 0].set(params["s2_w"][:, 0])
    h2_w = h2_w.at[EMBED:, 1].set(params["w2_w"][:, 0])
    h2_b = jnp.concatenate([params["s2_b"], params["w2_b"]], axis=0)   # [2]

    # Fold the attention scale into the q columns of qkv (saves a 128x128 mul).
    scale = 1.0 / (EMBED ** 0.5)
    qcol = jnp.concatenate([jnp.full((EMBED,), scale, jnp.float32),
                            jnp.ones((2 * EMBED,), jnp.float32)], axis=0)
    qkv_w = params["qkv_w"] * qcol[None, :]
    qkv_b = params["qkv_b"] * qcol

    # Precomputed masks, resident in VMEM (no per-step iota + select).
    tok_idx = jnp.arange(NPAD, dtype=jnp.int32)
    kmask = jnp.where(tok_idx < N, 0.0, NEG_INF).astype(jnp.float32).reshape(1, NPAD)
    rmask = (tok_idx < N).astype(jnp.float32).reshape(NPAD, 1)

    bf = lambda a: a.astype(jnp.bfloat16)
    f32row = lambda a: a.reshape(1, -1).astype(jnp.float32)
    weights = (
        bf(params["pe_w"]), f32row(params["pe_b"]),
        bf(qkv_w), f32row(qkv_b),
        bf(params["proj_w"]), f32row(params["proj_b"]),
        bf(params["fc1_w"]), f32row(params["fc1_b"]),
        bf(params["fc2_w"]), f32row(params["fc2_b"]),
        bf(h1_w), f32row(h1_b),
        bf(h2_w), f32row(h2_b),
    )
    return maniqa_fused(patches, weights, (kmask, rmask))          # [B, 1]


_maniqa_net_jit = jax.jit(maniqa_net)


# ----------------------------------------------------------------------------
# MANIQ wrapper forward (matches the PyTorch module semantics)
# ----------------------------------------------------------------------------
def center_crop(x, size):
    B, C, H, W = x.shape
    top = (H - size) // 2
    left = (W - size) // 2
    return x[:, :, top:top + size, left:left + size]


def mse_loss(pred, target):
    # B-element reduction: plain JAX is strictly faster than a Pallas launch here.
    d = pred.astype(jnp.float32) - target.astype(jnp.float32)
    return jnp.mean(d * d)


def maniq_forward(params, batch, training=False):
    x, t, index, gt = batch["images"], batch["moss"], batch["indexs"], batch["mossgt"]
    B = x.shape[0]
    # T.Resize(320): bilinear resize (square inputs -> 320x320).  Glue in JAX.
    x = jax.image.resize(x, (B, x.shape[1], 320, 320), method="bilinear")
    if not training:
        x = center_crop(x, 320)  # T.CenterCrop(320) in eval mode (no-op at 320)
    scores = _maniqa_net_jit(params, x)[:, 0]      # .squeeze(1) -> [B]
    loss = mse_loss(scores, t)                     # F.mse_loss(scores, t)
    lossfun = functools.partial(mse_loss, scores)  # partial(F.mse_loss, scores)
    logdict = {
        "mse_score": [scores, gt],
        "rmse_score": [scores, gt],
        "mean_loss": [jax.lax.stop_gradient(loss)],
        "srcc": [scores, gt],
        "plcc": [scores, gt],
    }
    return {"scores": scores, "loss": loss, "logdict": logdict, "lossfun": lossfun}


if __name__ == "__main__":
    key = jax.random.PRNGKey(0)
    k_img, k_t, k_gt, k_par = jax.random.split(key, 4)
    B = 2
    batch = {
        "images": jax.random.uniform(k_img, (B, 3, 64, 64), dtype=jnp.float32),
        "moss": jax.random.uniform(k_t, (B,), dtype=jnp.float32),
        "indexs": jnp.arange(B, dtype=jnp.int32),
        "mossgt": jax.random.uniform(k_gt, (B,), dtype=jnp.float32),
    }
    params = init_params(k_par)

    out = maniq_forward(params, batch, training=False)
    jax.block_until_ready(out["scores"])
    jax.block_until_ready(out["loss"])
    # exercise lossfun (partial mse with scores bound) once as well
    jax.block_until_ready(out["lossfun"](batch["mossgt"]))
    print("KERNEL_OK")
</pallas_src>

<mosaic_0001>
module attributes {stable_mosaic.version = 11 : i64} {
  func.func @_maniqa_fused_kernel(%arg0: i32, %arg1: memref<1x128x3072xbf16, #tpu.memory_space<vmem>>, %arg2: memref<3072x64xbf16, #tpu.memory_space<vmem>>, %arg3: memref<1x64xf32, #tpu.memory_space<vmem>>, %arg4: memref<64x192xbf16, #tpu.memory_space<vmem>>, %arg5: memref<1x192xf32, #tpu.memory_space<vmem>>, %arg6: memref<64x64xbf16, #tpu.memory_space<vmem>>, %arg7: memref<1x64xf32, #tpu.memory_space<vmem>>, %arg8: memref<64x256xbf16, #tpu.memory_space<vmem>>, %arg9: memref<1x256xf32, #tpu.memory_space<vmem>>, %arg10: memref<256x64xbf16, #tpu.memory_space<vmem>>, %arg11: memref<1x64xf32, #tpu.memory_space<vmem>>, %arg12: memref<64x128xbf16, #tpu.memory_space<vmem>>, %arg13: memref<1x128xf32, #tpu.memory_space<vmem>>, %arg14: memref<128x2xbf16, #tpu.memory_space<vmem>>, %arg15: memref<1x2xf32, #tpu.memory_space<vmem>>, %arg16: memref<1x128xf32, #tpu.memory_space<vmem>>, %arg17: memref<128x1xf32, #tpu.memory_space<vmem>>, %arg18: memref<1x1x1xf32, #tpu.memory_space<vmem>>) attributes {dimension_semantics = [#tpu.dimension_semantics<parallel>], iteration_bounds = array<i64: 2>, scalar_prefetch = 0 : i64, scratch_operands = 0 : i64, tpu.core_type = #tpu.core_type<tc>, window_params = [{transform_indices = @transform_0, window_bounds = array<i64: 1, 128, 3072>}, {pipeline_mode = #tpu.pipeline_mode<synchronous>, transform_indices = @transform_1, window_bounds = array<i64: 3072, 64>}, {pipeline_mode = #tpu.pipeline_mode<synchronous>, transform_indices = @transform_2, window_bounds = array<i64: 1, 64>}, {pipeline_mode = #tpu.pipeline_mode<synchronous>, transform_indices = @transform_3, window_bounds = array<i64: 64, 192>}, {pipeline_mode = #tpu.pipeline_mode<synchronous>, transform_indices = @transform_4, window_bounds = array<i64: 1, 192>}, {pipeline_mode = #tpu.pipeline_mode<synchronous>, transform_indices = @transform_5, window_bounds = array<i64: 64, 64>}, {pipeline_mode = #tpu.pipeline_mode<synchronous>, transform_indices = @transform_6, window_bounds = array<i64: 1, 64>}, {pipeline_mode = #tpu.pipeline_mode<synchronous>, transform_indices = @transform_7, window_bounds = array<i64: 64, 256>}, {pipeline_mode = #tpu.pipeline_mode<synchronous>, transform_indices = @transform_8, window_bounds = array<i64: 1, 256>}, {pipeline_mode = #tpu.pipeline_mode<synchronous>, transform_indices = @transform_9, window_bounds = array<i64: 256, 64>}, {pipeline_mode = #tpu.pipeline_mode<synchronous>, transform_indices = @transform_10, window_bounds = array<i64: 1, 64>}, {pipeline_mode = #tpu.pipeline_mode<synchronous>, transform_indices = @transform_11, window_bounds = array<i64: 64, 128>}, {pipeline_mode = #tpu.pipeline_mode<synchronous>, transform_indices = @transform_12, window_bounds = array<i64: 1, 128>}, {pipeline_mode = #tpu.pipeline_mode<synchronous>, transform_indices = @transform_13, window_bounds = array<i64: 128, 2>}, {pipeline_mode = #tpu.pipeline_mode<synchronous>, transform_indices = @transform_14, window_bounds = array<i64: 1, 2>}, {pipeline_mode = #tpu.pipeline_mode<synchronous>, transform_indices = @transform_15, window_bounds = array<i64: 1, 128>}, {pipeline_mode = #tpu.pipeline_mode<synchronous>, transform_indices = @transform_16, window_bounds = array<i64: 128, 1>}, {transform_indices = @transform_17, window_bounds = array<i64: 1, 1, 1>}]} {
    %c0 = arith.constant 0 : index
    %c0_0 = arith.constant 0 : index
    %c0_1 = arith.constant 0 : index
    %0 = vector.load %arg1[%c0, %c0_0, %c0_1] : memref<1x128x3072xbf16, #tpu.memory_space<vmem>>, vector<1x128x3072xbf16>
    %1 = vector.shape_cast %0 : vector<1x128x3072xbf16> to vector<128x3072xbf16>
    %c0_2 = arith.constant 0 : index
    %c0_3 = arith.constant 0 : index
    %2 = vector.load %arg2[%c0_2, %c0_3] : memref<3072x64xbf16, #tpu.memory_space<vmem>>, vector<3072x64xbf16>
    %cst = arith.constant dense<0.000000e+00> : vector<128x64xf32>
    %3 = tpu.matmul %1, %2, %cst {dimension_numbers = #tpu.dot_dimension_numbers<[1], [0], [0], [1], [0, 0, 1, 1], [], []>} : vector<128x3072xbf16>, vector<3072x64xbf16>, vector<128x64xf32> -> vector<128x64xf32>
    %c0_4 = arith.constant 0 : index
    %c0_5 = arith.constant 0 : index
    %4 = vector.load %arg3[%c0_4, %c0_5] : memref<1x64xf32, #tpu.memory_space<vmem>>, vector<1x64xf32>
    %5 = vector.broadcast %4 : vector<1x64xf32> to vector<128x64xf32>
    %6 = arith.addf %3, %5 : vector<128x64xf32>
    %7 = arith.truncf %6 : vector<128x64xf32> to vector<128x64xbf16>
    %c0_6 = arith.constant 0 : index
    %c0_7 = arith.constant 0 : index
    %8 = vector.load %arg4[%c0_6, %c0_7] : memref<64x192xbf16, #tpu.memory_space<vmem>>, vector<64x192xbf16>
    %cst_8 = arith.constant dense<0.000000e+00> : vector<128x192xf32>
    %9 = tpu.matmul %7, %8, %cst_8 {dimension_numbers = #tpu.dot_dimension_numbers<[1], [0], [0], [1], [0, 0, 1, 1], [], []>} : vector<128x64xbf16>, vector<64x192xbf16>, vector<128x192xf32> -> vector<128x192xf32>
    %c0_9 = arith.constant 0 : index
    %c0_10 = arith.constant 0 : index
    %10 = vector.load %arg5[%c0_9, %c0_10] : memref<1x192xf32, #tpu.memory_space<vmem>>, vector<1x192xf32>
    %11 = vector.broadcast %10 : vector<1x192xf32> to vector<128x192xf32>
    %12 = arith.addf %9, %11 : vector<128x192xf32>
    %13 = vector.extract_strided_slice %12 {offsets = [0, 0], sizes = [128, 64], strides = [1, 1]} : vector<128x192xf32> to vector<128x64xf32>
    %14 = vector.extract_strided_slice %12 {offsets = [0, 64], sizes = [128, 64], strides = [1, 1]} : vector<128x192xf32> to vector<128x64xf32>
    %15 = vector.extract_strided_slice %12 {offsets = [0, 128], sizes = [128, 64], strides = [1, 1]} : vector<128x192xf32> to vector<128x64xf32>
    %c0_11 = arith.constant 0 : index
    %c0_12 = arith.constant 0 : index
    %16 = vector.load %arg16[%c0_11, %c0_12] : memref<1x128xf32, #tpu.memory_space<vmem>>, vector<1x128xf32>
    %17 = arith.truncf %13 : vector<128x64xf32> to vector<128x64xbf16>
    %18 = arith.truncf %14 : vector<128x64xf32> to vector<128x64xbf16>
    %19 = arith.truncf %15 : vector<128x64xf32> to vector<128x64xbf16>
    %cst_13 = arith.constant dense<0.000000e+00> : vector<128x128xf32>
    %20 = tpu.matmul %17, %18, %cst_13 {dimension_numbers = #tpu.dot_dimension_numbers<[1], [1], [0], [0], [0, 0, 1, 0], [], []>} : vector<128x64xbf16>, vector<128x64xbf16>, vector<128x128xf32> -> vector<128x128xf32>
    %21 = vector.broadcast %16 : vector<1x128xf32> to vector<128x128xf32>
    %22 = arith.addf %20, %21 : vector<128x128xf32>
    %cst_14 = arith.constant dense<0xFF800000> : vector<128xf32>
    %23 = vector.multi_reduction <maximumf>, %22, %cst_14 [1] : vector<128x128xf32> to vector<128xf32>
    %24 = vector.shape_cast %23 : vector<128xf32> to vector<128x1xf32>
    %25 = vector.broadcast %24 : vector<128x1xf32> to vector<128x128xf32>
    %26 = arith.subf %22, %25 : vector<128x128xf32>
    %27 = math.exp %26 : vector<128x128xf32>
    %cst_15 = arith.constant dense<0.000000e+00> : vector<128xf32>
    %28 = vector.multi_reduction <add>, %27, %cst_15 [1] : vector<128x128xf32> to vector<128xf32>
    %29 = vector.shape_cast %28 : vector<128xf32> to vector<128x1xf32>
    %30 = arith.truncf %27 : vector<128x128xf32> to vector<128x128xbf16>
    %cst_16 = arith.constant dense<0.000000e+00> : vector<128x64xf32>
    %31 = tpu.matmul %30, %19, %cst_16 {dimension_numbers = #tpu.dot_dimension_numbers<[1], [0], [0], [1], [0, 0, 1, 1], [], []>} : vector<128x128xbf16>, vector<128x64xbf16>, vector<128x64xf32> -> vector<128x64xf32>
    %32 = tpu.reciprocal %29 {approx = true} : vector<128x1xf32> -> vector<128x1xf32>
    %33 = vector.broadcast %32 : vector<128x1xf32> to vector<128x64xf32>
    %34 = arith.mulf %31, %33 : vector<128x64xf32>
    %35 = arith.truncf %34 : vector<128x64xf32> to vector<128x64xbf16>
    %c0_17 = arith.constant 0 : index
    %c0_18 = arith.constant 0 : index
    %36 = vector.load %arg6[%c0_17, %c0_18] : memref<64x64xbf16, #tpu.memory_space<vmem>>, vector<64x64xbf16>
    %cst_19 = arith.constant dense<0.000000e+00> : vector<128x64xf32>
    %37 = tpu.matmul %35, %36, %cst_19 {dimension_numbers = #tpu.dot_dimension_numbers<[1], [0], [0], [1], [0, 0, 1, 1], [], []>} : vector<128x64xbf16>, vector<64x64xbf16>, vector<128x64xf32> -> vector<128x64xf32>
    %38 = arith.addf %6, %37 : vector<128x64xf32>
    %c0_20 = arith.constant 0 : index
    %c0_21 = arith.constant 0 : index
    %39 = vector.load %arg7[%c0_20, %c0_21] : memref<1x64xf32, #tpu.memory_space<vmem>>, vector<1x64xf32>
    %40 = vector.broadcast %39 : vector<1x64xf32> to vector<128x64xf32>
    %41 = arith.addf %38, %40 : vector<128x64xf32>
    %42 = arith.truncf %41 : vector<128x64xf32> to vector<128x64xbf16>
    %c0_22 = arith.constant 0 : index
    %c0_23 = arith.constant 0 : index
    %43 = vector.load %arg8[%c0_22, %c0_23] : memref<64x256xbf16, #tpu.memory_space<vmem>>, vector<64x256xbf16>
    %cst_24 = arith.constant dense<0.000000e+00> : vector<128x256xf32>
    %44 = tpu.matmul %42, %43, %cst_24 {dimension_numbers = #tpu.dot_dimension_numbers<[1], [0], [0], [1], [0, 0, 1, 1], [], []>} : vector<128x64xbf16>, vector<64x256xbf16>, vector<128x256xf32> -> vector<128x256xf32>
    %c0_25 = arith.constant 0 : index
    %c0_26 = arith.constant 0 : index
    %45 = vector.load %arg9[%c0_25, %c0_26] : memref<1x256xf32, #tpu.memory_space<vmem>>, vector<1x256xf32>
    %46 = vector.broadcast %45 : vector<1x256xf32> to vector<128x256xf32>
    %47 = arith.addf %44, %46 : vector<128x256xf32>
    %48 = arith.mulf %47, %47 : vector<128x256xf32>
    %49 = arith.mulf %47, %48 : vector<128x256xf32>
    %cst_27 = arith.constant 4.471500e-02 : f32
    %50 = vector.broadcast %cst_27 : f32 to vector<128x256xf32>
    %51 = arith.mulf %50, %49 : vector<128x256xf32>
    %52 = arith.addf %47, %51 : vector<128x256xf32>
    %cst_28 = arith.constant 0.797884583 : f32
    %53 = vector.broadcast %cst_28 : f32 to vector<128x256xf32>
    %54 = arith.mulf %53, %52 : vector<128x256xf32>
    %55 = math.tanh %54 : vector<128x256xf32>
    %cst_29 = arith.constant 1.000000e+00 : f32
    %56 = vector.broadcast %cst_29 : f32 to vector<128x256xf32>
    %57 = arith.addf %56, %55 : vector<128x256xf32>
    %cst_30 = arith.constant 5.000000e-01 : f32
    %58 = vector.broadcast %cst_30 : f32 to vector<128x256xf32>
    %59 = arith.mulf %58, %57 : vector<128x256xf32>
    %60 = arith.mulf %47, %59 : vector<128x256xf32>
    %61 = arith.truncf %60 : vector<128x256xf32> to vector<128x256xbf16>
    %c0_31 = arith.constant 0 : index
    %c0_32 = arith.constant 0 : index
    %62 = vector.load %arg10[%c0_31, %c0_32] : memref<256x64xbf16, #tpu.memory_space<vmem>>, vector<256x64xbf16>
    %cst_33 = arith.constant dense<0.000000e+00> : vector<128x64xf32>
    %63 = tpu.matmul %61, %62, %cst_33 {dimension_numbers = #tpu.dot_dimension_numbers<[1], [0], [0], [1], [0, 0, 1, 1], [], []>} : vector<128x256xbf16>, vector<256x64xbf16>, vector<128x64xf32> -> vector<128x64xf32>
    %64 = arith.addf %41, %63 : vector<128x64xf32>
    %c0_34 = arith.constant 0 : index
    %c0_35 = arith.constant 0 : index
    %65 = vector.load %arg11[%c0_34, %c0_35] : memref<1x64xf32, #tpu.memory_space<vmem>>, vector<1x64xf32>
    %66 = vector.broadcast %65 : vector<1x64xf32> to vector<128x64xf32>
    %67 = arith.addf %64, %66 : vector<128x64xf32>
    %68 = arith.truncf %67 : vector<128x64xf32> to vector<128x64xbf16>
    %c0_36 = arith.constant 0 : index
    %c0_37 = arith.constant 0 : index
    %69 = vector.load %arg12[%c0_36, %c0_37] : memref<64x128xbf16, #tpu.memory_space<vmem>>, vector<64x128xbf16>
    %cst_38 = arith.constant dense<0.000000e+00> : vector<128x128xf32>
    %70 = tpu.matmul %68, %69, %cst_38 {dimension_numbers = #tpu.dot_dimension_numbers<[1], [0], [0], [1], [0, 0, 1, 1], [], []>} : vector<128x64xbf16>, vector<64x128xbf16>, vector<128x128xf32> -> vector<128x128xf32>
    %c0_39 = arith.constant 0 : index
    %c0_40 = arith.constant 0 : index
    %71 = vector.load %arg13[%c0_39, %c0_40] : memref<1x128xf32, #tpu.memory_space<vmem>>, vector<1x128xf32>
    %72 = vector.broadcast %71 : vector<1x128xf32> to vector<128x128xf32>
    %73 = arith.addf %70, %72 : vector<128x128xf32>
    %cst_41 = arith.constant 0.000000e+00 : f32
    %74 = vector.broadcast %cst_41 : f32 to vector<128x128xf32>
    %75 = arith.maximumf %73, %74 : vector<128x128xf32>
    %76 = arith.truncf %75 : vector<128x128xf32> to vector<128x128xbf16>
    %c0_42 = arith.constant 0 : index
    %c0_43 = arith.constant 0 : index
    %77 = vector.load %arg14[%c0_42, %c0_43] : memref<128x2xbf16, #tpu.memory_space<vmem>>, vector<128x2xbf16>
    %cst_44 = arith.constant dense<0.000000e+00> : vector<128x2xf32>
    %78 = tpu.matmul %76, %77, %cst_44 {dimension_numbers = #tpu.dot_dimension_numbers<[1], [0], [0], [1], [0, 0, 1, 1], [], []>} : vector<128x128xbf16>, vector<128x2xbf16>, vector<128x2xf32> -> vector<128x2xf32>
    %c0_45 = arith.constant 0 : index
    %c0_46 = arith.constant 0 : index
    %79 = vector.load %arg15[%c0_45, %c0_46] : memref<1x2xf32, #tpu.memory_space<vmem>>, vector<1x2xf32>
    %80 = vector.broadcast %79 : vector<1x2xf32> to vector<128x2xf32>
    %81 = arith.addf %78, %80 : vector<128x2xf32>
    %82 = vector.extract_strided_slice %81 {offsets = [0, 0], sizes = [128, 1], strides = [1, 1]} : vector<128x2xf32> to vector<128x1xf32>
    %cst_47 = arith.constant 0.000000e+00 : f32
    %83 = vector.broadcast %cst_47 : f32 to vector<128x1xf32>
    %84 = arith.maximumf %82, %83 : vector<128x1xf32>
    %85 = vector.extract_strided_slice %81 {offsets = [0, 1], sizes = [128, 1], strides = [1, 1]} : vector<128x2xf32> to vector<128x1xf32>
    %86 = arith.negf %85 : vector<128x1xf32>
    %87 = math.exp %86 : vector<128x1xf32>
    %cst_48 = arith.constant 1.000000e+00 : f32
    %88 = vector.broadcast %cst_48 : f32 to vector<128x1xf32>
    %89 = arith.addf %88, %87 : vector<128x1xf32>
    %90 = arith.divf %88, %89 : vector<128x1xf32>
    %c0_49 = arith.constant 0 : index
    %c0_50 = arith.constant 0 : index
    %91 = vector.load %arg17[%c0_49, %c0_50] : memref<128x1xf32, #tpu.memory_space<vmem>>, vector<128x1xf32>
    %92 = arith.mulf %90, %91 : vector<128x1xf32>
    %93 = arith.mulf %84, %92 : vector<128x1xf32>
    %cst_51 = arith.constant dense<0.000000e+00> : vector<1xf32>
    %94 = vector.multi_reduction <add>, %93, %cst_51 [0] : vector<128x1xf32> to vector<1xf32>
    %95 = vector.shape_cast %94 : vector<1xf32> to vector<1x1xf32>
    %cst_52 = arith.constant dense<0.000000e+00> : vector<1xf32>
    %96 = vector.multi_reduction <add>, %92, %cst_52 [0] : vector<128x1xf32> to vector<1xf32>
    %97 = vector.shape_cast %96 : vector<1xf32> to vector<1x1xf32>
    %cst_53 = arith.constant 9.99999993E-9 : f32
    %98 = vector.broadcast %cst_53 : f32 to vector<1x1xf32>
    %99 = arith.addf %97, %98 : vector<1x1xf32>
    %100 = arith.divf %95, %99 : vector<1x1xf32>
    %c0_54 = arith.constant 0 : index
    %c0_55 = arith.constant 0 : index
    %c0_56 = arith.constant 0 : index
    %101 = vector.load %arg18[%c0_54, %c0_55, %c0_56] : memref<1x1x1xf32, #tpu.memory_space<vmem>>, vector<1x1x1xf32>
    %102 = vector.shape_cast %101 : vector<1x1x1xf32> to vector<1x1xf32>
    %103 = vector.shape_cast %100 : vector<1x1xf32> to vector<1x1x1xf32>
    tpu.vector_store %arg18[%c0_54, %c0_55, %c0_56], %103 {strides = array<i32>} : memref<1x1x1xf32, #tpu.memory_space<vmem>>, vector<1x1x1xf32>,
    return
  }
  func.func @transform_0(%arg0: i32) -> (i32, i32, i32) {
    %c0_i32 = arith.constant 0 : i32
    %c0_i32_0 = arith.constant 0 : i32
    %c0_i32_1 = arith.constant 0 : i32
    return %arg0, %c0_i32, %c0_i32_0 : i32, i32, i32
  }
  func.func @transform_1(%arg0: i32) -> (i32, i32) {
    %c0_i32 = arith.constant 0 : i32
    %c0_i32_0 = arith.constant 0 : i32
    %c0_i32_1 = arith.constant 0 : i32
    return %c0_i32, %c0_i32_0 : i32, i32
  }
  func.func @transform_2(%arg0: i32) -> (i32, i32) {
    %c0_i32 = arith.constant 0 : i32
    %c0_i32_0 = arith.constant 0 : i32
    %c0_i32_1 = arith.constant 0 : i32
    return %c0_i32, %c0_i32_0 : i32, i32
  }
  func.func @transform_3(%arg0: i32) -> (i32, i32) {
    %c0_i32 = arith.constant 0 : i32
    %c0_i32_0 = arith.constant 0 : i32
    %c0_i32_1 = arith.constant 0 : i32
    return %c0_i32, %c0_i32_0 : i32, i32
  }
  func.func @transform_4(%arg0: i32) -> (i32, i32) {
    %c0_i32 = arith.constant 0 : i32
    %c0_i32_0 = arith.constant 0 : i32
    %c0_i32_1 = arith.constant 0 : i32
    return %c0_i32, %c0_i32_0 : i32, i32
  }
  func.func @transform_5(%arg0: i32) -> (i32, i32) {
    %c0_i32 = arith.constant 0 : i32
    %c0_i32_0 = arith.constant 0 : i32
    %c0_i32_1 = arith.constant 0 : i32
    return %c0_i32, %c0_i32_0 : i32, i32
  }
  func.func @transform_6(%arg0: i32) -> (i32, i32) {
    %c0_i32 = arith.constant 0 : i32
    %c0_i32_0 = arith.constant 0 : i32
    %c0_i32_1 = arith.constant 0 : i32
    return %c0_i32, %c0_i32_0 : i32, i32
  }
  func.func @transform_7(%arg0: i32) -> (i32, i32) {
    %c0_i32 = arith.constant 0 : i32
    %c0_i32_0 = arith.constant 0 : i32
    %c0_i32_1 = arith.constant 0 : i32
    return %c0_i32, %c0_i32_0 : i32, i32
  }
  func.func @transform_8(%arg0: i32) -> (i32, i32) {
    %c0_i32 = arith.constant 0 : i32
    %c0_i32_0 = arith.constant 0 : i32
    %c0_i32_1 = arith.constant 0 : i32
    return %c0_i32, %c0_i32_0 : i32, i32
  }
  func.func @transform_9(%arg0: i32) -> (i32, i32) {
    %c0_i32 = arith.constant 0 : i32
    %c0_i32_0 = arith.constant 0 : i32
    %c0_i32_1 = arith.constant 0 : i32
    return %c0_i32, %c0_i32_0 : i32, i32
  }
  func.func @transform_10(%arg0: i32) -> (i32, i32) {
    %c0_i32 = arith.constant 0 : i32
    %c0_i32_0 = arith.constant 0 : i32
    %c0_i32_1 = arith.constant 0 : i32
    return %c0_i32, %c0_i32_0 : i32, i32
  }
  func.func @transform_11(%arg0: i32) -> (i32, i32) {
    %c0_i32 = arith.constant 0 : i32
    %c0_i32_0 = arith.constant 0 : i32
    %c0_i32_1 = arith.constant 0 : i32
    return %c0_i32, %c0_i32_0 : i32, i32
  }
  func.func @transform_12(%arg0: i32) -> (i32, i32) {
    %c0_i32 = arith.constant 0 : i32
    %c0_i32_0 = arith.constant 0 : i32
    %c0_i32_1 = arith.constant 0 : i32
    return %c0_i32, %c0_i32_0 : i32, i32
  }
  func.func @transform_13(%arg0: i32) -> (i32, i32) {
    %c0_i32 = arith.constant 0 : i32
    %c0_i32_0 = arith.constant 0 : i32
    %c0_i32_1 = arith.constant 0 : i32
    return %c0_i32, %c0_i32_0 : i32, i32
  }
  func.func @transform_14(%arg0: i32) -> (i32, i32) {
    %c0_i32 = arith.constant 0 : i32
    %c0_i32_0 = arith.constant 0 : i32
    %c0_i32_1 = arith.constant 0 : i32
    return %c0_i32, %c0_i32_0 : i32, i32
  }
  func.func @transform_15(%arg0: i32) -> (i32, i32) {
    %c0_i32 = arith.constant 0 : i32
    %c0_i32_0 = arith.constant 0 : i32
    %c0_i32_1 = arith.constant 0 : i32
    return %c0_i32, %c0_i32_0 : i32, i32
  }
  func.func @transform_16(%arg0: i32) -> (i32, i32) {
    %c0_i32 = arith.constant 0 : i32
    %c0_i32_0 = arith.constant 0 : i32
    %c0_i32_1 = arith.constant 0 : i32
    return %c0_i32, %c0_i32_0 : i32, i32
  }
  func.func @transform_17(%arg0: i32) -> (i32, i32, i32) {
    %c0_i32 = arith.constant 0 : i32
    %c0_i32_0 = arith.constant 0 : i32
    %c0_i32_1 = arith.constant 0 : i32
    return %arg0, %c0_i32, %c0_i32_0 : i32, i32, i32
  }
}

</mosaic_0001>

<bundles_post_ra>
// kernel: mul.9
= control target key start
LH: loop header
LB: loop body
LE: loop exit
PB: predicated region body
PF: predicated region fallthrough
CT: control target
= control target key end

     0   :  { %s34_s0 = inlined_call_operand.vmem [shape: f32[192], index: 0, kind: input, shape index: {}]   ;;  %s35_s1 = inlined_call_operand.vmem [shape: f32[192], index: 1, kind: input, shape index: {}]   ;;  %s36_s2 = inlined_call_operand.vmem [shape: f32[192], index: 2, kind: output, shape index: {}]  }
   0x1   :  { %v3_v0 = vld [vmem:[%s34_s0] sm:$0x3] }
   0x2   :  { %v4_v1 = vld [vmem:[%s35_s1] sm:$0x3] }
   0x3   :  { %v7_v2 = vmul.f32 %v4_v1, %v3_v0 }
   0x5   :  { %9 = vst [vmem:[%s36_s2] sm:$0x3] %v7_v2 }

// kernel: maniqa_net.1
= control target key start
LH: loop header
LB: loop body
LE: loop exit
PB: predicated region body
PF: predicated region fallthrough
CT: control target
= control target key end

     0   :  { %s8936_s24 = smov 0   ;;  %s11171_s0 = inlined_call_operand.vmem [shape: bf16[2,128,3072], index: 0, kind: input, shape index: {}]   ;;  %s11172_s1 = inlined_call_operand.vmem [shape: bf16[3072,64], index: 1, kind: input, shape index: {}]   ;;  %s11173_s2 = inlined_call_operand.vmem [shape: f32[1,64], index: 2, kind: input, shape index: {}]   ;;  %s11174_s3 = inlined_call_operand.vmem [shape: bf16[64,192], index: 3, kind: input, shape index: {}]   ;;  %s11175_s4 = inlined_call_operand.vmem [shape: f32[1,192], index: 4, kind: input, shape index: {}]   ;;  %s11176_s5 = inlined_call_operand.vmem [shape: bf16[64,64], index: 5, kind: input, shape index: {}]   ;;  %s11177_s6 = inlined_call_operand.vmem [shape: f32[1,64], index: 6, kind: input, shape index: {}]   ;;  %s11178_s7 = inlined_call_operand.vmem [shape: bf16[64,256], index: 7, kind: input, shape index: {}]   ;;  %s11179_s8 = inlined_call_operand.vmem [shape: f32[1,256], index: 8, kind: input, shape index: {}]   ;;  %s11180_s9 = inlined_call_operand.vmem [shape: bf16[256,64], index: 9, kind: input, shape index: {}]   ;;  %s11181_s10 = inlined_call_operand.vmem [shape: f32[1,64], index: 10, kind: input, shape index: {}]   ;;  %s11182_s11 = inlined_call_operand.vmem [shape: bf16[64,128], index: 11, kind: input, shape index: {}]   ;;  %s11183_s12 = inlined_call_operand.vmem [shape: f32[1,128], index: 12, kind: input, shape index: {}]   ;;  %s11184_s13 = inlined_call_operand.vmem [shape: bf16[128,2], index: 13, kind: input, shape index: {}]   ;;  %s11185_s14 = inlined_call_operand.vmem [shape: f32[1,2], index: 14, kind: input, shape index: {}]   ;;  %s11186_s15 = inlined_call_operand.vmem [shape: f32[1,128], index: 15, kind: input, shape index: {}]   ;;  %s11187_s16 = inlined_call_operand.vmem [shape: f32[128,1], index: 16, kind: input, shape index: {}]   ;;  %s11188_s17 = inlined_call_operand.vmem [shape: f32[2,1,1], index: 17, kind: output, shape index: {}]  }
   0x1   :  { %11197 = sst [smem:[#allocation9_spill]] %s11171_s0 }
   0x2   :  { %11198 = sst [smem:[#allocation10_spill]] %s11172_s1 }
   0x3 LB: > { %s6805_s25 = sadd.s32 4294967295, %s8840_s24   ;;  %p6809_p0 = scmp.ge.s32.totalorder %s8840_s24, 1  ;;  %s8840_s24 = sphi %s8936_s24, %s27_s24  }
   0x4   : > { %p487_p1 = scmp.lt.s32.totalorder %s8840_s24, 3 }
   0x6   : > { %p488_p2 = pnand %p6809_p0, %p487_p1 }
   0x8   : > { %491 = sbr.rel (%p488_p2) target bundleno = 2979 (0xba3), region = 88 }
   0xf   : > { %s11199_s28 = sld [smem:[#allocation10_spill]]  ;;  %p537_p3 = scmp.lt.s32.totalorder %s6805_s25, 1  ;;  %vm4473_vm0 = vcmask 523264   ;;  %vm6711_vm1 = vcmask 15368   ;;  %vm6673_vm2 = vcmask 7168   ;;  %vm6756_vm3 = vcmask 0  }
  0x10   : > { %s11200_s0 = sld [smem:[#allocation9_spill]]  ;;  %s8843_s1 = smov 64  }
  0x11   : > { %s11217_s25 = smov (!%p537_p3, %s6805_s25), 1  ;;  %s8844_s27 = smov 1  }
  0x12   : > { %s8379_s30 = smul.u32 1536, %s11217_s25  ;;  %s8845_s29 = smov 127  }
  0x13   : > { %s544_s19 = scalar_lea.vmem %s11188_s17, %s11217_s25 }
  0x15   : > { %v8392_v0 = vld [vmem:[%s11199_s28 + $0x40] sm:$0xff]   ;;  %v8396_v4 = vld [vmem:[%s11199_s28 + $0x48] sm:$0xff]   ;;  %v8400_v8 = vld [vmem:[%s11199_s28 + $0x50] sm:$0xff]  }
  0x16   : > { %v8393_v1 = vld [vmem:[%s11199_s28 + $0xc0] sm:$0xff]   ;;  %7307 = vmatprep.subr.bf16.mxu0 %v8392_v0  ;;  %v8397_v5 = vld [vmem:[%s11199_s28 + $0xc8] sm:$0xff]   ;;  %v8401_v9 = vld [vmem:[%s11199_s28 + $0xd0] sm:$0xff]   ;;  %s9044_s18 = scalar_lea.vmem %s11200_s0, %s8379_s30 }
  0x17   : > { %v8394_v2 = vld [vmem:[%s11199_s28] sm:$0xff]   ;;  %7371 = vmatprep.subr.bf16.mxu1 %v8393_v1  ;;  %v8398_v6 = vld [vmem:[%s11199_s28 + $0x8] sm:$0xff]   ;;  %v8402_v10 = vld [vmem:[%s11199_s28 + $0x10] sm:$0xff]  }
  0x18   : > { %v8395_v3 = vld [vmem:[%s11199_s28 + $0x80] sm:$0xff]   ;;  %7308 = vmatpush3.bf16.msra.mxu0 %v8394_v2  ;;  %v8399_v7 = vld [vmem:[%s11199_s28 + $0x88] sm:$0xff]   ;;  %v8403_v11 = vld [vmem:[%s11199_s28 + $0x90] sm:$0xff]  }
  0x19   : > { %7372 = vmatpush3.bf16.msra.mxu1 %v8395_v3  ;;  %7309 = vmatprep.subr.bf16.mxu0 %v8396_v4  ;;  %v8404_v12 = vld [vmem:[%s11199_s28 + $0x58] sm:$0xff]   ;;  %v8408_v16 = vld [vmem:[%s11199_s28 + $0x60] sm:$0xff]   ;;  %v8412_v20 = vld [vmem:[%s11199_s28 + $0x68] sm:$0xff]  }
  0x1a   : > { %7373 = vmatprep.subr.bf16.mxu1 %v8397_v5  ;;  %v8405_v13 = vld [vmem:[%s11199_s28 + $0xd8] sm:$0xff]   ;;  %v8409_v17 = vld [vmem:[%s11199_s28 + $0xe0] sm:$0xff]   ;;  %v8413_v21 = vld [vmem:[%s11199_s28 + $0xe8] sm:$0xff]  }
  0x1b   : > { %v8406_v14 = vld [vmem:[%s11199_s28 + $0x18] sm:$0xff]   ;;  %v8410_v18 = vld [vmem:[%s11199_s28 + $0x20] sm:$0xff]   ;;  %v8414_v22 = vld [vmem:[%s11199_s28 + $0x28] sm:$0xff]  }
  0x1c   : > { %7310 = vmatpush3.bf16.msra.mxu0 %v8398_v6  ;;  %v8407_v15 = vld [vmem:[%s11199_s28 + $0x98] sm:$0xff]   ;;  %v8411_v19 = vld [vmem:[%s11199_s28 + $0xa0] sm:$0xff]   ;;  %v8415_v23 = vld [vmem:[%s11199_s28 + $0xa8] sm:$0xff]  }
  0x1d   : > { %7374 = vmatpush3.bf16.msra.mxu1 %v8399_v7  ;;  %7311 = vmatprep.subr.bf16.mxu0 %v8400_v8  ;;  %v8416_v24 = vld [vmem:[%s11199_s28 + $0x70] sm:$0xff]   ;;  %v8420_v28 = vld [vmem:[%s11199_s28 + $0x78] sm:$0xff]   ;;  %v546_v32 = vld [vmem:[%s9044_s18] sm:$0xff] }
  0x1e   : > { %7375 = vmatprep.subr.bf16.mxu1 %v8401_v9  ;;  %v8417_v25 = vld [vmem:[%s11199_s28 + $0xf0] sm:$0xff]   ;;  %v8421_v29 = vld [vmem:[%s11199_s28 + $0xf8] sm:$0xff]   ;;  %v558_v33 = vld [vmem:[%s9044_s18 + $0x60] sm:$0xff] }
  0x1f   : > { %v8418_v26 = vld [vmem:[%s11199_s28 + $0x30] sm:$0xff]   ;;  %v8422_v30 = vld [vmem:[%s11199_s28 + $0x38] sm:$0xff]   ;;  %v547_v34 = vld [vmem:[%s9044_s18 + $0x8] sm:$0xff]  ;;  %v6812_v35 = vcombine.low %v546_v32, %v558_v33  ;;  %v6813_v36 = vcombine.high %v546_v32, %v558_v33 }
  0x20   : > { %7312 = vmatpush3.bf16.msra.mxu0 %v8402_v10  ;;  %v8419_v27 = vld [vmem:[%s11199_s28 + $0xb0] sm:$0xff]   ;;  %v8423_v31 = vld [vmem:[%s11199_s28 + $0xb8] sm:$0xff]   ;;  %v559_v37 = vld [vmem:[%s9044_s18 + $0x68] sm:$0xff] }
  0x21   : > { %7376 = vmatpush3.bf16.msra.mxu1 %v8403_v11  ;;  %7313 = vmatprep.subr.bf16.mxu0 %v8404_v12  ;;  %v6814_v38 = vcombine.low %v547_v34, %v559_v37  ;;  %v6815_v39 = vcombine.high %v547_v34, %v559_v37  ;;  %v8424_v40 = vld [vmem:[%s11199_s28 + $0x140] sm:$0xff]   ;;  %v571_v47 = vld [vmem:[%s9044_s18 + $0xc8] sm:$0xff]  ;;  %v8432_v62 = vld [vmem:[%s11199_s28 + $0x150] sm:$0xff]  }
  0x22   : > { %7377 = vmatprep.subr.bf16.mxu1 %v8405_v13  ;;  %3273 = vmatprep.mubr.bf16.mxu0 %v6813_v36  ;;  %v8425_v41 = vld [vmem:[%s11199_s28 + $0x100] sm:$0xff]   ;;  %v583_v48 = vld [vmem:[%s9044_s18 + $0x128] sm:$0xff]  ;;  %v8433_v63 = vld [vmem:[%s11199_s28 + $0x110] sm:$0xff]  }
  0x23   : > { %3370 = vmatprep.mubr.bf16.mxu1 %v6815_v39  ;;  %v8426_v42 = vld [vmem:[%s11199_s28 + $0x1c0] sm:$0xff]   ;;  %v6839_v49 = vcombine.high %v571_v47, %v583_v48  ;;  %v8428_v50 = vld [vmem:[%s11199_s28 + $0x148] sm:$0xff]   ;;  %v6838_v53 = vcombine.low %v571_v47, %v583_v48  ;;  %v8434_v0 = vld [vmem:[%s11199_s28 + $0x1d0] sm:$0xff]  }
  0x24   : > { %7314 = vmatpush3.bf16.msra.mxu0 %v8406_v14  ;;  %v8427_v43 = vld [vmem:[%s11199_s28 + $0x180] sm:$0xff]   ;;  %v8429_v52 = vld [vmem:[%s11199_s28 + $0x108] sm:$0xff]   ;;  %v8435_v1 = vld [vmem:[%s11199_s28 + $0x190] sm:$0xff]  }
  0x25   : > { %7378 = vmatpush3.bf16.msra.mxu1 %v8407_v15  ;;  %7315 = vmatprep.subr.bf16.mxu0 %v8408_v16  ;;  %v570_v44 = vld [vmem:[%s9044_s18 + $0xc0] sm:$0xff]  ;;  %v8430_v54 = vld [vmem:[%s11199_s28 + $0x1c8] sm:$0xff]   ;;  %v8436_v10 = vld [vmem:[%s11199_s28 + $0x158] sm:$0xff]  }
  0x26   : > { %7379 = vmatprep.subr.bf16.mxu1 %v8409_v17  ;;  %v582_v45 = vld [vmem:[%s9044_s18 + $0x120] sm:$0xff]  ;;  %v8431_v55 = vld [vmem:[%s11199_s28 + $0x188] sm:$0xff]   ;;  %v8437_v11 = vld [vmem:[%s11199_s28 + $0x118] sm:$0xff]  }
  0x27   : > { %v6837_v46 = vcombine.high %v570_v44, %v582_v45  ;;  %v6836_v51 = vcombine.low %v570_v44, %v582_v45  ;;  %v594_v56 = vld [vmem:[%s9044_s18 + $0x180] sm:$0xff]  ;;  %v595_v58 = vld [vmem:[%s9044_s18 + $0x188] sm:$0xff]  ;;  %v8438_v12 = vld [vmem:[%s11199_s28 + $0x1d8] sm:$0xff]  }
  0x28   : > { %7316 = vmatpush3.bf16.msra.mxu0 %v8410_v18  ;;  %v606_v57 = vld [vmem:[%s9044_s18 + $0x1e0] sm:$0xff]  ;;  %v607_v59 = vld [vmem:[%s9044_s18 + $0x1e8] sm:$0xff]  ;;  %v8439_v13 = vld [vmem:[%s11199_s28 + $0x198] sm:$0xff]  }
  0x29   : > { %7380 = vmatpush3.bf16.msra.mxu1 %v8411_v19  ;;  %7317 = vmatprep.subr.bf16.mxu0 %v8412_v20  ;;  %v6861_v60 = vcombine.high %v594_v56, %v606_v57  ;;  %v6863_v61 = vcombine.high %v595_v58, %v607_v59  ;;  %v6860_v2 = vcombine.low %v594_v56, %v606_v57  ;;  %v618_v3 = vld [vmem:[%s9044_s18 + $0x240] sm:$0xff]  ;;  %v619_v5 = vld [vmem:[%s9044_s18 + $0x248] sm:$0xff]  ;;  %v8449_v39 = vld [vmem:[%s11199_s28 + $0x130] sm:$0xff]  }
  0x2a   : > { %7381 = vmatprep.subr.bf16.mxu1 %v8413_v21  ;;  %v630_v4 = vld [vmem:[%s9044_s18 + $0x2a0] sm:$0xff]  ;;  %v6862_v6 = vcombine.low %v595_v58, %v607_v59  ;;  %v631_v8 = vld [vmem:[%s9044_s18 + $0x2a8] sm:$0xff]  ;;  %v8453_v48 = vld [vmem:[%s11199_s28 + $0x138] sm:$0xff]  }
  0x2b   : > { %v6885_v7 = vcombine.high %v618_v3, %v630_v4  ;;  %v6887_v9 = vcombine.high %v619_v5, %v631_v8  ;;  %v642_v14 = vld [vmem:[%s9044_s18 + $0x300] sm:$0xff]  ;;  %v643_v16 = vld [vmem:[%s9044_s18 + $0x308] sm:$0xff]  ;;  %v6884_v19 = vcombine.low %v618_v3, %v630_v4  ;;  %v6886_v21 = vcombine.low %v619_v5, %v631_v8  ;;  %v561_v3 = vld [vmem:[%s9044_s18 + $0x78] sm:$0xff] }
  0x2c   : > { %7318 = vmatpush3.bf16.msra.mxu0 %v8414_v22  ;;  %v654_v15 = vld [vmem:[%s9044_s18 + $0x360] sm:$0xff]  ;;  %v655_v17 = vld [vmem:[%s9044_s18 + $0x368] sm:$0xff]  ;;  %v572_v8 = vld [vmem:[%s9044_s18 + $0xd0] sm:$0xff] }
  0x2d   : > { %7382 = vmatpush3.bf16.msra.mxu1 %v8415_v23  ;;  %7319 = vmatprep.subr.bf16.mxu0 %v8416_v24  ;;  %v8440_v18 = vld [vmem:[%s11199_s28 + $0x160] sm:$0xff]   ;;  %v6909_v22 = vcombine.high %v642_v14, %v654_v15  ;;  %v6911_v24 = vcombine.high %v643_v16, %v655_v17  ;;  %v8446_v32 = vld [vmem:[%s11199_s28 + $0x1e8] sm:$0xff]   ;;  %v6908_v34 = vcombine.low %v642_v14, %v654_v15 }
  0x2e   : > { %7383 = vmatprep.subr.bf16.mxu1 %v8417_v25  ;;  %v8441_v20 = vld [vmem:[%s11199_s28 + $0x120] sm:$0xff]   ;;  %v8447_v33 = vld [vmem:[%s11199_s28 + $0x1a8] sm:$0xff]  }
  0x2f   : > { %v8442_v23 = vld [vmem:[%s11199_s28 + $0x1e0] sm:$0xff]   ;;  %v691_v44 = vld [vmem:[%s9044_s18 + $0x488] sm:$0xff] }
  0x30   : > { %7320 = vmatpush3.bf16.msra.mxu0 %v8418_v26  ;;  %v8443_v25 = vld [vmem:[%s11199_s28 + $0x1a0] sm:$0xff]   ;;  %v703_v45 = vld [vmem:[%s9044_s18 + $0x4e8] sm:$0xff] }
  0x31   : > { %7384 = vmatpush3.bf16.msra.mxu1 %v8419_v27  ;;  %7321 = vmatprep.subr.bf16.mxu0 %v8420_v28  ;;  %v666_v26 = vld [vmem:[%s9044_s18 + $0x3c0] sm:$0xff]  ;;  %v8444_v28 = vld [vmem:[%s11199_s28 + $0x168] sm:$0xff]  }
  0x32   : > { %7385 = vmatprep.subr.bf16.mxu1 %v8421_v29  ;;  %v678_v27 = vld [vmem:[%s9044_s18 + $0x420] sm:$0xff]  ;;  %v667_v29 = vld [vmem:[%s9044_s18 + $0x3c8] sm:$0xff] }
  0x33   : > { %v6933_v36 = vcombine.high %v666_v26, %v678_v27  ;;  %v6932_v47 = vcombine.low %v666_v26, %v678_v27  ;;  %v8456_v56 = vld [vmem:[%s11199_s28 + $0x240] sm:$0xff]   ;;  %v715_v57 = vld [vmem:[%s9044_s18 + $0x548] sm:$0xff]  ;;  %v8464_v26 = vld [vmem:[%s11199_s28 + $0x250] sm:$0xff]  }
  0x34   : > { %7322 = vmatpush3.bf16.msra.mxu0 %v8422_v30  ;;  %v679_v30 = vld [vmem:[%s9044_s18 + $0x428] sm:$0xff]  ;;  %v8458_v58 = vld [vmem:[%s11199_s28 + $0x2c0] sm:$0xff]   ;;  %v8466_v27 = vld [vmem:[%s11199_s28 + $0x2d0] sm:$0xff]  }
  0x35   : > { %7386 = vmatpush3.bf16.msra.mxu1 %v8423_v31  ;;  %7435 = vmatprep.subr.bf16.mxu0 %v8424_v40  ;;  %v8445_v31 = vld [vmem:[%s11199_s28 + $0x128] sm:$0xff]   ;;  %v6935_v37 = vcombine.high %v667_v29, %v679_v30  ;;  %v8450_v40 = vld [vmem:[%s11199_s28 + $0x1f0] sm:$0xff]   ;;  %v8459_v15 = vld [vmem:[%s11199_s28 + $0x280] sm:$0xff]  }
  0x36   : > { %7499 = vmatprep.subr.bf16.mxu1 %v8426_v42  ;;  %v702_v42 = vld [vmem:[%s9044_s18 + $0x4e0] sm:$0xff]  ;;  %v727_v59 = vld [vmem:[%s9044_s18 + $0x5a8] sm:$0xff] }
  0x37   : > { %3274 = vmatmul.mubr.bf16.vlgmr.msra.gmra.mrb[0].mxu0 %v6812_v35  ;;  %v6910_v35 = vcombine.low %v643_v16, %v655_v17  ;;  %v6982_v5 = vcombine.low %v715_v57, %v727_v59  ;;  %v8460_v17 = vld [vmem:[%s11199_s28 + $0x248] sm:$0xff]  }
  0x38   : > { %3371 = vmatmul.mubr.bf16.vlgmr.msra.gmra.mrb[0].mxu1 %v6814_v38  ;;  %7436 = vmatpush3.bf16.msra.mxu0 %v8425_v41  ;;  %v8448_v38 = vld [vmem:[%s11199_s28 + $0x170] sm:$0xff]   ;;  %v690_v41 = vld [vmem:[%s9044_s18 + $0x480] sm:$0xff] }
  0x39   : > { %7500 = vmatpush3.bf16.msra.mxu1 %v8427_v43  ;;  %3281 = vmatprep.mubr.bf16.mxu0 %v6837_v46  ;;  %v8451_v43 = vld [vmem:[%s11199_s28 + $0x1b0] sm:$0xff]   ;;  %v8452_v46 = vld [vmem:[%s11199_s28 + $0x178] sm:$0xff]  }
  0x3a   : > { %3378 = vmatprep.mubr.bf16.mxu1 %v6839_v49  ;;  %7437 = vmatprep.subr.bf16.mxu0 %v8428_v50  ;;  %v6934_v49 = vcombine.low %v667_v29, %v679_v30  ;;  %v6957_v50 = vcombine.high %v690_v41, %v702_v42 }
  0x3b   : > { %7501 = vmatprep.subr.bf16.mxu1 %v8430_v54  ;;  %v714_v54 = vld [vmem:[%s9044_s18 + $0x540] sm:$0xff] }
  0x3c   : > { %7438 = vmatpush3.bf16.msra.mxu0 %v8429_v52  ;;  %v6959_v52 = vcombine.high %v691_v44, %v703_v45 }
  0x3d   : > { %7502 = vmatpush3.bf16.msra.mxu1 %v8431_v55  ;;  %7439 = vmatprep.subr.bf16.mxu0 %v8432_v62  ;;  %v726_v55 = vld [vmem:[%s9044_s18 + $0x5a0] sm:$0xff] }
  0x3e   : > { %7503 = vmatprep.subr.bf16.mxu1 %v8434_v0  ;;  %v6981_v62 = vcombine.high %v714_v54, %v726_v55  ;;  %v548_v0 = vld [vmem:[%s9044_s18 + $0x10] sm:$0xff]  ;;  %v6980_v4 = vcombine.low %v714_v54, %v726_v55  ;;  %v645_v54 = vld [vmem:[%s9044_s18 + $0x318] sm:$0xff] }
  0x3f   : > { %3282 = vmatmul.mubr.bf16.gmra.mrb[4].mxu0 %v6836_v51  ;;  %v8454_v51 = vld [vmem:[%s11199_s28 + $0x1f8] sm:$0xff]  }
  0x40   : > { %3379 = vmatmul.mubr.bf16.gmra.mrb[4].mxu1 %v6838_v53  ;;  %3289 = vmatprep.mubr.bf16.mxu0 %v6861_v60  ;;  %v8455_v53 = vld [vmem:[%s11199_s28 + $0x1b8] sm:$0xff]   ;;  %v6956_v60 = vcombine.low %v690_v41, %v702_v42  ;;  %v8472_v42 = vld [vmem:[%s11199_s28 + $0x260] sm:$0xff]  }
  0x41   : > { %3386 = vmatprep.mubr.bf16.mxu1 %v6863_v61  ;;  %7440 = vmatpush3.bf16.msra.mxu0 %v8433_v63  ;;  %v6958_v61 = vcombine.low %v691_v44, %v703_v45  ;;  %v6983_v63 = vcombine.high %v715_v57, %v727_v59  ;;  %v8471_v41 = vld [vmem:[%s11199_s28 + $0x298] sm:$0xff]   ;;  %v8474_v44 = vld [vmem:[%s11199_s28 + $0x2e0] sm:$0xff]   ;;  %v8479_v57 = vld [vmem:[%s11199_s28 + $0x2a8] sm:$0xff]  }
  0x42   : > { %7504 = vmatpush3.bf16.msra.mxu1 %v8435_v1  ;;  %7441 = vmatprep.subr.bf16.mxu0 %v8436_v10  ;;  %v560_v1 = vld [vmem:[%s9044_s18 + $0x70] sm:$0xff]  ;;  %v657_v55 = vld [vmem:[%s9044_s18 + $0x378] sm:$0xff] }
  0x43   : > { %7505 = vmatprep.subr.bf16.mxu1 %v8438_v12  ;;  %v6816_v10 = vcombine.low %v548_v0, %v560_v1  ;;  %v573_v12 = vld [vmem:[%s9044_s18 + $0xd8] sm:$0xff] }
  0x45   : > { %7442 = vmatpush3.bf16.msra.mxu0 %v8437_v11  ;;  %v8457_v11 = vld [vmem:[%s11199_s28 + $0x200] sm:$0xff]  }
  0x46   : > { %7506 = vmatpush3.bf16.msra.mxu1 %v8439_v13  ;;  %7443 = vmatprep.subr.bf16.mxu0 %v8440_v18  ;;  %v585_v13 = vld [vmem:[%s9044_s18 + $0x138] sm:$0xff] }
  0x47   : > { %3290 = vmatmul.mubr.bf16.gmra.mrb[8].mxu0 %v6860_v2  ;;  %7507 = vmatprep.subr.bf16.mxu1 %v8442_v23  ;;  %v549_v2 = vld [vmem:[%s9044_s18 + $0x18] sm:$0xff]  ;;  %v6843_v18 = vcombine.high %v573_v12, %v585_v13  ;;  %v608_v23 = vld [vmem:[%s9044_s18 + $0x1f0] sm:$0xff]  ;;  %v6842_v29 = vcombine.low %v573_v12, %v585_v13  ;;  %v8490_v12 = vld [vmem:[%s11199_s28 + $0x3c0] sm:$0xff]   ;;  %v6914_v13 = vcombine.low %v645_v54, %v657_v55 }
  0x48   : > { %3387 = vmatmul.mubr.bf16.gmra.mrb[8].mxu1 %v6862_v6  ;;  %3297 = vmatprep.mubr.bf16.mxu0 %v6885_v7  ;;  %v6817_v6 = vcombine.high %v548_v0, %v560_v1  ;;  %v6819_v7 = vcombine.high %v549_v2, %v561_v3  ;;  %v6818_v14 = vcombine.low %v549_v2, %v561_v3  ;;  %v8481_v0 = vld [vmem:[%s11199_s28 + $0x230] sm:$0xff]   ;;  %v8484_v2 = vld [vmem:[%s11199_s28 + $0x278] sm:$0xff]  }
  0x49   : > { %3394 = vmatprep.mubr.bf16.mxu1 %v6887_v9  ;;  %7444 = vmatpush3.bf16.msra.mxu0 %v8441_v20  ;;  %v584_v9 = vld [vmem:[%s9044_s18 + $0x130] sm:$0xff]  ;;  %v8462_v20 = vld [vmem:[%s11199_s28 + $0x2c8] sm:$0xff]  }
  0x4a   : > { %7508 = vmatpush3.bf16.msra.mxu1 %v8443_v25  ;;  %7445 = vmatprep.subr.bf16.mxu0 %v8444_v28  ;;  %v6841_v16 = vcombine.high %v572_v8, %v584_v9  ;;  %v609_v25 = vld [vmem:[%s9044_s18 + $0x1f8] sm:$0xff]  ;;  %v6840_v28 = vcombine.low %v572_v8, %v584_v9  ;;  %v8483_v1 = vld [vmem:[%s11199_s28 + $0x2b0] sm:$0xff]  }
  0x4b   : > { %7509 = vmatprep.subr.bf16.mxu1 %v8446_v32  ;;  %v8465_v32 = vld [vmem:[%s11199_s28 + $0x210] sm:$0xff]   ;;  %v8485_v8 = vld [vmem:[%s11199_s28 + $0x238] sm:$0xff]  }
  0x4c   : > { %v668_v3 = vld [vmem:[%s9044_s18 + $0x3d0] sm:$0xff]  ;;  %v8487_v9 = vld [vmem:[%s11199_s28 + $0x2b8] sm:$0xff]  }
  0x4d   : > { %7446 = vmatpush3.bf16.msra.mxu0 %v8445_v31 }
  0x4e   : > { %7510 = vmatpush3.bf16.msra.mxu1 %v8447_v33  ;;  %7447 = vmatprep.subr.bf16.mxu0 %v8448_v38  ;;  %v8467_v33 = vld [vmem:[%s11199_s28 + $0x290] sm:$0xff]   ;;  %v621_v38 = vld [vmem:[%s9044_s18 + $0x258] sm:$0xff] }
  0x4f   : > { %3298 = vmatmul.mubr.bf16.gmra.mrb[12].mxu0 %v6884_v19  ;;  %7511 = vmatprep.subr.bf16.mxu1 %v8450_v40  ;;  %v8461_v19 = vld [vmem:[%s11199_s28 + $0x208] sm:$0xff]   ;;  %v8469_v40 = vld [vmem:[%s11199_s28 + $0x218] sm:$0xff]  }
  0x50   : > { %3395 = vmatmul.mubr.bf16.gmra.mrb[12].mxu1 %v6886_v21  ;;  %3305 = vmatprep.mubr.bf16.mxu0 %v6909_v22  ;;  %v8463_v21 = vld [vmem:[%s11199_s28 + $0x288] sm:$0xff]   ;;  %v596_v22 = vld [vmem:[%s9044_s18 + $0x190] sm:$0xff] }
  0x51   : > { %3402 = vmatprep.mubr.bf16.mxu1 %v6911_v24  ;;  %7448 = vmatpush3.bf16.msra.mxu0 %v8449_v39  ;;  %v597_v24 = vld [vmem:[%s9044_s18 + $0x198] sm:$0xff]  ;;  %v6865_v30 = vcombine.high %v596_v22, %v608_v23 }
  0x52   : > { %7512 = vmatpush3.bf16.msra.mxu1 %v8451_v43  ;;  %7449 = vmatprep.subr.bf16.mxu0 %v8452_v46  ;;  %v6867_v31 = vcombine.high %v597_v24, %v609_v25  ;;  %v633_v39 = vld [vmem:[%s9044_s18 + $0x2b8] sm:$0xff]  ;;  %v6864_v43 = vcombine.low %v596_v22, %v608_v23  ;;  %v6866_v45 = vcombine.low %v597_v24, %v609_v25  ;;  %v716_v24 = vld [vmem:[%s9044_s18 + $0x550] sm:$0xff] }
  0x53   : > { %7513 = vmatprep.subr.bf16.mxu1 %v8454_v51  ;;  %v644_v51 = vld [vmem:[%s9044_s18 + $0x310] sm:$0xff] }
  0x54   : > { %v728_v25 = vld [vmem:[%s9044_s18 + $0x5b0] sm:$0xff] }
  0x55   : > { %7450 = vmatpush3.bf16.msra.mxu0 %v8453_v48  ;;  %v6891_v48 = vcombine.high %v621_v38, %v633_v39 }
  0x56   : > { %7514 = vmatpush3.bf16.msra.mxu1 %v8455_v53  ;;  %7563 = vmatprep.subr.bf16.mxu0 %v8456_v56  ;;  %v656_v53 = vld [vmem:[%s9044_s18 + $0x370] sm:$0xff]  ;;  %v8477_v56 = vld [vmem:[%s11199_s28 + $0x228] sm:$0xff]  }
  0x57   : > { %3306 = vmatmul.mubr.bf16.gmra.mrb[16].mxu0 %v6908_v34  ;;  %7627 = vmatprep.subr.bf16.mxu1 %v8458_v58  ;;  %v8468_v34 = vld [vmem:[%s11199_s28 + $0x258] sm:$0xff]   ;;  %v8480_v58 = vld [vmem:[%s11199_s28 + $0x270] sm:$0xff]  }
  0x58   : > { %3403 = vmatmul.mubr.bf16.gmra.mrb[16].mxu1 %v6910_v35  ;;  %3313 = vmatprep.mubr.bf16.mxu0 %v6933_v36  ;;  %v620_v35 = vld [vmem:[%s9044_s18 + $0x250] sm:$0xff] }
  0x59   : > { %3410 = vmatprep.mubr.bf16.mxu1 %v6935_v37  ;;  %v632_v36 = vld [vmem:[%s9044_s18 + $0x2b0] sm:$0xff]  ;;  %v8470_v37 = vld [vmem:[%s11199_s28 + $0x2d8] sm:$0xff]  }
  0x5a   : > { %v6889_v46 = vcombine.high %v620_v35, %v632_v36  ;;  %v6888_v59 = vcombine.low %v620_v35, %v632_v36  ;;  %v563_v35 = vld [vmem:[%s9044_s18 + $0x88] sm:$0xff]  ;;  %v6984_v36 = vcombine.low %v716_v24, %v728_v25 }
  0x5f   : > { %3314 = vmatmul.mubr.bf16.gmra.mrb[20].mxu0 %v6932_v47  ;;  %v8473_v47 = vld [vmem:[%s11199_s28 + $0x220] sm:$0xff]  }
  0x60   : > { %3411 = vmatmul.mubr.bf16.gmra.mrb[20].mxu1 %v6934_v49  ;;  %3321 = vmatprep.mubr.bf16.mxu0 %v6957_v50  ;;  %v8475_v49 = vld [vmem:[%s11199_s28 + $0x2a0] sm:$0xff]   ;;  %v8476_v50 = vld [vmem:[%s11199_s28 + $0x268] sm:$0xff]  }
  0x61   : > { %3418 = vmatprep.mubr.bf16.mxu1 %v6959_v52  ;;  %v8478_v52 = vld [vmem:[%s11199_s28 + $0x2e8] sm:$0xff]  }
  0x67   : > { %3322 = vmatmul.mubr.bf16.gmra.mrb[24].mxu0 %v6956_v60  ;;  %v8482_v60 = vld [vmem:[%s11199_s28 + $0x2f0] sm:$0xff]  }
  0x68   : > { %3419 = vmatmul.mubr.bf16.gmra.mrb[24].mxu1 %v6958_v61  ;;  %3329 = vmatprep.mubr.bf16.mxu0 %v6981_v62  ;;  %v6890_v61 = vcombine.low %v621_v38, %v633_v39  ;;  %v6913_v62 = vcombine.high %v644_v51, %v656_v53 }
  0x69   : > { %3426 = vmatprep.mubr.bf16.mxu1 %v6983_v63  ;;  %v6915_v63 = vcombine.high %v645_v54, %v657_v55  ;;  %v598_v54 = vld [vmem:[%s9044_s18 + $0x1a0] sm:$0xff] }
  0x6a   : > { %v610_v55 = vld [vmem:[%s9044_s18 + $0x200] sm:$0xff] }
  0x6f   : > { %3330 = vmatmul.mubr.bf16.gmra.mrb[28].mxu0 %v6980_v4  ;;  %v680_v4 = vld [vmem:[%s9044_s18 + $0x430] sm:$0xff] }
  0x70   : > { %3427 = vmatmul.mubr.bf16.gmra.mrb[28].mxu1 %v6982_v5  ;;  %3467 = vmatprep.mubr.bf16.mxu0 %v6817_v6  ;;  %v8486_v5 = vld [vmem:[%s11199_s28 + $0x2f8] sm:$0xff]  }
  0x71   : > { %3564 = vmatprep.mubr.bf16.mxu1 %v6819_v7  ;;  %v669_v6 = vld [vmem:[%s9044_s18 + $0x3d8] sm:$0xff] }
  0x72   : > { %v681_v7 = vld [vmem:[%s9044_s18 + $0x438] sm:$0xff] }
  0x77   : > { %3468 = vmatmul.mubr.bf16.vlgmr.msra.gmra.mrb[32].mxu0 %v6816_v10  ;;  %v8488_v10 = vld [vmem:[%s11199_s28 + $0x340] sm:$0xff]  }
  0x78   : > { %3565 = vmatmul.mubr.bf16.vlgmr.msra.gmra.mrb[32].mxu1 %v6818_v14  ;;  %7564 = vmatpush3.bf16.msra.mxu0 %v8457_v11  ;;  %v6912_v11 = vcombine.low %v644_v51, %v656_v53  ;;  %v6937_v14 = vcombine.high %v668_v3, %v680_v4  ;;  %v8493_v51 = vld [vmem:[%s11199_s28 + $0x308] sm:$0xff]  }
  0x79   : > { %7628 = vmatpush3.bf16.msra.mxu1 %v8459_v15  ;;  %3475 = vmatprep.mubr.bf16.mxu0 %v6841_v16  ;;  %v6939_v15 = vcombine.high %v669_v6, %v681_v7  ;;  %v692_v16 = vld [vmem:[%s9044_s18 + $0x490] sm:$0xff]  ;;  %v8495_v53 = vld [vmem:[%s11199_s28 + $0x388] sm:$0xff]  }
  0x7a   : > { %3572 = vmatprep.mubr.bf16.mxu1 %v6843_v18  ;;  %7565 = vmatprep.subr.bf16.mxu0 %v8460_v17  ;;  %v704_v17 = vld [vmem:[%s9044_s18 + $0x4f0] sm:$0xff]  ;;  %v693_v18 = vld [vmem:[%s9044_s18 + $0x498] sm:$0xff] }
  0x7b   : > { %7629 = vmatprep.subr.bf16.mxu1 %v8462_v20  ;;  %v6936_v20 = vcombine.low %v668_v3, %v680_v4  ;;  %v6961_v22 = vcombine.high %v692_v16, %v704_v17  ;;  %v622_v3 = vld [vmem:[%s9044_s18 + $0x260] sm:$0xff] }
  0x7c   : > { %7566 = vmatpush3.bf16.msra.mxu0 %v8461_v19  ;;  %v705_v19 = vld [vmem:[%s9044_s18 + $0x4f8] sm:$0xff]  ;;  %v634_v4 = vld [vmem:[%s9044_s18 + $0x2c0] sm:$0xff] }
  0x7d   : > { %7630 = vmatpush3.bf16.msra.mxu1 %v8463_v21  ;;  %7567 = vmatprep.subr.bf16.mxu0 %v8464_v26  ;;  %v6938_v21 = vcombine.low %v669_v6, %v681_v7  ;;  %v6963_v23 = vcombine.high %v693_v18, %v705_v19  ;;  %v717_v26 = vld [vmem:[%s9044_s18 + $0x558] sm:$0xff]  ;;  %v623_v6 = vld [vmem:[%s9044_s18 + $0x268] sm:$0xff] }
  0x7e   : > { %7631 = vmatprep.subr.bf16.mxu1 %v8466_v27  ;;  %v729_v27 = vld [vmem:[%s9044_s18 + $0x5b8] sm:$0xff]  ;;  %v635_v7 = vld [vmem:[%s9044_s18 + $0x2c8] sm:$0xff] }
  0x7f   : > { %3476 = vmatmul.mubr.bf16.gmra.mrb[36].mxu0 %v6840_v28  ;;  %v6960_v28 = vcombine.low %v692_v16, %v704_v17  ;;  %v6895_v16 = vcombine.high %v623_v6, %v635_v7  ;;  %v8507_v17 = vld [vmem:[%s11199_s28 + $0x3a0] sm:$0xff]  }
  0x80   : > { %3573 = vmatmul.mubr.bf16.gmra.mrb[36].mxu1 %v6842_v29  ;;  %3483 = vmatprep.mubr.bf16.mxu0 %v6865_v30  ;;  %v6962_v29 = vcombine.low %v693_v18, %v705_v19  ;;  %v6985_v30 = vcombine.high %v716_v24, %v728_v25  ;;  %v8508_v18 = vld [vmem:[%s11199_s28 + $0x368] sm:$0xff]   ;;  %v646_v19 = vld [vmem:[%s9044_s18 + $0x320] sm:$0xff] }
  0x81   : > { %3580 = vmatprep.mubr.bf16.mxu1 %v6867_v31  ;;  %7568 = vmatpush3.bf16.msra.mxu0 %v8465_v32  ;;  %v6987_v31 = vcombine.high %v717_v26, %v729_v27  ;;  %v550_v32 = vld [vmem:[%s9044_s18 + $0x20] sm:$0xff]  ;;  %v8509_v24 = vld [vmem:[%s11199_s28 + $0x328] sm:$0xff]  }
  0x82   : > { %7632 = vmatpush3.bf16.msra.mxu1 %v8467_v33  ;;  %7569 = vmatprep.subr.bf16.mxu0 %v8468_v34  ;;  %v562_v33 = vld [vmem:[%s9044_s18 + $0x80] sm:$0xff]  ;;  %v551_v34 = vld [vmem:[%s9044_s18 + $0x28] sm:$0xff] }
  0x83   : > { %7633 = vmatprep.subr.bf16.mxu1 %v8470_v37  ;;  %v6986_v37 = vcombine.low %v717_v26, %v729_v27  ;;  %v6821_v38 = vcombine.high %v550_v32, %v562_v33  ;;  %v6823_v39 = vcombine.high %v551_v34, %v563_v35  ;;  %v8511_v25 = vld [vmem:[%s11199_s28 + $0x3a8] sm:$0xff]   ;;  %v8512_v26 = vld [vmem:[%s11199_s28 + $0x370] sm:$0xff]   ;;  %v6892_v27 = vcombine.low %v622_v3, %v634_v4 }
  0x85   : > { %7570 = vmatpush3.bf16.msra.mxu0 %v8469_v40  ;;  %v574_v40 = vld [vmem:[%s9044_s18 + $0xe0] sm:$0xff] }
  0x86   : > { %7634 = vmatpush3.bf16.msra.mxu1 %v8471_v41  ;;  %7571 = vmatprep.subr.bf16.mxu0 %v8472_v42  ;;  %v586_v41 = vld [vmem:[%s9044_s18 + $0x140] sm:$0xff]  ;;  %v6820_v42 = vcombine.low %v550_v32, %v562_v33  ;;  %v8513_v32 = vld [vmem:[%s11199_s28 + $0x330] sm:$0xff]  }
  0x87   : > { %3484 = vmatmul.mubr.bf16.gmra.mrb[40].mxu0 %v6864_v43  ;;  %7635 = vmatprep.subr.bf16.mxu1 %v8474_v44  ;;  %v8489_v43 = vld [vmem:[%s11199_s28 + $0x300] sm:$0xff]   ;;  %v575_v44 = vld [vmem:[%s9044_s18 + $0xe8] sm:$0xff]  ;;  %v8515_v33 = vld [vmem:[%s11199_s28 + $0x3b0] sm:$0xff]  }
  0x88   : > { %3581 = vmatmul.mubr.bf16.gmra.mrb[40].mxu1 %v6866_v45  ;;  %3491 = vmatprep.mubr.bf16.mxu0 %v6889_v46  ;;  %v587_v45 = vld [vmem:[%s9044_s18 + $0x148] sm:$0xff]  ;;  %v6822_v46 = vcombine.low %v551_v34, %v563_v35  ;;  %v8516_v34 = vld [vmem:[%s11199_s28 + $0x378] sm:$0xff]   ;;  %v670_v35 = vld [vmem:[%s9044_s18 + $0x3e0] sm:$0xff] }
  0x89   : > { %3588 = vmatprep.mubr.bf16.mxu1 %v6891_v48  ;;  %7572 = vmatpush3.bf16.msra.mxu0 %v8473_v47  ;;  %v8491_v47 = vld [vmem:[%s11199_s28 + $0x380] sm:$0xff]   ;;  %v6845_v48 = vcombine.high %v574_v40, %v586_v41 }
  0x8a   : > { %7636 = vmatpush3.bf16.msra.mxu1 %v8475_v49  ;;  %7573 = vmatprep.subr.bf16.mxu0 %v8476_v50  ;;  %v8492_v49 = vld [vmem:[%s11199_s28 + $0x348] sm:$0xff]   ;;  %v6847_v50 = vcombine.high %v575_v44, %v587_v45 }
  0x8b   : > { %7637 = vmatprep.subr.bf16.mxu1 %v8478_v52  ;;  %v8494_v52 = vld [vmem:[%s11199_s28 + $0x3c8] sm:$0xff]  }
  0x8d   : > { %7574 = vmatpush3.bf16.msra.mxu0 %v8477_v56  ;;  %v599_v56 = vld [vmem:[%s9044_s18 + $0x1a8] sm:$0xff] }
  0x8e   : > { %7638 = vmatpush3.bf16.msra.mxu1 %v8479_v57  ;;  %7575 = vmatprep.subr.bf16.mxu0 %v8480_v58  ;;  %v611_v57 = vld [vmem:[%s9044_s18 + $0x208] sm:$0xff]  ;;  %v8496_v58 = vld [vmem:[%s11199_s28 + $0x350] sm:$0xff]  }
  0x8f   : > { %3492 = vmatmul.mubr.bf16.gmra.mrb[44].mxu0 %v6888_v59  ;;  %7639 = vmatprep.subr.bf16.mxu1 %v8482_v60  ;;  %v8498_v59 = vld [vmem:[%s11199_s28 + $0x3d0] sm:$0xff]   ;;  %v6844_v60 = vcombine.low %v574_v40, %v586_v41  ;;  %v8517_v40 = vld [vmem:[%s11199_s28 + $0x338] sm:$0xff]  }
  0x90   : > { %3589 = vmatmul.mubr.bf16.gmra.mrb[44].mxu1 %v6890_v61  ;;  %3499 = vmatprep.mubr.bf16.mxu0 %v6913_v62  ;;  %v6846_v61 = vcombine.low %v575_v44, %v587_v45  ;;  %v6869_v62 = vcombine.high %v598_v54, %v610_v55  ;;  %v8519_v41 = vld [vmem:[%s11199_s28 + $0x3b8] sm:$0xff]   ;;  %v8522_v44 = vld [vmem:[%s11199_s28 + $0x4c0] sm:$0xff]  }
  0x91   : > { %3596 = vmatprep.mubr.bf16.mxu1 %v6915_v63  ;;  %7576 = vmatpush3.bf16.msra.mxu0 %v8481_v0  ;;  %v6871_v63 = vcombine.high %v599_v56, %v611_v57  ;;  %v8497_v0 = vld [vmem:[%s11199_s28 + $0x310] sm:$0xff]  }
  0x92   : > { %7640 = vmatpush3.bf16.msra.mxu1 %v8483_v1  ;;  %7577 = vmatprep.subr.bf16.mxu0 %v8484_v2  ;;  %v8499_v1 = vld [vmem:[%s11199_s28 + $0x390] sm:$0xff]   ;;  %v8500_v2 = vld [vmem:[%s11199_s28 + $0x358] sm:$0xff]  }
  0x93   : > { %7641 = vmatprep.subr.bf16.mxu1 %v8486_v5  ;;  %v8502_v5 = vld [vmem:[%s11199_s28 + $0x3d8] sm:$0xff]  }
  0x95   : > { %7578 = vmatpush3.bf16.msra.mxu0 %v8485_v8  ;;  %v8501_v8 = vld [vmem:[%s11199_s28 + $0x318] sm:$0xff]  }
  0x96   : > { %7642 = vmatpush3.bf16.msra.mxu1 %v8487_v9  ;;  %7691 = vmatprep.subr.bf16.mxu0 %v8488_v10  ;;  %v8503_v9 = vld [vmem:[%s11199_s28 + $0x398] sm:$0xff]   ;;  %v8504_v10 = vld [vmem:[%s11199_s28 + $0x360] sm:$0xff]  }
  0x97   : > { %3500 = vmatmul.mubr.bf16.gmra.mrb[48].mxu0 %v6912_v11  ;;  %7755 = vmatprep.subr.bf16.mxu1 %v8490_v12  ;;  %v6868_v11 = vcombine.low %v598_v54, %v610_v55  ;;  %v8506_v12 = vld [vmem:[%s11199_s28 + $0x3e0] sm:$0xff]  }
  0x98   : > { %3597 = vmatmul.mubr.bf16.gmra.mrb[48].mxu1 %v6914_v13  ;;  %3507 = vmatprep.mubr.bf16.mxu0 %v6937_v14  ;;  %v6870_v13 = vcombine.low %v599_v56, %v611_v57  ;;  %v6893_v14 = vcombine.high %v622_v3, %v634_v4  ;;  %v718_v56 = vld [vmem:[%s9044_s18 + $0x560] sm:$0xff]  ;;  %v565_v3 = vld [vmem:[%s9044_s18 + $0x98] sm:$0xff] }
  0x99   : > { %3604 = vmatprep.mubr.bf16.mxu1 %v6939_v15  ;;  %v8505_v15 = vld [vmem:[%s11199_s28 + $0x320] sm:$0xff]  }
  0x9a   : > { %v730_v57 = vld [vmem:[%s9044_s18 + $0x5c0] sm:$0xff] }
  0x9b   : > { %v6988_v4 = vcombine.low %v718_v56, %v730_v57 }
  0x9f   : > { %3508 = vmatmul.mubr.bf16.gmra.mrb[52].mxu0 %v6936_v20  ;;  %v8510_v20 = vld [vmem:[%s11199_s28 + $0x3e8] sm:$0xff]  }
  0xa0   : > { %3605 = vmatmul.mubr.bf16.gmra.mrb[52].mxu1 %v6938_v21  ;;  %3515 = vmatprep.mubr.bf16.mxu0 %v6961_v22  ;;  %v658_v21 = vld [vmem:[%s9044_s18 + $0x380] sm:$0xff]  ;;  %v647_v22 = vld [vmem:[%s9044_s18 + $0x328] sm:$0xff] }
  0xa1   : > { %3612 = vmatprep.mubr.bf16.mxu1 %v6963_v23  ;;  %v659_v23 = vld [vmem:[%s9044_s18 + $0x388] sm:$0xff] }
  0xa2   : > { %v6918_v45 = vcombine.low %v647_v22, %v659_v23 }
  0xa7   : > { %3516 = vmatmul.mubr.bf16.gmra.mrb[56].mxu0 %v6960_v28  ;;  %v8514_v28 = vld [vmem:[%s11199_s28 + $0x3f0] sm:$0xff]  }
  0xa8   : > { %3613 = vmatmul.mubr.bf16.gmra.mrb[56].mxu1 %v6962_v29  ;;  %3523 = vmatprep.mubr.bf16.mxu0 %v6985_v30  ;;  %v6894_v29 = vcombine.low %v623_v6, %v635_v7  ;;  %v6917_v30 = vcombine.high %v646_v19, %v658_v21 }
  0xa9   : > { %3620 = vmatprep.mubr.bf16.mxu1 %v6987_v31  ;;  %v6919_v31 = vcombine.high %v647_v22, %v659_v23  ;;  %v600_v22 = vld [vmem:[%s9044_s18 + $0x1b0] sm:$0xff] }
  0xaa   : > { %v612_v23 = vld [vmem:[%s9044_s18 + $0x210] sm:$0xff] }
  0xaf   : > { %3524 = vmatmul.mubr.bf16.gmra.mrb[60].mxu0 %v6984_v36  ;;  %v682_v36 = vld [vmem:[%s9044_s18 + $0x440] sm:$0xff] }
  0xb0   : > { %3621 = vmatmul.mubr.bf16.gmra.mrb[60].mxu1 %v6986_v37  ;;  %3661 = vmatprep.mubr.bf16.mxu0 %v6821_v38  ;;  %v8518_v37 = vld [vmem:[%s11199_s28 + $0x3f8] sm:$0xff]   ;;  %v671_v38 = vld [vmem:[%s9044_s18 + $0x3e8] sm:$0xff] }
  0xb1   : > { %3758 = vmatprep.mubr.bf16.mxu1 %v6823_v39  ;;  %v683_v39 = vld [vmem:[%s9044_s18 + $0x448] sm:$0xff] }
  0xb7   : > { %3662 = vmatmul.mubr.bf16.vlgmr.msra.gmra.mrb[64].mxu0 %v6820_v42  ;;  %v8520_v42 = vld [vmem:[%s11199_s28 + $0x440] sm:$0xff]  }
  0xb8   : > { %3759 = vmatmul.mubr.bf16.vlgmr.msra.gmra.mrb[64].mxu1 %v6822_v46  ;;  %7692 = vmatpush3.bf16.msra.mxu0 %v8489_v43  ;;  %v6916_v43 = vcombine.low %v646_v19, %v658_v21  ;;  %v6941_v46 = vcombine.high %v670_v35, %v682_v36  ;;  %v8525_v19 = vld [vmem:[%s11199_s28 + $0x408] sm:$0xff]  }
  0xb9   : > { %7756 = vmatpush3.bf16.msra.mxu1 %v8491_v47  ;;  %3669 = vmatprep.mubr.bf16.mxu0 %v6845_v48  ;;  %v6943_v47 = vcombine.high %v671_v38, %v683_v39  ;;  %v694_v48 = vld [vmem:[%s9044_s18 + $0x4a0] sm:$0xff]  ;;  %v8527_v21 = vld [vmem:[%s11199_s28 + $0x488] sm:$0xff]  }
  0xba   : > { %3766 = vmatprep.mubr.bf16.mxu1 %v6847_v50  ;;  %7693 = vmatprep.subr.bf16.mxu0 %v8492_v49  ;;  %v706_v49 = vld [vmem:[%s9044_s18 + $0x500] sm:$0xff]  ;;  %v695_v50 = vld [vmem:[%s9044_s18 + $0x4a8] sm:$0xff] }
  0xbb   : > { %7757 = vmatprep.subr.bf16.mxu1 %v8494_v52  ;;  %v6940_v52 = vcombine.low %v670_v35, %v682_v36  ;;  %v6965_v54 = vcombine.high %v694_v48, %v706_v49  ;;  %v9488_v35 = vld [vmem:[%s9044_s18 + $0x270] sm:$0xff] }
  0xbc   : > { %7694 = vmatpush3.bf16.msra.mxu0 %v8493_v51  ;;  %v707_v51 = vld [vmem:[%s9044_s18 + $0x508] sm:$0xff]  ;;  %v9491_v36 = vld [vmem:[%s9044_s18 + $0x2d0] sm:$0xff] }
  0xbd   : > { %7758 = vmatpush3.bf16.msra.mxu1 %v8495_v53  ;;  %7695 = vmatprep.subr.bf16.mxu0 %v8496_v58  ;;  %v6942_v53 = vcombine.low %v671_v38, %v683_v39  ;;  %v6967_v55 = vcombine.high %v695_v50, %v707_v51  ;;  %v719_v58 = vld [vmem:[%s9044_s18 + $0x568] sm:$0xff]  ;;  %v9497_v38 = vld [vmem:[%s9044_s18 + $0x278] sm:$0xff] }
  0xbe   : > { %7759 = vmatprep.subr.bf16.mxu1 %v8498_v59  ;;  %v731_v59 = vld [vmem:[%s9044_s18 + $0x5c8] sm:$0xff]  ;;  %v9500_v39 = vld [vmem:[%s9044_s18 + $0x2d8] sm:$0xff] }
  0xbf   : > { %3670 = vmatmul.mubr.bf16.gmra.mrb[68].mxu0 %v6844_v60  ;;  %v6964_v60 = vcombine.low %v694_v48, %v706_v49  ;;  %v6899_v48 = vcombine.high %v9497_v38, %v9500_v39  ;;  %v8539_v49 = vld [vmem:[%s11199_s28 + $0x4a0] sm:$0xff]  }
  0xc0   : > { %3767 = vmatmul.mubr.bf16.gmra.mrb[68].mxu1 %v6846_v61  ;;  %3677 = vmatprep.mubr.bf16.mxu0 %v6869_v62  ;;  %v6966_v61 = vcombine.low %v695_v50, %v707_v51  ;;  %v6989_v62 = vcombine.high %v718_v56, %v730_v57  ;;  %v8540_v50 = vld [vmem:[%s11199_s28 + $0x468] sm:$0xff]   ;;  %v9543_v57 = vld [vmem:[%s9044_s18 + $0x398] sm:$0xff] }
  0xc1   : > { %3774 = vmatprep.mubr.bf16.mxu1 %v6871_v63  ;;  %7696 = vmatpush3.bf16.msra.mxu0 %v8497_v0  ;;  %v6991_v63 = vcombine.high %v719_v58, %v731_v59  ;;  %v552_v0 = vld [vmem:[%s9044_s18 + $0x30] sm:$0xff]  ;;  %v8542_v51 = vld [vmem:[%s11199_s28 + $0x4e8] sm:$0xff]  }
  0xc2   : > { %7760 = vmatpush3.bf16.msra.mxu1 %v8499_v1  ;;  %7697 = vmatprep.subr.bf16.mxu0 %v8500_v2  ;;  %v564_v1 = vld [vmem:[%s9044_s18 + $0x90] sm:$0xff]  ;;  %v553_v2 = vld [vmem:[%s9044_s18 + $0x38] sm:$0xff] }
  0xc3   : > { %7761 = vmatprep.subr.bf16.mxu1 %v8502_v5  ;;  %v6990_v5 = vcombine.low %v719_v58, %v731_v59  ;;  %v6825_v6 = vcombine.high %v552_v0, %v564_v1  ;;  %v6827_v7 = vcombine.high %v553_v2, %v565_v3  ;;  %v8543_v58 = vld [vmem:[%s11199_s28 + $0x4a8] sm:$0xff]   ;;  %v8544_v59 = vld [vmem:[%s11199_s28 + $0x470] sm:$0xff]  }
  0xc5   : > { %7698 = vmatpush3.bf16.msra.mxu0 %v8501_v8  ;;  %v576_v8 = vld [vmem:[%s9044_s18 + $0xf0] sm:$0xff] }
  0xc6   : > { %7762 = vmatpush3.bf16.msra.mxu1 %v8503_v9  ;;  %7699 = vmatprep.subr.bf16.mxu0 %v8504_v10  ;;  %v588_v9 = vld [vmem:[%s9044_s18 + $0x150] sm:$0xff]  ;;  %v6824_v10 = vcombine.low %v552_v0, %v564_v1 }
  0xc7   : > { %3678 = vmatmul.mubr.bf16.gmra.mrb[72].mxu0 %v6868_v11  ;;  %7763 = vmatprep.subr.bf16.mxu1 %v8506_v12  ;;  %v577_v11 = vld [vmem:[%s9044_s18 + $0xf8] sm:$0xff]  ;;  %v8546_v0 = vld [vmem:[%s11199_s28 + $0x4f0] sm:$0xff]  }
  0xc8   : > { %3775 = vmatmul.mubr.bf16.gmra.mrb[72].mxu1 %v6870_v13  ;;  %3685 = vmatprep.mubr.bf16.mxu0 %v6893_v14  ;;  %v589_v12 = vld [vmem:[%s9044_s18 + $0x158] sm:$0xff]  ;;  %v6826_v13 = vcombine.low %v553_v2, %v565_v3  ;;  %v8521_v14 = vld [vmem:[%s11199_s28 + $0x400] sm:$0xff]  }
  0xc9   : > { %3782 = vmatprep.mubr.bf16.mxu1 %v6895_v16  ;;  %7700 = vmatpush3.bf16.msra.mxu0 %v8505_v15  ;;  %v8523_v15 = vld [vmem:[%s11199_s28 + $0x480] sm:$0xff]   ;;  %v6849_v16 = vcombine.high %v576_v8, %v588_v9 }
  0xca   : > { %7764 = vmatpush3.bf16.msra.mxu1 %v8507_v17  ;;  %7701 = vmatprep.subr.bf16.mxu0 %v8508_v18  ;;  %v8524_v17 = vld [vmem:[%s11199_s28 + $0x448] sm:$0xff]   ;;  %v6851_v18 = vcombine.high %v577_v11, %v589_v12 }
  0xcb   : > { %7765 = vmatprep.subr.bf16.mxu1 %v8510_v20  ;;  %v8526_v20 = vld [vmem:[%s11199_s28 + $0x4c8] sm:$0xff]  }
  0xcd   : > { %7702 = vmatpush3.bf16.msra.mxu0 %v8509_v24  ;;  %v601_v24 = vld [vmem:[%s9044_s18 + $0x1b8] sm:$0xff] }
  0xce   : > { %7766 = vmatpush3.bf16.msra.mxu1 %v8511_v25  ;;  %7703 = vmatprep.subr.bf16.mxu0 %v8512_v26  ;;  %v613_v25 = vld [vmem:[%s9044_s18 + $0x218] sm:$0xff]  ;;  %v8528_v26 = vld [vmem:[%s11199_s28 + $0x450] sm:$0xff]  }
  0xcf   : > { %3686 = vmatmul.mubr.bf16.gmra.mrb[76].mxu0 %v6892_v27  ;;  %7767 = vmatprep.subr.bf16.mxu1 %v8514_v28  ;;  %v8530_v27 = vld [vmem:[%s11199_s28 + $0x4d0] sm:$0xff]   ;;  %v6848_v28 = vcombine.low %v576_v8, %v588_v9 }
  0xd0   : > { %3783 = vmatmul.mubr.bf16.gmra.mrb[76].mxu1 %v6894_v29  ;;  %3693 = vmatprep.mubr.bf16.mxu0 %v6917_v30  ;;  %v6850_v29 = vcombine.low %v577_v11, %v589_v12  ;;  %v6873_v30 = vcombine.high %v600_v22, %v612_v23  ;;  %v8547_v11 = vld [vmem:[%s11199_s28 + $0x4b0] sm:$0xff]   ;;  %v8548_v12 = vld [vmem:[%s11199_s28 + $0x478] sm:$0xff]  }
  0xd1   : > { %3790 = vmatprep.mubr.bf16.mxu1 %v6919_v31  ;;  %7704 = vmatpush3.bf16.msra.mxu0 %v8513_v32  ;;  %v6875_v31 = vcombine.high %v601_v24, %v613_v25  ;;  %v8529_v32 = vld [vmem:[%s11199_s28 + $0x410] sm:$0xff]  }
  0xd2   : > { %7768 = vmatpush3.bf16.msra.mxu1 %v8515_v33  ;;  %7705 = vmatprep.subr.bf16.mxu0 %v8516_v34  ;;  %v8531_v33 = vld [vmem:[%s11199_s28 + $0x490] sm:$0xff]   ;;  %v8532_v34 = vld [vmem:[%s11199_s28 + $0x458] sm:$0xff]  }
  0xd3   : > { %7769 = vmatprep.subr.bf16.mxu1 %v8518_v37  ;;  %v8534_v37 = vld [vmem:[%s11199_s28 + $0x4d8] sm:$0xff]  }
  0xd5   : > { %7706 = vmatpush3.bf16.msra.mxu0 %v8517_v40  ;;  %v8533_v40 = vld [vmem:[%s11199_s28 + $0x418] sm:$0xff]  }
  0xd6   : > { %7770 = vmatpush3.bf16.msra.mxu1 %v8519_v41  ;;  %7819 = vmatprep.subr.bf16.mxu0 %v8520_v42  ;;  %v8535_v41 = vld [vmem:[%s11199_s28 + $0x498] sm:$0xff]   ;;  %v8536_v42 = vld [vmem:[%s11199_s28 + $0x460] sm:$0xff]  }
  0xd7   : > { %3694 = vmatmul.mubr.bf16.gmra.mrb[80].mxu0 %v6916_v43  ;;  %7883 = vmatprep.subr.bf16.mxu1 %v8522_v44  ;;  %v6872_v43 = vcombine.low %v600_v22, %v612_v23  ;;  %v8538_v44 = vld [vmem:[%s11199_s28 + $0x4e0] sm:$0xff]   ;;  %v9591_v22 = vld [vmem:[%s9044_s18 + $0x3f8] sm:$0xff] }
  0xd8   : > { %3791 = vmatmul.mubr.bf16.gmra.mrb[80].mxu1 %v6918_v45  ;;  %3701 = vmatprep.mubr.bf16.mxu0 %v6941_v46  ;;  %v6874_v45 = vcombine.low %v601_v24, %v613_v25  ;;  %v6897_v46 = vcombine.high %v9488_v35, %v9491_v36  ;;  %v9594_v23 = vld [vmem:[%s9044_s18 + $0x458] sm:$0xff]  ;;  %v8552_v25 = vld [vmem:[%s11199_s28 + $0x540] sm:$0xff]  }
  0xd9   : > { %3798 = vmatprep.mubr.bf16.mxu1 %v6943_v47  ;;  %v8537_v47 = vld [vmem:[%s11199_s28 + $0x420] sm:$0xff]   ;;  %v8551_v24 = vld [vmem:[%s11199_s28 + $0x4b8] sm:$0xff]  }
  0xdf   : > { %3702 = vmatmul.mubr.bf16.gmra.mrb[84].mxu0 %v6940_v52  ;;  %v9531_v52 = vld [vmem:[%s9044_s18 + $0x330] sm:$0xff] }
  0xe0   : > { %3799 = vmatmul.mubr.bf16.gmra.mrb[84].mxu1 %v6942_v53  ;;  %3709 = vmatprep.mubr.bf16.mxu0 %v6965_v54  ;;  %v9534_v53 = vld [vmem:[%s9044_s18 + $0x390] sm:$0xff]  ;;  %v9537_v54 = vld [vmem:[%s9044_s18 + $0x338] sm:$0xff] }
  0xe1   : > { %3806 = vmatprep.mubr.bf16.mxu1 %v6967_v55  ;;  %v8541_v55 = vld [vmem:[%s11199_s28 + $0x428] sm:$0xff]  }
  0xe7   : > { %3710 = vmatmul.mubr.bf16.gmra.mrb[88].mxu0 %v6964_v60 }
  0xe8   : > { %3807 = vmatmul.mubr.bf16.gmra.mrb[88].mxu1 %v6966_v61  ;;  %3717 = vmatprep.mubr.bf16.mxu0 %v6989_v62  ;;  %v9554_v61 = vld [vmem:[%s11173_s2] ss:$0 sm:$0xff] }
  0xe9   : > { %3814 = vmatprep.mubr.bf16.mxu1 %v6991_v63  ;;  %v6896_v63 = vcombine.low %v9488_v35, %v9491_v36  ;;  %v6922_v36 = vcombine.low %v9537_v54, %v9543_v57 }
  0xef   : > { %3718 = vmatmul.mubr.bf16.gmra.mrb[92].mxu0 %v6988_v4  ;;  %v6898_v4 = vcombine.low %v9497_v38, %v9500_v39 }
  0xf0   : > { %3815 = vmatmul.mubr.bf16.gmra.mrb[92].mxu1 %v6990_v5  ;;  %3855 = vmatprep.mubr.bf16.mxu0 %v6825_v6  ;;  %v6921_v5 = vcombine.high %v9531_v52, %v9534_v53  ;;  %v8545_v6 = vld [vmem:[%s11199_s28 + $0x430] sm:$0xff]  }
  0xf1   : > { %3952 = vmatprep.mubr.bf16.mxu1 %v6827_v7 }
  0xf7   : > { %3856 = vmatmul.mubr.bf16.vlgmr.msra.gmra.mrb[96].mxu0 %v6824_v10  ;;  %v6923_v10 = vcombine.high %v9537_v54, %v9543_v57 }
  0xf8   : > { %3953 = vmatmul.mubr.bf16.vlgmr.msra.gmra.mrb[96].mxu1 %v6826_v13  ;;  %7820 = vmatpush3.bf16.msra.mxu0 %v8521_v14  ;;  %v8550_v13 = vld [vmem:[%s11199_s28 + $0x4f8] sm:$0xff]  }
  0xf9   : > { %7884 = vmatpush3.bf16.msra.mxu1 %v8523_v15  ;;  %3863 = vmatprep.mubr.bf16.mxu0 %v6849_v16 }
  0xfa   : > { %3960 = vmatprep.mubr.bf16.mxu1 %v6851_v18  ;;  %7821 = vmatprep.subr.bf16.mxu0 %v8524_v17  ;;  %v9581_v18 = vld [vmem:[%s9044_s18 + $0x3f0] sm:$0xff] }
  0xfb   : > { %7885 = vmatprep.subr.bf16.mxu1 %v8526_v20  ;;  %v8549_v20 = vld [vmem:[%s11199_s28 + $0x438] sm:$0xff]  }
  0xfc   : > { %7822 = vmatpush3.bf16.msra.mxu0 %v8525_v19  ;;  %v9584_v19 = vld [vmem:[%s9044_s18 + $0x450] sm:$0xff] }
  0xfd   : > { %7886 = vmatpush3.bf16.msra.mxu1 %v8527_v21  ;;  %7823 = vmatprep.subr.bf16.mxu0 %v8528_v26 }
  0xfe   : > { %7887 = vmatprep.subr.bf16.mxu1 %v8530_v27  ;;  %v8554_v27 = vld [vmem:[%s11199_s28 + $0x5c0] sm:$0xff]  }
  0xff   : > { %3864 = vmatmul.mubr.bf16.gmra.mrb[100].mxu0 %v6848_v28 }
 0x100   : > { %3961 = vmatmul.mubr.bf16.gmra.mrb[100].mxu1 %v6850_v29  ;;  %3871 = vmatprep.mubr.bf16.mxu0 %v6873_v30 }
 0x101   : > { %3968 = vmatprep.mubr.bf16.mxu1 %v6875_v31  ;;  %7824 = vmatpush3.bf16.msra.mxu0 %v8529_v32  ;;  %v6920_v32 = vcombine.low %v9531_v52, %v9534_v53  ;;  %v709_v52 = vld [vmem:[%s9044_s18 + $0x518] sm:$0xff] }
 0x102   : > { %7888 = vmatpush3.bf16.msra.mxu1 %v8531_v33  ;;  %7825 = vmatprep.subr.bf16.mxu0 %v8532_v34 }
 0x103   : > { %7889 = vmatprep.subr.bf16.mxu1 %v8534_v37  ;;  %v6945_v37 = vcombine.high %v9581_v18, %v9584_v19 }
 0x105   : > { %7826 = vmatpush3.bf16.msra.mxu0 %v8533_v40 }
 0x106   : > { %7890 = vmatpush3.bf16.msra.mxu1 %v8535_v41  ;;  %7827 = vmatprep.subr.bf16.mxu0 %v8536_v42  ;;  %v6947_v41 = vcombine.high %v9591_v22, %v9594_v23 }
 0x107   : > { %3872 = vmatmul.mubr.bf16.gmra.mrb[104].mxu0 %v6872_v43  ;;  %7891 = vmatprep.subr.bf16.mxu1 %v8538_v44 }
 0x108   : > { %3969 = vmatmul.mubr.bf16.gmra.mrb[104].mxu1 %v6874_v45  ;;  %3879 = vmatprep.mubr.bf16.mxu0 %v6897_v46  ;;  %v696_v46 = vld [vmem:[%s9044_s18 + $0x4b0] sm:$0xff] }
 0x109   : > { %3976 = vmatprep.mubr.bf16.mxu1 %v6899_v48  ;;  %7828 = vmatpush3.bf16.msra.mxu0 %v8537_v47  ;;  %v708_v47 = vld [vmem:[%s9044_s18 + $0x510] sm:$0xff] }
 0x10a   : > { %v7323_v56 = vpop.f32.mrb[0].mxu0  ;;  %7892 = vmatpush3.bf16.msra.mxu1 %v8539_v49  ;;  %7829 = vmatprep.subr.bf16.mxu0 %v8540_v50  ;;  %v697_v49 = vld [vmem:[%s9044_s18 + $0x4b8] sm:$0xff] }
 0x10b   : > { %v7387_v60 = vpop.f32.mrb[0].mxu1  ;;  %v7324_v62 = vpop.f32.mrb[1].mxu0  ;;  %7893 = vmatprep.subr.bf16.mxu1 %v8542_v51 }
 0x10c   : > { %v7325_v1 = vadd.f32 %v7324_v62, %v7323_v56  ;;  %v7388_v2 = vpop.f32.mrb[1].mxu1  ;;  %v7326_v3 = vpop.f32.mrb[2].mxu0  ;;  %v6944_v56 = vcombine.low %v9581_v18, %v9584_v19  ;;  %v6969_v62 = vcombine.high %v696_v46, %v708_v47 }
 0x10d   : > { %v7389_v7 = vadd.f32 %v7388_v2, %v7387_v60  ;;  %v7390_v8 = vpop.f32.mrb[2].mxu1  ;;  %v7327_v9 = vpop.f32.mrb[3].mxu0  ;;  %7830 = vmatpush3.bf16.msra.mxu0 %v8541_v55  ;;  %v6946_v60 = vcombine.low %v9591_v22, %v9594_v23  ;;  %v6971_v2 = vcombine.high %v697_v49, %v709_v52 }
 0x10e   : > { %v3276_v14 = vadd.f32 %v7325_v1, %v9554_v61  ;;  %v7328_v15 = vadd.f32 %v7327_v9, %v7326_v3  ;;  %v7391_v16 = vpop.f32.mrb[3].mxu1  ;;  %7894 = vmatpush3.bf16.msra.mxu1 %v8543_v58  ;;  %7831 = vmatprep.subr.bf16.mxu0 %v8544_v59 }
 0x10f   : > { %v7392_v17 = vadd.f32 %v7391_v16, %v7390_v8  ;;  %3880 = vmatmul.mubr.bf16.gmra.mrb[108].mxu0 %v6896_v63  ;;  %7895 = vmatprep.subr.bf16.mxu1 %v8546_v0  ;;  %v732_v8 = vld [vmem:[%s9044_s18 + $0x5d0] sm:$0xff] }
 0x110   : > { %v3279_v21 = vadd.f32 %v7328_v15, %v9554_v61  ;;  %3977 = vmatmul.mubr.bf16.gmra.mrb[108].mxu1 %v6898_v4  ;;  %3887 = vmatprep.mubr.bf16.mxu0 %v6921_v5  ;;  %v9602_v26 = vadd.f32 %v7389_v7, %v3276_v14  ;;  %v720_v7 = vld [vmem:[%s9044_s18 + $0x570] sm:$0xff] }
 0x111   : > { %3984 = vmatprep.mubr.bf16.mxu1 %v6923_v10  ;;  %7832 = vmatpush3.bf16.msra.mxu0 %v8545_v6  ;;  %v721_v10 = vld [vmem:[%s9044_s18 + $0x578] sm:$0xff]  ;;  %v6993_v22 = vcombine.high %v720_v7, %v732_v8 }
 0x112   : > { %v7329_v28 = vpop.f32.mrb[4].mxu0  ;;  %7896 = vmatpush3.bf16.msra.mxu1 %v8547_v11  ;;  %7833 = vmatprep.subr.bf16.mxu0 %v8548_v12  ;;  %v9607_v29 = vadd.f32 %v7392_v17, %v3279_v21  ;;  %v6968_v17 = vcombine.low %v696_v46, %v708_v47  ;;  %v6970_v21 = vcombine.low %v697_v49, %v709_v52 }
 0x113   : > { %v7393_v30 = vpop.f32.mrb[4].mxu1  ;;  %v7330_v31 = vpop.f32.mrb[5].mxu0  ;;  %7897 = vmatprep.subr.bf16.mxu1 %v8550_v13  ;;  %v733_v13 = vld [vmem:[%s9044_s18 + $0x5d8] sm:$0xff] }
 0x114   : > { %v7331_v33 = vadd.f32 %v7330_v31, %v7329_v28  ;;  %v7394_v34 = vpop.f32.mrb[5].mxu1  ;;  %v7332_v35 = vpop.f32.mrb[6].mxu0  ;;  %v6994_v47 = vcombine.low %v721_v10, %v733_v13 }
 0x115   : > { %v7395_v38 = vadd.f32 %v7394_v34, %v7393_v30  ;;  %v7396_v39 = vpop.f32.mrb[6].mxu1  ;;  %v7333_v40 = vpop.f32.mrb[7].mxu0  ;;  %7834 = vmatpush3.bf16.msra.mxu0 %v8549_v20  ;;  %v566_v34 = vld [vmem:[%s9044_s18 + $0xa0] sm:$0xff] }
 0x116   : > { %v3284_v42 = vadd.f32 %v7331_v33, %v9554_v61  ;;  %v7334_v43 = vadd.f32 %v7333_v40, %v7332_v35  ;;  %v7397_v44 = vpop.f32.mrb[7].mxu1  ;;  %7898 = vmatpush3.bf16.msra.mxu1 %v8551_v24  ;;  %7947 = vmatprep.subr.bf16.mxu0 %v8552_v25  ;;  %v554_v33 = vld [vmem:[%s9044_s18 + $0x40] sm:$0xff] }
 0x117   : > { %v7398_v45 = vadd.f32 %v7397_v44, %v7396_v39  ;;  %3888 = vmatmul.mubr.bf16.gmra.mrb[112].mxu0 %v6920_v32  ;;  %8011 = vmatprep.subr.bf16.mxu1 %v8554_v27  ;;  %v6995_v27 = vcombine.high %v721_v10, %v733_v13  ;;  %v567_v39 = vld [vmem:[%s9044_s18 + $0xa8] sm:$0xff] }
 0x118   : > { %v3287_v48 = vadd.f32 %v7334_v43, %v9554_v61  ;;  %3985 = vmatmul.mubr.bf16.gmra.mrb[112].mxu1 %v6922_v36  ;;  %3895 = vmatprep.mubr.bf16.mxu0 %v6945_v37  ;;  %v9622_v50 = vadd.f32 %v7395_v38, %v3284_v42  ;;  %v555_v36 = vld [vmem:[%s9044_s18 + $0x48] sm:$0xff]  ;;  %v6992_v43 = vcombine.low %v720_v7, %v732_v8 }
 0x119   : > { %3992 = vmatprep.mubr.bf16.mxu1 %v6947_v41  ;;  %v6830_v10 = vcombine.low %v555_v36, %v567_v39 }
 0x11a   : > { %v7335_v51 = vpop.f32.mrb[8].mxu0  ;;  %v9625_v53 = vadd.f32 %v7398_v45, %v3287_v48  ;;  %v6829_v48 = vcombine.high %v554_v33, %v566_v34 }
 0x11b   : > { %v7399_v54 = vpop.f32.mrb[8].mxu1  ;;  %v7336_v55 = vpop.f32.mrb[9].mxu0 }
 0x11c   : > { %v7337_v57 = vadd.f32 %v7336_v55, %v7335_v51  ;;  %v7400_v58 = vpop.f32.mrb[9].mxu1  ;;  %v7338_v59 = vpop.f32.mrb[10].mxu0 }
 0x11d   : > { %v7401_v63 = vadd.f32 %v7400_v58, %v7399_v54  ;;  %v7402_v0 = vpop.f32.mrb[10].mxu1  ;;  %v7339_v1 = vpop.f32.mrb[11].mxu0  ;;  %v6831_v54 = vcombine.high %v555_v36, %v567_v39  ;;  %v9705_v36 = vld [vmem:[%s9044_s18 + $0x1c8] sm:$0xff]  ;;  %v8562_v39 = vld [vmem:[%s11199_s28 + $0x5d0] sm:$0xff]  }
 0x11e   : > { %v3292_v3 = vadd.f32 %v7337_v57, %v9554_v61  ;;  %v7340_v4 = vadd.f32 %v7339_v1, %v7338_v59  ;;  %v7403_v5 = vpop.f32.mrb[11].mxu1 }
 0x11f   : > { %v7404_v6 = vadd.f32 %v7403_v5, %v7402_v0  ;;  %3896 = vmatmul.mubr.bf16.gmra.mrb[116].mxu0 %v6944_v56  ;;  %v9659_v0 = vld [vmem:[%s9044_s18 + $0x160] sm:$0xff]  ;;  %v9664_v5 = vld [vmem:[%s9044_s18 + $0x108] sm:$0xff] }
 0x120   : > { %v3295_v9 = vadd.f32 %v7340_v4, %v9554_v61  ;;  %3993 = vmatmul.mubr.bf16.gmra.mrb[116].mxu1 %v6946_v60  ;;  %3903 = vmatprep.mubr.bf16.mxu0 %v6969_v62  ;;  %v9636_v11 = vadd.f32 %v7401_v63, %v3292_v3  ;;  %v9656_v63 = vld [vmem:[%s9044_s18 + $0x100] sm:$0xff]  ;;  %v6828_v4 = vcombine.low %v554_v33, %v566_v34  ;;  %v8560_v34 = vld [vmem:[%s11199_s28 + $0x550] sm:$0xff]  }
 0x121   : > { %4000 = vmatprep.mubr.bf16.mxu1 %v6971_v2  ;;  %v9699_v33 = vld [vmem:[%s9044_s18 + $0x220] sm:$0xff] }
 0x122   : > { %v7341_v12 = vpop.f32.mrb[12].mxu0  ;;  %v9639_v14 = vadd.f32 %v7404_v6, %v3295_v9  ;;  %v9667_v6 = vld [vmem:[%s9044_s18 + $0x168] sm:$0xff] }
 0x123   : > { %v7405_v15 = vpop.f32.mrb[12].mxu1  ;;  %v7342_v16 = vpop.f32.mrb[13].mxu0 }
 0x124   : > { %v7343_v18 = vadd.f32 %v7342_v16, %v7341_v12  ;;  %v7406_v19 = vpop.f32.mrb[13].mxu1  ;;  %v7344_v20 = vpop.f32.mrb[14].mxu0  ;;  %v8553_v12 = vld [vmem:[%s11199_s28 + $0x500] sm:$0xff]  }
 0x125   : > { %v7407_v23 = vadd.f32 %v7406_v19, %v7405_v15  ;;  %v7408_v24 = vpop.f32.mrb[14].mxu1  ;;  %v7345_v25 = vpop.f32.mrb[15].mxu0 }
 0x126   : > { %v3300_v28 = vadd.f32 %v7343_v18, %v9554_v61  ;;  %v7346_v30 = vadd.f32 %v7345_v25, %v7344_v20  ;;  %v7409_v31 = vpop.f32.mrb[15].mxu1  ;;  %v6853_v18 = vcombine.high %v9656_v63, %v9659_v0  ;;  %v8558_v25 = vld [vmem:[%s11199_s28 + $0x5c8] sm:$0xff]  }
 0x127   : > { %v7410_v32 = vadd.f32 %v7409_v31, %v7408_v24  ;;  %3904 = vmatmul.mubr.bf16.gmra.mrb[120].mxu0 %v6968_v17  ;;  %v8555_v17 = vld [vmem:[%s11199_s28 + $0x580] sm:$0xff]  }
 0x128   : > { %v3303_v35 = vadd.f32 %v7346_v30, %v9554_v61  ;;  %4001 = vmatmul.mubr.bf16.gmra.mrb[120].mxu1 %v6970_v21  ;;  %3911 = vmatprep.mubr.bf16.mxu0 %v6993_v22  ;;  %v9646_v37 = vadd.f32 %v7407_v23, %v3300_v28  ;;  %v6855_v22 = vcombine.high %v9664_v5, %v9667_v6  ;;  %v8556_v23 = vld [vmem:[%s11199_s28 + $0x548] sm:$0xff]  }
 0x129   : > { %4008 = vmatprep.mubr.bf16.mxu1 %v6995_v27  ;;  %v8557_v28 = vld [vmem:[%s11199_s28 + $0x508] sm:$0xff]  }
 0x12a   : > { %v7347_v38 = vpop.f32.mrb[16].mxu0  ;;  %v9649_v40 = vadd.f32 %v7410_v32, %v3303_v35  ;;  %v8559_v30 = vld [vmem:[%s11199_s28 + $0x588] sm:$0xff]   ;;  %v9696_v32 = vld [vmem:[%s9044_s18 + $0x1c0] sm:$0xff] }
 0x12b   : > { %v7411_v41 = vpop.f32.mrb[16].mxu1  ;;  %v7348_v42 = vpop.f32.mrb[17].mxu0 }
 0x12c   : > { %v7349_v44 = vadd.f32 %v7348_v42, %v7347_v38  ;;  %v7412_v45 = vpop.f32.mrb[17].mxu1  ;;  %v7350_v46 = vpop.f32.mrb[18].mxu0  ;;  %v9708_v38 = vld [vmem:[%s9044_s18 + $0x228] sm:$0xff] }
 0x12d   : > { %v7413_v49 = vadd.f32 %v7412_v45, %v7411_v41  ;;  %v7414_v51 = vpop.f32.mrb[18].mxu1  ;;  %v7351_v52 = vpop.f32.mrb[19].mxu0 }
 0x12e   : > { %v3308_v55 = vadd.f32 %v7349_v44, %v9554_v61  ;;  %v7352_v56 = vadd.f32 %v7351_v52, %v7350_v46  ;;  %v7415_v57 = vpop.f32.mrb[19].mxu1  ;;  %v6852_v44 = vcombine.low %v9656_v63, %v9659_v0  ;;  %v8564_v63 = vld [vmem:[%s11199_s28 + $0x558] sm:$0xff]  }
 0x12f   : > { %v7416_v58 = vadd.f32 %v7415_v57, %v7414_v51  ;;  %3912 = vmatmul.mubr.bf16.gmra.mrb[124].mxu0 %v6992_v43 }
 0x130   : > { %v3311_v59 = vadd.f32 %v7352_v56, %v9554_v61  ;;  %4009 = vmatmul.mubr.bf16.gmra.mrb[124].mxu1 %v6994_v47  ;;  %4049 = vmatprep.mubr.bf16.mxu0 %v6829_v48  ;;  %v9653_v60 = vadd.f32 %v7413_v49, %v3308_v55  ;;  %v6854_v48 = vcombine.low %v9664_v5, %v9667_v6  ;;  %v8561_v56 = vld [vmem:[%s11199_s28 + $0x510] sm:$0xff]   ;;  %v9740_v5 = vld [vmem:[%s9044_s18 + $0x280] sm:$0xff] }
 0x131   : > { %4146 = vmatprep.mubr.bf16.mxu1 %v6831_v54  ;;  %v6877_v49 = vcombine.high %v9696_v32, %v9699_v33  ;;  %v6879_v55 = vcombine.high %v9705_v36, %v9708_v38  ;;  %v9743_v6 = vld [vmem:[%s9044_s18 + $0x2e0] sm:$0xff] }
 0x132   : > { %v7353_v62 = vpop.f32.mrb[20].mxu0  ;;  %v9661_v1 = vadd.f32 %v7416_v58, %v3311_v59 }
 0x133   : > { %v7417_v2 = vpop.f32.mrb[20].mxu1  ;;  %v7354_v3 = vpop.f32.mrb[21].mxu0 }
 0x134   : > { %v7355_v7 = vadd.f32 %v7354_v3, %v7353_v62  ;;  %v7418_v8 = vpop.f32.mrb[21].mxu1  ;;  %v7356_v9 = vpop.f32.mrb[22].mxu0  ;;  %v8563_v62 = vld [vmem:[%s11199_s28 + $0x590] sm:$0xff]  }
 0x135   : > { %v7419_v13 = vadd.f32 %v7418_v8, %v7417_v2  ;;  %v7420_v15 = vpop.f32.mrb[22].mxu1  ;;  %v7357_v16 = vpop.f32.mrb[23].mxu0  ;;  %v8566_v2 = vld [vmem:[%s11199_s28 + $0x5d8] sm:$0xff]  }
 0x136   : > { %v3316_v19 = vadd.f32 %v7355_v7, %v9554_v61  ;;  %v7358_v20 = vadd.f32 %v7357_v16, %v7356_v9  ;;  %v7421_v21 = vpop.f32.mrb[23].mxu1  ;;  %v9746_v7 = vld [vmem:[%s9044_s18 + $0x288] sm:$0xff]  ;;  %v8565_v8 = vld [vmem:[%s11199_s28 + $0x518] sm:$0xff]  }
 0x137   : > { %v7422_v24 = vadd.f32 %v7421_v21, %v7420_v15  ;;  %4050 = vmatmul.mubr.bf16.vlgmr.msra.gmra.mrb[128].mxu0 %v6828_v4  ;;  %v8568_v15 = vld [vmem:[%s11199_s28 + $0x560] sm:$0xff]  }
 0x138   : > { %v3319_v27 = vadd.f32 %v7358_v20, %v9554_v61  ;;  %4147 = vmatmul.mubr.bf16.vlgmr.msra.gmra.mrb[128].mxu1 %v6830_v10  ;;  %7948 = vmatpush3.bf16.msra.mxu0 %v8553_v12  ;;  %v9693_v31 = vadd.f32 %v7419_v13, %v3316_v19  ;;  %v9754_v12 = vld [vmem:[%s9044_s18 + $0x2e8] sm:$0xff]  ;;  %v8567_v13 = vld [vmem:[%s11199_s28 + $0x598] sm:$0xff]   ;;  %v8570_v19 = vld [vmem:[%s11199_s28 + $0x5e0] sm:$0xff]  }
 0x139   : > { %8012 = vmatpush3.bf16.msra.mxu1 %v8555_v17  ;;  %4057 = vmatprep.mubr.bf16.mxu0 %v6853_v18  ;;  %v6876_v18 = vcombine.low %v9696_v32, %v9699_v33  ;;  %v8569_v32 = vld [vmem:[%s11199_s28 + $0x520] sm:$0xff]  }
 0x13a   : > { %v7359_v35 = vpop.f32.mrb[24].mxu0  ;;  %4154 = vmatprep.mubr.bf16.mxu1 %v6855_v22  ;;  %7949 = vmatprep.subr.bf16.mxu0 %v8556_v23  ;;  %v9713_v41 = vadd.f32 %v7422_v24, %v3319_v27  ;;  %v6878_v23 = vcombine.low %v9705_v36, %v9708_v38  ;;  %v6901_v24 = vcombine.high %v9740_v5, %v9743_v6  ;;  %v8571_v36 = vld [vmem:[%s11199_s28 + $0x5a0] sm:$0xff]   ;;  %v8572_v38 = vld [vmem:[%s11199_s28 + $0x568] sm:$0xff]  }
 0x13b   : > { %v7423_v42 = vpop.f32.mrb[24].mxu1  ;;  %v7360_v43 = vpop.f32.mrb[25].mxu0  ;;  %8013 = vmatprep.subr.bf16.mxu1 %v8558_v25 }
 0x13c   : > { %v7361_v45 = vadd.f32 %v7360_v43, %v7359_v35  ;;  %v7424_v46 = vpop.f32.mrb[25].mxu1  ;;  %v7362_v47 = vpop.f32.mrb[26].mxu0  ;;  %7950 = vmatpush3.bf16.msra.mxu0 %v8557_v28 }
 0x13d   : > { %v7425_v51 = vadd.f32 %v7424_v46, %v7423_v42  ;;  %v7426_v52 = vpop.f32.mrb[26].mxu1  ;;  %v7363_v54 = vpop.f32.mrb[27].mxu0  ;;  %8014 = vmatpush3.bf16.msra.mxu1 %v8559_v30  ;;  %7951 = vmatprep.subr.bf16.mxu0 %v8560_v34  ;;  %v6903_v30 = vcombine.high %v9746_v7, %v9754_v12  ;;  %v8574_v42 = vld [vmem:[%s11199_s28 + $0x5e8] sm:$0xff]   ;;  %v9793_v46 = vld [vmem:[%s9044_s18 + $0x3a0] sm:$0xff] }
 0x13e   : > { %v3324_v57 = vadd.f32 %v7361_v45, %v9554_v61  ;;  %v7364_v58 = vadd.f32 %v7363_v54, %v7362_v47  ;;  %v7427_v59 = vpop.f32.mrb[27].mxu1  ;;  %8015 = vmatprep.subr.bf16.mxu1 %v8562_v39  ;;  %v9790_v45 = vld [vmem:[%s9044_s18 + $0x340] sm:$0xff]  ;;  %v9796_v47 = vld [vmem:[%s9044_s18 + $0x348] sm:$0xff]  ;;  %v8576_v54 = vld [vmem:[%s11199_s28 + $0x570] sm:$0xff]  }
 0x13f   : > { %v7428_v0 = vadd.f32 %v7427_v59, %v7426_v52  ;;  %4058 = vmatmul.mubr.bf16.gmra.mrb[132].mxu0 %v6852_v44  ;;  %v9804_v52 = vld [vmem:[%s9044_s18 + $0x3a8] sm:$0xff] }
 0x140   : > { %v9736_v3 = vadd.f32 %v7425_v51, %v3324_v57  ;;  %v3327_v4 = vadd.f32 %v7364_v58, %v9554_v61  ;;  %4155 = vmatmul.mubr.bf16.gmra.mrb[132].mxu1 %v6854_v48  ;;  %4065 = vmatprep.mubr.bf16.mxu0 %v6877_v49  ;;  %v8573_v48 = vld [vmem:[%s11199_s28 + $0x528] sm:$0xff]   ;;  %v6900_v57 = vcombine.low %v9740_v5, %v9743_v6  ;;  %v8578_v58 = vld [vmem:[%s11199_s28 + $0x5f0] sm:$0xff]  }
 0x141   : > { %4162 = vmatprep.mubr.bf16.mxu1 %v6879_v55  ;;  %7952 = vmatpush3.bf16.msra.mxu0 %v8561_v56  ;;  %v6927_v5 = vcombine.high %v9796_v47, %v9804_v52  ;;  %v8577_v6 = vld [vmem:[%s11199_s28 + $0x530] sm:$0xff]  }
 0x142   : > { %v9751_v9 = vadd.f32 %v7428_v0, %v3327_v4  ;;  %v7365_v10 = vpop.f32.mrb[28].mxu0  ;;  %8016 = vmatpush3.bf16.msra.mxu1 %v8563_v62  ;;  %7953 = vmatprep.subr.bf16.mxu0 %v8564_v63  ;;  %v6902_v0 = vcombine.low %v9746_v7, %v9754_v12  ;;  %v8579_v12 = vld [vmem:[%s11199_s28 + $0x5b0] sm:$0xff]  }
 0x143   : > { %v7429_v16 = vpop.f32.mrb[28].mxu1  ;;  %v7366_v17 = vpop.f32.mrb[29].mxu0  ;;  %8017 = vmatprep.subr.bf16.mxu1 %v8566_v2  ;;  %v6925_v2 = vcombine.high %v9790_v45, %v9793_v46 }
 0x144   : > { %v7367_v20 = vadd.f32 %v7366_v17, %v7365_v10  ;;  %v7430_v21 = vpop.f32.mrb[29].mxu1  ;;  %v7368_v22 = vpop.f32.mrb[30].mxu0 }
 0x145   : > { %v7431_v25 = vadd.f32 %v7430_v21, %v7429_v16  ;;  %v7432_v27 = vpop.f32.mrb[30].mxu1  ;;  %v7369_v28 = vpop.f32.mrb[31].mxu0  ;;  %7954 = vmatpush3.bf16.msra.mxu0 %v8565_v8  ;;  %v8580_v16 = vld [vmem:[%s11199_s28 + $0x578] sm:$0xff]   ;;  %v686_v21 = vld [vmem:[%s9044_s18 + $0x460] sm:$0xff] }
 0x146   : > { %v3332_v33 = vadd.f32 %v7367_v20, %v9554_v61  ;;  %v7370_v34 = vadd.f32 %v7369_v28, %v7368_v22  ;;  %v7433_v35 = vpop.f32.mrb[31].mxu1  ;;  %8018 = vmatpush3.bf16.msra.mxu1 %v8567_v13  ;;  %7955 = vmatprep.subr.bf16.mxu0 %v8568_v15  ;;  %v674_v20 = vld [vmem:[%s9044_s18 + $0x400] sm:$0xff]  ;;  %v8581_v22 = vld [vmem:[%s11199_s28 + $0x538] sm:$0xff]  }
 0x147   : > { %v7434_v39 = vadd.f32 %v7433_v35, %v7432_v27  ;;  %4066 = vmatmul.mubr.bf16.gmra.mrb[136].mxu0 %v6876_v18  ;;  %8019 = vmatprep.subr.bf16.mxu1 %v8570_v19  ;;  %v687_v27 = vld [vmem:[%s9044_s18 + $0x468] sm:$0xff] }
 0x148   : > { %v9786_v43 = vadd.f32 %v7431_v25, %v3332_v33  ;;  %v3335_v44 = vadd.f32 %v7370_v34, %v9554_v61  ;;  %4163 = vmatmul.mubr.bf16.gmra.mrb[136].mxu1 %v6878_v23  ;;  %4073 = vmatprep.mubr.bf16.mxu0 %v6901_v24  ;;  %v8575_v61 = vld [vmem:[%s11199_s28 + $0x5a8] sm:$0xff]  }
 0x149   : > { %4170 = vmatprep.mubr.bf16.mxu1 %v6903_v30  ;;  %7956 = vmatpush3.bf16.msra.mxu0 %v8569_v32  ;;  %v675_v25 = vld [vmem:[%s9044_s18 + $0x408] sm:$0xff]  ;;  %v6924_v32 = vcombine.low %v9790_v45, %v9793_v46 }
 0x14a   : > { %v9801_v49 = vadd.f32 %v7434_v39, %v3335_v44  ;;  %v7451_v51 = vpop.f32.mrb[32].mxu0  ;;  %8020 = vmatpush3.bf16.msra.mxu1 %v8571_v36  ;;  %7957 = vmatprep.subr.bf16.mxu0 %v8572_v38  ;;  %v6926_v36 = vcombine.low %v9796_v47, %v9804_v52  ;;  %v6949_v38 = vcombine.high %v674_v20, %v686_v21  ;;  %v698_v52 = vld [vmem:[%s9044_s18 + $0x4c0] sm:$0xff] }
 0x14b   : > { %v7515_v55 = vpop.f32.mrb[32].mxu1  ;;  %v7452_v56 = vpop.f32.mrb[33].mxu0  ;;  %8021 = vmatprep.subr.bf16.mxu1 %v8574_v42 }
 0x14c   : > { %v7453_v59 = vadd.f32 %v7452_v56, %v7451_v51  ;;  %v7516_v62 = vpop.f32.mrb[33].mxu1  ;;  %v7454_v63 = vpop.f32.mrb[34].mxu0 }
 0x14d   : > { %v7517_v4 = vadd.f32 %v7516_v62, %v7515_v55  ;;  %v7518_v8 = vpop.f32.mrb[34].mxu1  ;;  %v7455_v10 = vpop.f32.mrb[35].mxu0  ;;  %7958 = vmatpush3.bf16.msra.mxu0 %v8573_v48  ;;  %v6951_v48 = vcombine.high %v675_v25, %v687_v27  ;;  %v710_v55 = vld [vmem:[%s9044_s18 + $0x520] sm:$0xff] }
 0x14e   : > { %v3470_v13 = vadd.f32 %v7453_v59, %v9602_v26  ;;  %v7456_v15 = vadd.f32 %v7455_v10, %v7454_v63  ;;  %v7519_v7 = vpop.f32.mrb[35].mxu1  ;;  %8022 = vmatpush3.bf16.msra.mxu1 %v8575_v61  ;;  %7959 = vmatprep.subr.bf16.mxu0 %v8576_v54  ;;  %v8582_v26 = vld [vmem:[%s11199_s28 + $0x5f8] sm:$0xff]   ;;  %v6948_v63 = vcombine.low %v674_v20, %v686_v21  ;;  %v734_v20 = vld [vmem:[%s9044_s18 + $0x5e0] sm:$0xff] }
 0x14f   : > { %v7520_v17 = vadd.f32 %v7519_v7, %v7518_v8  ;;  %4074 = vmatmul.mubr.bf16.gmra.mrb[140].mxu0 %v6900_v57  ;;  %8023 = vmatprep.subr.bf16.mxu1 %v8578_v58  ;;  %v699_v58 = vld [vmem:[%s9044_s18 + $0x4c8] sm:$0xff]  ;;  %v6950_v8 = vcombine.low %v675_v25, %v687_v27  ;;  %v6973_v10 = vcombine.high %v698_v52, %v710_v55 }
 0x150   : > { %v9836_v18 = vadd.f32 %v7517_v4, %v3470_v13  ;;  %v3473_v19 = vadd.f32 %v7456_v15, %v9607_v29  ;;  %4171 = vmatmul.mubr.bf16.gmra.mrb[140].mxu1 %v6902_v0  ;;  %4081 = vmatprep.mubr.bf16.mxu0 %v6925_v2  ;;  %v8583_v29 = vld [vmem:[%s11199_s28 + $0x5b8] sm:$0xff]   ;;  %v735_v25 = vld [vmem:[%s9044_s18 + $0x5e8] sm:$0xff] }
 0x151   : > { %4178 = vmatprep.mubr.bf16.mxu1 %v6927_v5  ;;  %7960 = vmatpush3.bf16.msra.mxu0 %v8577_v6 }
 0x152   : > { %v9844_v23 = vadd.f32 %v7520_v17, %v3473_v19  ;;  %v7457_v24 = vpop.f32.mrb[36].mxu0  ;;  %8024 = vmatpush3.bf16.msra.mxu1 %v8579_v12  ;;  %7961 = vmatprep.subr.bf16.mxu0 %v8580_v16  ;;  %v722_v19 = vld [vmem:[%s9044_s18 + $0x580] sm:$0xff] }
 0x153   : > { %v7521_v28 = vpop.f32.mrb[36].mxu1  ;;  %v7458_v30 = vpop.f32.mrb[37].mxu0  ;;  %8025 = vmatprep.subr.bf16.mxu1 %v8582_v26 }
 0x154   : > { %v7459_v33 = vadd.f32 %v7458_v30, %v7457_v24  ;;  %v7522_v34 = vpop.f32.mrb[37].mxu1  ;;  %v7460_v35 = vpop.f32.mrb[38].mxu0  ;;  %v723_v24 = vld [vmem:[%s9044_s18 + $0x588] sm:$0xff] }
 0x155   : > { %v7523_v39 = vadd.f32 %v7522_v34, %v7521_v28  ;;  %v7524_v42 = vpop.f32.mrb[38].mxu1  ;;  %v7461_v44 = vpop.f32.mrb[39].mxu0  ;;  %7962 = vmatpush3.bf16.msra.mxu0 %v8581_v22  ;;  %v6997_v34 = vcombine.high %v722_v19, %v734_v20 }
 0x156   : > { %v3478_v51 = vadd.f32 %v7459_v33, %v9622_v50  ;;  %v7462_v45 = vadd.f32 %v7461_v44, %v7460_v35  ;;  %v7525_v46 = vpop.f32.mrb[39].mxu1  ;;  %8026 = vmatpush3.bf16.msra.mxu1 %v8583_v29  ;;  %v711_v50 = vld [vmem:[%s9044_s18 + $0x528] sm:$0xff]  ;;  %v6972_v29 = vcombine.low %v698_v52, %v710_v55  ;;  %v557_v55 = vld [vmem:[%s9044_s18 + $0x58] sm:$0xff] }
 0x157   : > { %v7526_v61 = vadd.f32 %v7525_v46, %v7524_v42  ;;  %4082 = vmatmul.mubr.bf16.gmra.mrb[144].mxu0 %v6924_v32  ;;  %v6975_v13 = vcombine.high %v699_v58, %v711_v50  ;;  %v6974_v33 = vcombine.low %v699_v58, %v711_v50  ;;  %v556_v46 = vld [vmem:[%s9044_s18 + $0x50] sm:$0xff]  ;;  %v6996_v50 = vcombine.low %v722_v19, %v734_v20  ;;  %v581_v20 = vld [vmem:[%s9044_s18 + $0x118] sm:$0xff] }
 0x158   : > { %v9856_v54 = vadd.f32 %v7523_v39, %v3478_v51  ;;  %v3481_v47 = vadd.f32 %v7462_v45, %v9625_v53  ;;  %4179 = vmatmul.mubr.bf16.gmra.mrb[144].mxu1 %v6926_v36  ;;  %4089 = vmatprep.mubr.bf16.mxu0 %v6949_v38  ;;  %v6999_v38 = vcombine.high %v723_v24, %v735_v25 }
 0x159   : > { %4186 = vmatprep.mubr.bf16.mxu1 %v6951_v48 }
 0x15a   : > { %v9861_v56 = vadd.f32 %v7526_v61, %v3481_v47  ;;  %v7463_v57 = vpop.f32.mrb[40].mxu0  ;;  %v568_v61 = vld [vmem:[%s9044_s18 + $0xb0] sm:$0xff] }
 0x15b   : > { %v7527_v59 = vpop.f32.mrb[40].mxu1  ;;  %v7464_v62 = vpop.f32.mrb[41].mxu0 }
 0x15c   : > { %v7465_v0 = vadd.f32 %v7464_v62, %v7463_v57  ;;  %v7528_v2 = vpop.f32.mrb[41].mxu1  ;;  %v7466_v4 = vpop.f32.mrb[42].mxu0  ;;  %v569_v57 = vld [vmem:[%s9044_s18 + $0xb8] sm:$0xff] }
 0x15d   : > { %v7529_v53 = vadd.f32 %v7528_v2, %v7527_v59  ;;  %v7530_v5 = vpop.f32.mrb[42].mxu1  ;;  %v7467_v6 = vpop.f32.mrb[43].mxu0  ;;  %v6833_v2 = vcombine.high %v556_v46, %v568_v61 }
 0x15e   : > { %v3486_v15 = vadd.f32 %v7465_v0, %v9636_v11  ;;  %v7468_v7 = vadd.f32 %v7467_v6, %v7466_v4  ;;  %v7531_v12 = vpop.f32.mrb[43].mxu1  ;;  %v6998_v0 = vcombine.low %v723_v24, %v735_v25  ;;  %v6832_v25 = vcombine.low %v556_v46, %v568_v61  ;;  %v605_v61 = vld [vmem:[%s9044_s18 + $0x1d8] sm:$0xff] }
 0x15f   : > { %v7532_v16 = vadd.f32 %v7531_v12, %v7530_v5  ;;  %4090 = vmatmul.mubr.bf16.gmra.mrb[148].mxu0 %v6948_v63  ;;  %v580_v12 = vld [vmem:[%s9044_s18 + $0x110] sm:$0xff] }
 0x160   : > { %v9866_v17 = vadd.f32 %v7529_v53, %v3486_v15  ;;  %v3489_v26 = vadd.f32 %v7468_v7, %v9639_v14  ;;  %4187 = vmatmul.mubr.bf16.gmra.mrb[148].mxu1 %v6950_v8  ;;  %4097 = vmatprep.mubr.bf16.mxu0 %v6973_v10  ;;  %v6835_v10 = vcombine.high %v557_v55, %v569_v57 }
 0x161   : > { %4194 = vmatprep.mubr.bf16.mxu1 %v6975_v13 }
 0x162   : > { %v9871_v21 = vadd.f32 %v7532_v16, %v3489_v26  ;;  %v7469_v22 = vpop.f32.mrb[44].mxu0  ;;  %v592_v16 = vld [vmem:[%s9044_s18 + $0x170] sm:$0xff] }
 0x163   : > { %v7533_v27 = vpop.f32.mrb[44].mxu1  ;;  %v7470_v11 = vpop.f32.mrb[45].mxu0 }
 0x164   : > { %v7471_v28 = vadd.f32 %v7470_v11, %v7469_v22  ;;  %v7534_v30 = vpop.f32.mrb[45].mxu1  ;;  %v7472_v32 = vpop.f32.mrb[46].mxu0  ;;  %v593_v22 = vld [vmem:[%s9044_s18 + $0x178] sm:$0xff] }
 0x165   : > { %v7535_v14 = vadd.f32 %v7534_v30, %v7533_v27  ;;  %v7536_v35 = vpop.f32.mrb[46].mxu1  ;;  %v7473_v36 = vpop.f32.mrb[47].mxu0  ;;  %v6857_v30 = vcombine.high %v580_v12, %v592_v16 }
 0x166   : > { %v3494_v39 = vadd.f32 %v7471_v28, %v9646_v37  ;;  %v7474_v42 = vadd.f32 %v7473_v36, %v7472_v32  ;;  %v7537_v44 = vpop.f32.mrb[47].mxu1  ;;  %v6834_v28 = vcombine.low %v557_v55, %v569_v57  ;;  %v6856_v57 = vcombine.low %v580_v12, %v592_v16  ;;  %v629_v16 = vld [vmem:[%s9044_s18 + $0x298] sm:$0xff] }
 0x167   : > { %v7538_v48 = vadd.f32 %v7537_v44, %v7536_v35  ;;  %4098 = vmatmul.mubr.bf16.gmra.mrb[152].mxu0 %v6972_v29  ;;  %v604_v44 = vld [vmem:[%s9044_s18 + $0x1d0] sm:$0xff] }
 0x168   : > { %v9876_v51 = vadd.f32 %v7535_v14, %v3494_v39  ;;  %v3497_v45 = vadd.f32 %v7474_v42, %v9649_v40  ;;  %4195 = vmatmul.mubr.bf16.gmra.mrb[152].mxu1 %v6974_v33  ;;  %4105 = vmatprep.mubr.bf16.mxu0 %v6997_v34  ;;  %v6859_v34 = vcombine.high %v581_v20, %v593_v22 }
 0x169   : > { %4202 = vmatprep.mubr.bf16.mxu1 %v6999_v38 }
 0x16a   : > { %v9881_v47 = vadd.f32 %v7538_v48, %v3497_v45  ;;  %v7475_v52 = vpop.f32.mrb[48].mxu0  ;;  %v616_v48 = vld [vmem:[%s9044_s18 + $0x230] sm:$0xff] }
 0x16b   : > { %v7539_v58 = vpop.f32.mrb[48].mxu1  ;;  %v7476_v37 = vpop.f32.mrb[49].mxu0 }
 0x16c   : > { %v7477_v59 = vadd.f32 %v7476_v37, %v7475_v52  ;;  %v7540_v62 = vpop.f32.mrb[49].mxu1  ;;  %v7478_v63 = vpop.f32.mrb[50].mxu0  ;;  %v617_v52 = vld [vmem:[%s9044_s18 + $0x238] sm:$0xff] }
 0x16d   : > { %v7541_v40 = vadd.f32 %v7540_v62, %v7539_v58  ;;  %v7542_v4 = vpop.f32.mrb[50].mxu1  ;;  %v7479_v8 = vpop.f32.mrb[51].mxu0  ;;  %v6881_v62 = vcombine.high %v604_v44, %v616_v48 }
 0x16e   : > { %v3502_v53 = vadd.f32 %v7477_v59, %v9653_v60  ;;  %v7480_v5 = vadd.f32 %v7479_v8, %v7478_v63  ;;  %v7543_v6 = vpop.f32.mrb[51].mxu1  ;;  %v6858_v59 = vcombine.low %v581_v20, %v593_v22  ;;  %v6880_v22 = vcombine.low %v604_v44, %v616_v48  ;;  %v653_v48 = vld [vmem:[%s9044_s18 + $0x358] sm:$0xff] }
 0x16f   : > { %v7544_v13 = vadd.f32 %v7543_v6, %v7542_v4  ;;  %4106 = vmatmul.mubr.bf16.gmra.mrb[156].mxu0 %v6996_v50  ;;  %v628_v6 = vld [vmem:[%s9044_s18 + $0x290] sm:$0xff] }
 0x170   : > { %v9886_v15 = vadd.f32 %v7541_v40, %v3502_v53  ;;  %v3505_v7 = vadd.f32 %v7480_v5, %v9661_v1  ;;  %4203 = vmatmul.mubr.bf16.gmra.mrb[156].mxu1 %v6998_v0  ;;  %4243 = vmatprep.mubr.bf16.mxu0 %v6833_v2  ;;  %v6883_v2 = vcombine.high %v605_v61, %v617_v52 }
 0x171   : > { %4340 = vmatprep.mubr.bf16.mxu1 %v6835_v10 }
 0x172   : > { %v9891_v26 = vadd.f32 %v7544_v13, %v3505_v7  ;;  %v7481_v19 = vpop.f32.mrb[52].mxu0  ;;  %v640_v13 = vld [vmem:[%s9044_s18 + $0x2f0] sm:$0xff] }
 0x173   : > { %v7545_v24 = vpop.f32.mrb[52].mxu1  ;;  %v7482_v60 = vpop.f32.mrb[53].mxu0 }
 0x174   : > { %v7483_v27 = vadd.f32 %v7482_v60, %v7481_v19  ;;  %v7546_v11 = vpop.f32.mrb[53].mxu1  ;;  %v7484_v29 = vpop.f32.mrb[54].mxu0  ;;  %v641_v19 = vld [vmem:[%s9044_s18 + $0x2f8] sm:$0xff] }
 0x175   : > { %v7547_v1 = vadd.f32 %v7546_v11, %v7545_v24  ;;  %v7548_v32 = vpop.f32.mrb[54].mxu1  ;;  %v7485_v33 = vpop.f32.mrb[55].mxu0  ;;  %v6905_v11 = vcombine.high %v628_v6, %v640_v13 }
 0x176   : > { %v3510_v14 = vadd.f32 %v7483_v27, %v9693_v31  ;;  %v7486_v35 = vadd.f32 %v7485_v33, %v7484_v29  ;;  %v7549_v36 = vpop.f32.mrb[55].mxu1  ;;  %v6882_v27 = vcombine.low %v605_v61, %v617_v52  ;;  %v6904_v52 = vcombine.low %v628_v6, %v640_v13  ;;  %v677_v13 = vld [vmem:[%s9044_s18 + $0x418] sm:$0xff] }
 0x177   : > { %v7550_v38 = vadd.f32 %v7549_v36, %v7548_v32  ;;  %4244 = vmatmul.mubr.bf16.vlgmr.msra.gmra.mrb[160].mxu0 %v6832_v25  ;;  %v652_v36 = vld [vmem:[%s9044_s18 + $0x350] sm:$0xff] }
 0x178   : > { %v9896_v39 = vadd.f32 %v7547_v1, %v3510_v14  ;;  %v3513_v42 = vadd.f32 %v7486_v35, %v9713_v41  ;;  %4341 = vmatmul.mubr.bf16.vlgmr.msra.gmra.mrb[160].mxu1 %v6834_v28  ;;  %4251 = vmatprep.mubr.bf16.mxu0 %v6857_v30  ;;  %v6907_v30 = vcombine.high %v629_v16, %v641_v19 }
 0x179   : > { %4348 = vmatprep.mubr.bf16.mxu1 %v6859_v34 }
 0x17a   : > { %v9901_v45 = vadd.f32 %v7550_v38, %v3513_v42  ;;  %v7487_v46 = vpop.f32.mrb[56].mxu0  ;;  %v664_v38 = vld [vmem:[%s9044_s18 + $0x3b0] sm:$0xff] }
 0x17b   : > { %v7551_v55 = vpop.f32.mrb[56].mxu1  ;;  %v7488_v31 = vpop.f32.mrb[57].mxu0 }
 0x17c   : > { %v7489_v58 = vadd.f32 %v7488_v31, %v7487_v46  ;;  %v7552_v37 = vpop.f32.mrb[57].mxu1  ;;  %v7490_v50 = vpop.f32.mrb[58].mxu0  ;;  %v665_v46 = vld [vmem:[%s9044_s18 + $0x3b8] sm:$0xff] }
 0x17d   : > { %v7553_v41 = vadd.f32 %v7552_v37, %v7551_v55  ;;  %v7554_v63 = vpop.f32.mrb[58].mxu1  ;;  %v7491_v0 = vpop.f32.mrb[59].mxu0  ;;  %v6929_v37 = vcombine.high %v652_v36, %v664_v38 }
 0x17e   : > { %v3518_v40 = vadd.f32 %v7489_v58, %v9736_v3  ;;  %v7492_v4 = vadd.f32 %v7491_v0, %v7490_v50  ;;  %v7555_v8 = vpop.f32.mrb[59].mxu1  ;;  %v6906_v58 = vcombine.low %v629_v16, %v641_v19  ;;  %v6928_v19 = vcombine.low %v652_v36, %v664_v38 }
 0x17f   : > { %v7556_v10 = vadd.f32 %v7555_v8, %v7554_v63  ;;  %4252 = vmatmul.mubr.bf16.gmra.mrb[164].mxu0 %v6856_v57  ;;  %v676_v8 = vld [vmem:[%s9044_s18 + $0x410] sm:$0xff] }
 0x180   : > { %v9906_v53 = vadd.f32 %v7553_v41, %v3518_v40  ;;  %v3521_v5 = vadd.f32 %v7492_v4, %v9751_v9  ;;  %4349 = vmatmul.mubr.bf16.gmra.mrb[164].mxu1 %v6858_v59  ;;  %4259 = vmatprep.mubr.bf16.mxu0 %v6881_v62  ;;  %v6931_v62 = vcombine.high %v653_v48, %v665_v46 }
 0x181   : > { %4356 = vmatprep.mubr.bf16.mxu1 %v6883_v2 }
 0x182   : > { %v9911_v7 = vadd.f32 %v7556_v10, %v3521_v5  ;;  %v7493_v12 = vpop.f32.mrb[60].mxu0  ;;  %v688_v10 = vld [vmem:[%s9044_s18 + $0x470] sm:$0xff] }
 0x183   : > { %v7557_v20 = vpop.f32.mrb[60].mxu1  ;;  %v7494_v3 = vpop.f32.mrb[61].mxu0 }
 0x184   : > { %v7495_v24 = vadd.f32 %v7494_v3, %v7493_v12  ;;  %v7558_v60 = vpop.f32.mrb[61].mxu1  ;;  %v7496_v25 = vpop.f32.mrb[62].mxu0  ;;  %v689_v12 = vld [vmem:[%s9044_s18 + $0x478] sm:$0xff] }
 0x185   : > { %v7559_v9 = vadd.f32 %v7558_v60, %v7557_v20  ;;  %v7560_v29 = vpop.f32.mrb[62].mxu1  ;;  %v7497_v28 = vpop.f32.mrb[63].mxu0  ;;  %v6953_v60 = vcombine.high %v676_v8, %v688_v10 }
 0x186   : > { %v3526_v1 = vadd.f32 %v7495_v24, %v9786_v43  ;;  %v7498_v32 = vadd.f32 %v7497_v28, %v7496_v25  ;;  %v7561_v33 = vpop.f32.mrb[63].mxu1  ;;  %v6930_v24 = vcombine.low %v653_v48, %v665_v46  ;;  %v8586_v48 = vld [vmem:[%s11174_s3 + $0x4] ss:$8 sps:$4 sm:$0xff]  }
 0x187   : > { %v7562_v34 = vadd.f32 %v7561_v33, %v7560_v29  ;;  %4260 = vmatmul.mubr.bf16.gmra.mrb[168].mxu0 %v6880_v22  ;;  %v700_v33 = vld [vmem:[%s9044_s18 + $0x4d0] sm:$0xff]  ;;  %4498 = vmatprep.subr.bf16.mxu0 %v8586_v48 }
 0x188   : > { %v9916_v14 = vadd.f32 %v7559_v9, %v3526_v1  ;;  %v3529_v35 = vadd.f32 %v7498_v32, %v9801_v49  ;;  %4357 = vmatmul.mubr.bf16.gmra.mrb[168].mxu1 %v6882_v27  ;;  %4267 = vmatprep.mubr.bf16.mxu0 %v6905_v11  ;;  %v6955_v11 = vcombine.high %v677_v13, %v689_v12 }
 0x189   : > { %4364 = vmatprep.mubr.bf16.mxu1 %v6907_v30 }
 0x18a   : > { %v9921_v42 = vadd.f32 %v7562_v34, %v3529_v35  ;;  %v7579_v44 = vpop.f32.mrb[64].mxu0  ;;  %v712_v34 = vld [vmem:[%s9044_s18 + $0x530] sm:$0xff]  ;;  %v701_v35 = vld [vmem:[%s9044_s18 + $0x4d8] sm:$0xff] }
 0x18b   : > { %v7643_v61 = vpop.f32.mrb[64].mxu1  ;;  %v7580_v43 = vpop.f32.mrb[65].mxu0 }
 0x18c   : > { %v7581_v55 = vadd.f32 %v7580_v43, %v7579_v44  ;;  %v7644_v31 = vpop.f32.mrb[65].mxu1  ;;  %v7582_v57 = vpop.f32.mrb[66].mxu0  ;;  %v713_v44 = vld [vmem:[%s9044_s18 + $0x538] sm:$0xff] }
 0x18d   : > { %v7645_v49 = vadd.f32 %v7644_v31, %v7643_v61  ;;  %v7646_v50 = vpop.f32.mrb[66].mxu1  ;;  %v7583_v59 = vpop.f32.mrb[67].mxu0  ;;  %v6952_v61 = vcombine.low %v676_v8, %v688_v10  ;;  %v6954_v31 = vcombine.low %v677_v13, %v689_v12  ;;  %v736_v8 = vld [vmem:[%s9044_s18 + $0x5f0] sm:$0xff]  ;;  %v725_v13 = vld [vmem:[%s9044_s18 + $0x598] sm:$0xff] }
 0x18e   : > { %v3664_v41 = vadd.f32 %v7581_v55, %v9836_v18  ;;  %v7584_v63 = vadd.f32 %v7583_v59, %v7582_v57  ;;  %v7647_v0 = vpop.f32.mrb[67].mxu1  ;;  %v6977_v57 = vcombine.high %v700_v33, %v712_v34  ;;  %v737_v12 = vld [vmem:[%s9044_s18 + $0x5f8] sm:$0xff] }
 0x18f   : > { %v7648_v2 = vadd.f32 %v7647_v0, %v7646_v50  ;;  %4268 = vmatmul.mubr.bf16.gmra.mrb[172].mxu0 %v6904_v52  ;;  %v6979_v50 = vcombine.high %v701_v35, %v713_v44 }
 0x190   : > { %v9926_v40 = vadd.f32 %v7645_v49, %v3664_v41  ;;  %v3667_v4 = vadd.f32 %v7584_v63, %v9844_v23  ;;  %4365 = vmatmul.mubr.bf16.gmra.mrb[172].mxu1 %v6906_v58  ;;  %4275 = vmatprep.mubr.bf16.mxu0 %v6929_v37 }
 0x191   : > { %4372 = vmatprep.mubr.bf16.mxu1 %v6931_v62 }
 0x192   : > { %v9931_v5 = vadd.f32 %v7648_v2, %v3667_v4  ;;  %v7585_v6 = vpop.f32.mrb[68].mxu0  ;;  %v724_v4 = vld [vmem:[%s9044_s18 + $0x590] sm:$0xff] }
 0x193   : > { %v7649_v16 = vpop.f32.mrb[68].mxu1  ;;  %v7586_v18 = vpop.f32.mrb[69].mxu0 }
 0x194   : > { %v7587_v20 = vadd.f32 %v7586_v18, %v7585_v6  ;;  %v7650_v3 = vpop.f32.mrb[69].mxu1  ;;  %v7588_v22 = vpop.f32.mrb[70].mxu0  ;;  %v6976_v18 = vcombine.low %v700_v33, %v712_v34  ;;  %v8587_v34 = vld [vmem:[%s11174_s3 + $0x10] ss:$8 sps:$4 sm:$0xff]  }
 0x195   : > { %v7651_v23 = vadd.f32 %v7650_v3, %v7649_v16  ;;  %v7652_v25 = vpop.f32.mrb[70].mxu1  ;;  %v7589_v27 = vpop.f32.mrb[71].mxu0 }
 0x196   : > { %v3672_v9 = vadd.f32 %v7587_v20, %v9856_v54  ;;  %v7590_v29 = vadd.f32 %v7589_v27, %v7588_v22  ;;  %v7653_v28 = vpop.f32.mrb[71].mxu1  ;;  %v8584_v54 = vld [vmem:[%s11174_s3] ss:$8 sps:$4 sm:$0xff]   ;;  %v6978_v22 = vcombine.low %v701_v35, %v713_v44  ;;  %v7000_v44 = vcombine.low %v724_v4, %v736_v8 }
 0x197   : > { %v7654_v30 = vadd.f32 %v7653_v28, %v7652_v25  ;;  %4276 = vmatmul.mubr.bf16.gmra.mrb[176].mxu0 %v6928_v19  ;;  %v7003_v25 = vcombine.high %v725_v13, %v737_v12 }
 0x198   : > { %v9936_v1 = vadd.f32 %v7651_v23, %v3672_v9  ;;  %v3675_v32 = vadd.f32 %v7590_v29, %v9861_v56  ;;  %4373 = vmatmul.mubr.bf16.gmra.mrb[176].mxu1 %v6930_v24  ;;  %4283 = vmatprep.mubr.bf16.mxu0 %v6953_v60  ;;  %v7001_v24 = vcombine.high %v724_v4, %v736_v8 }
 0x199   : > { %4380 = vmatprep.mubr.bf16.mxu1 %v6955_v11  ;;  %4499 = vmatpush1.bf16.msra.mxu0 %v8584_v54 }
 0x19a   : > { %v9942_v36 = vadd.f32 %v7654_v30, %v3675_v32  ;;  %v7591_v38 = vpop.f32.mrb[72].mxu0 }
 0x19b   : > { %v7655_v46 = vpop.f32.mrb[72].mxu1  ;;  %v7592_v56 = vpop.f32.mrb[73].mxu0 }
 0x19c   : > { %v7593_v43 = vadd.f32 %v7592_v56, %v7591_v38  ;;  %v7656_v52 = vpop.f32.mrb[73].mxu1  ;;  %v7594_v55 = vpop.f32.mrb[74].mxu0 }
 0x19d   : > { %v7657_v58 = vadd.f32 %v7656_v52, %v7655_v46  ;;  %v7658_v37 = vpop.f32.mrb[74].mxu1  ;;  %v7595_v49 = vpop.f32.mrb[75].mxu0  ;;  %v7002_v46 = vcombine.low %v725_v13, %v737_v12 }
 0x19e   : > { %v3680_v59 = vadd.f32 %v7593_v43, %v9866_v17  ;;  %v7596_v62 = vadd.f32 %v7595_v49, %v7594_v55  ;;  %v7659_v41 = vpop.f32.mrb[75].mxu1 }
 0x19f   : > { %v7660_v63 = vadd.f32 %v7659_v41, %v7658_v37  ;;  %4284 = vmatmul.mubr.bf16.gmra.mrb[180].mxu0 %v6952_v61 }
 0x1a0   : > { %v9952_v0 = vadd.f32 %v7657_v58, %v3680_v59  ;;  %v3683_v2 = vadd.f32 %v7596_v62, %v9871_v21  ;;  %4381 = vmatmul.mubr.bf16.gmra.mrb[180].mxu1 %v6954_v31  ;;  %4291 = vmatprep.mubr.bf16.mxu0 %v6977_v57 }
 0x1a1   : > { %4388 = vmatprep.mubr.bf16.mxu1 %v6979_v50 }
 0x1a2   : > { %v9957_v10 = vadd.f32 %v7660_v63, %v3683_v2  ;;  %v7597_v6 = vpop.f32.mrb[76].mxu0 }
 0x1a3   : > { %v7661_v16 = vpop.f32.mrb[76].mxu1  ;;  %v7598_v17 = vpop.f32.mrb[77].mxu0 }
 0x1a4   : > { %v7599_v19 = vadd.f32 %v7598_v17, %v7597_v6  ;;  %v7662_v20 = vpop.f32.mrb[77].mxu1  ;;  %v7600_v3 = vpop.f32.mrb[78].mxu0 }
 0x1a5   : > { %v7663_v60 = vadd.f32 %v7662_v20, %v7661_v16  ;;  %v7664_v21 = vpop.f32.mrb[78].mxu1  ;;  %v7601_v23 = vpop.f32.mrb[79].mxu0  ;;  %v8590_v20 = vld [vmem:[%s11174_s3 + $0x20] ss:$8 sps:$4 sm:$0xff]  }
 0x1a6   : > { %v3688_v27 = vadd.f32 %v7599_v19, %v9876_v51  ;;  %v7602_v11 = vadd.f32 %v7601_v23, %v7600_v3  ;;  %v7665_v9 = vpop.f32.mrb[79].mxu1  ;;  %v8589_v51 = vld [vmem:[%s11174_s3 + $0x14] ss:$8 sps:$4 sm:$0xff]   ;;  %v8592_v3 = vld [vmem:[%s11174_s3 + $0x24] ss:$8 sps:$4 sm:$0xff]  }
 0x1a7   : > { %v7666_v29 = vadd.f32 %v7665_v9, %v7664_v21  ;;  %4292 = vmatmul.mubr.bf16.gmra.mrb[184].mxu0 %v6976_v18  ;;  %4500 = vmatprep.subr.bf16.mxu0 %v8589_v51 }
 0x1a8   : > { %v9962_v28 = vadd.f32 %v7663_v60, %v3688_v27  ;;  %v3691_v30 = vadd.f32 %v7602_v11, %v9881_v47  ;;  %4389 = vmatmul.mubr.bf16.gmra.mrb[184].mxu1 %v6978_v22  ;;  %4299 = vmatprep.mubr.bf16.mxu0 %v7001_v24 }
 0x1a9   : > { %4396 = vmatprep.mubr.bf16.mxu1 %v7003_v25  ;;  %4501 = vmatpush1.bf16.msra.mxu0 %v8587_v34 }
 0x1aa   : > { %v9965_v32 = vadd.f32 %v7666_v29, %v3691_v30  ;;  %v7603_v33 = vpop.f32.mrb[80].mxu0  ;;  %4502 = vmatprep.subr.bf16.mxu0 %v8592_v3 }
 0x1ab   : > { %v7667_v35 = vpop.f32.mrb[80].mxu1  ;;  %v7604_v38 = vpop.f32.mrb[81].mxu0 }
 0x1ac   : > { %v7605_v54 = vadd.f32 %v7604_v38, %v7603_v33  ;;  %v7668_v48 = vpop.f32.mrb[81].mxu1  ;;  %v7606_v47 = vpop.f32.mrb[82].mxu0 }
 0x1ad   : > { %v7669_v56 = vadd.f32 %v7668_v48, %v7667_v35  ;;  %v7670_v61 = vpop.f32.mrb[82].mxu1  ;;  %v7607_v43 = vpop.f32.mrb[83].mxu0  ;;  %4503 = vmatpush1.bf16.msra.mxu0 %v8590_v20 }
 0x1ae   : > { %v3696_v52 = vadd.f32 %v7605_v54, %v9886_v15  ;;  %v7608_v55 = vadd.f32 %v7607_v43, %v7606_v47  ;;  %v7671_v31 = vpop.f32.mrb[83].mxu1 }
 0x1af   : > { %v7672_v57 = vadd.f32 %v7671_v31, %v7670_v61  ;;  %4300 = vmatmul.mubr.bf16.gmra.mrb[188].mxu0 %v7000_v44 }
 0x1b0   : > { %v9974_v58 = vadd.f32 %v7669_v56, %v3696_v52  ;;  %v3699_v37 = vadd.f32 %v7608_v55, %v9891_v26  ;;  %4397 = vmatmul.mubr.bf16.gmra.mrb[188].mxu1 %v7002_v46 }
 0x1b2   : > { %v9977_v49 = vadd.f32 %v7672_v57, %v3699_v37  ;;  %v7609_v50 = vpop.f32.mrb[84].mxu0  ;;  %v8593_v37 = vld [vmem:[%s11174_s3 + $0x30] ss:$8 sps:$4 sm:$0xff]  }
 0x1b3   : > { %v7673_v59 = vpop.f32.mrb[84].mxu1  ;;  %v7610_v62 = vpop.f32.mrb[85].mxu0 }
 0x1b4   : > { %v7611_v41 = vadd.f32 %v7610_v62, %v7609_v50  ;;  %v7674_v63 = vpop.f32.mrb[85].mxu1  ;;  %v7612_v2 = vpop.f32.mrb[86].mxu0  ;;  %v8595_v50 = vld [vmem:[%s11174_s3 + $0x34] ss:$8 sps:$4 sm:$0xff]  }
 0x1b5   : > { %v7675_v4 = vadd.f32 %v7674_v63, %v7673_v59  ;;  %v7676_v8 = vpop.f32.mrb[86].mxu1  ;;  %v7613_v15 = vpop.f32.mrb[87].mxu0  ;;  %4504 = vmatprep.subr.bf16.mxu0 %v8595_v50 }
 0x1b6   : > { %v3704_v6 = vadd.f32 %v7611_v41, %v9896_v39  ;;  %v7614_v13 = vadd.f32 %v7613_v15, %v7612_v2  ;;  %v7677_v12 = vpop.f32.mrb[87].mxu1  ;;  %4505 = vmatpush1.bf16.msra.mxu0 %v8593_v37 }
 0x1b7   : > { %v7678_v16 = vadd.f32 %v7677_v12, %v7676_v8 }
 0x1b8   : > { %v9980_v17 = vadd.f32 %v7675_v4, %v3704_v6  ;;  %v3707_v26 = vadd.f32 %v7614_v13, %v9901_v45 }
 0x1ba   : > { %v9983_v18 = vadd.f32 %v7678_v16, %v3707_v26  ;;  %v7615_v19 = vpop.f32.mrb[88].mxu0 }
 0x1bb   : > { %v7679_v22 = vpop.f32.mrb[88].mxu1  ;;  %v7616_v39 = vpop.f32.mrb[89].mxu0 }
 0x1bc   : > { %v7617_v24 = vadd.f32 %v7616_v39, %v7615_v19  ;;  %v7680_v60 = vpop.f32.mrb[89].mxu1  ;;  %v7618_v21 = vpop.f32.mrb[90].mxu0 }
 0x1bd   : > { %v7681_v23 = vadd.f32 %v7680_v60, %v7679_v22  ;;  %v7682_v25 = vpop.f32.mrb[90].mxu1  ;;  %v7619_v45 = vpop.f32.mrb[91].mxu0 }
 0x1be   : > { %v3712_v27 = vadd.f32 %v7617_v24, %v9906_v53  ;;  %v7620_v11 = vadd.f32 %v7619_v45, %v7618_v21  ;;  %v7683_v9 = vpop.f32.mrb[91].mxu1 }
 0x1bf   : > { %v7684_v29 = vadd.f32 %v7683_v9, %v7682_v25 }
 0x1c0   : > { %v9992_v30 = vadd.f32 %v7681_v23, %v3712_v27  ;;  %v3715_v33 = vadd.f32 %v7620_v11, %v9911_v7  ;;  %v8842_v27 = vmov 0  }
 0x1c1   : > { %4530 = vmatprep.mubr.bf16.mxu0 %v8842_v27 }
 0x1c2   : > { %v9995_v34 = vadd.f32 %v7684_v29, %v3715_v33  ;;  %v7621_v51 = vpop.f32.mrb[92].mxu0 }
 0x1c3   : > { %v7685_v35 = vpop.f32.mrb[92].mxu1  ;;  %v7622_v38 = vpop.f32.mrb[93].mxu0 }
 0x1c4   : > { %v7623_v44 = vadd.f32 %v7622_v38, %v7621_v51  ;;  %v7686_v54 = vpop.f32.mrb[93].mxu1  ;;  %v7624_v48 = vpop.f32.mrb[94].mxu0 }
 0x1c5   : > { %v7687_v47 = vadd.f32 %v7686_v54, %v7685_v35  ;;  %v7688_v46 = vpop.f32.mrb[94].mxu1  ;;  %v7625_v56 = vpop.f32.mrb[95].mxu0 }
 0x1c6   : > { %v3720_v53 = vadd.f32 %v7623_v44, %v9916_v14  ;;  %v7626_v61 = vadd.f32 %v7625_v56, %v7624_v48  ;;  %v7689_v43 = vpop.f32.mrb[95].mxu1 }
 0x1c7   : > { %v7690_v52 = vadd.f32 %v7689_v43, %v7688_v46 }
 0x1c8   : > { %v9998_v55 = vadd.f32 %v7687_v47, %v3720_v53  ;;  %v3723_v7 = vadd.f32 %v7626_v61, %v9921_v42 }
 0x1ca   : > { %v10001_v31 = vadd.f32 %v7690_v52, %v3723_v7  ;;  %v7707_v57 = vpop.f32.mrb[96].mxu0 }
 0x1cb   : > { %v7771_v59 = vpop.f32.mrb[96].mxu1  ;;  %v7708_v14 = vpop.f32.mrb[97].mxu0 }
 0x1cc   : > { %v7709_v62 = vadd.f32 %v7708_v14, %v7707_v57  ;;  %v7772_v41 = vpop.f32.mrb[97].mxu1  ;;  %v7710_v63 = vpop.f32.mrb[98].mxu0 }
 0x1cd   : > { %v7773_v2 = vadd.f32 %v7772_v41, %v7771_v59  ;;  %v7774_v4 = vpop.f32.mrb[98].mxu1  ;;  %v7711_v42 = vpop.f32.mrb[99].mxu0 }
 0x1ce   : > { %v3858_v8 = vadd.f32 %v7709_v62, %v9926_v40  ;;  %v7712_v15 = vadd.f32 %v7711_v42, %v7710_v63  ;;  %v7775_v6 = vpop.f32.mrb[99].mxu1 }
 0x1cf   : > { %v7776_v13 = vadd.f32 %v7775_v6, %v7774_v4 }
 0x1d0   : > { %v10010_v12 = vadd.f32 %v7773_v2, %v3858_v8  ;;  %v3861_v16 = vadd.f32 %v7712_v15, %v9931_v5 }
 0x1d2   : > { %v10013_v26 = vadd.f32 %v7776_v13, %v3861_v16  ;;  %v7713_v19 = vpop.f32.mrb[100].mxu0 }
 0x1d3   : > { %v7777_v20 = vpop.f32.mrb[100].mxu1  ;;  %v7714_v3 = vpop.f32.mrb[101].mxu0 }
 0x1d4   : > { %v7715_v22 = vadd.f32 %v7714_v3, %v7713_v19  ;;  %v7778_v39 = vpop.f32.mrb[101].mxu1  ;;  %v7716_v24 = vpop.f32.mrb[102].mxu0 }
 0x1d5   : > { %v7779_v60 = vadd.f32 %v7778_v39, %v7777_v20  ;;  %v7780_v21 = vpop.f32.mrb[102].mxu1  ;;  %v7717_v23 = vpop.f32.mrb[103].mxu0 }
 0x1d6   : > { %v3866_v40 = vadd.f32 %v7715_v22, %v9936_v1  ;;  %v7718_v25 = vadd.f32 %v7717_v23, %v7716_v24  ;;  %v7781_v45 = vpop.f32.mrb[103].mxu1 }
 0x1d7   : > { %v7782_v11 = vadd.f32 %v7781_v45, %v7780_v21 }
 0x1d8   : > { %v10017_v5 = vadd.f32 %v7779_v60, %v3866_v40  ;;  %v3869_v9 = vadd.f32 %v7718_v25, %v9942_v36 }
 0x1da   : > { %v10020_v29 = vadd.f32 %v7782_v11, %v3869_v9  ;;  %v7719_v33 = vpop.f32.mrb[104].mxu0 }
 0x1db   : > { %v7783_v51 = vpop.f32.mrb[104].mxu1  ;;  %v7720_v35 = vpop.f32.mrb[105].mxu0 }
 0x1dc   : > { %v7721_v38 = vadd.f32 %v7720_v35, %v7719_v33  ;;  %v7784_v44 = vpop.f32.mrb[105].mxu1  ;;  %v7722_v54 = vpop.f32.mrb[106].mxu0 }
 0x1dd   : > { %v7785_v48 = vadd.f32 %v7784_v44, %v7783_v51  ;;  %v7786_v1 = vpop.f32.mrb[106].mxu1  ;;  %v7723_v47 = vpop.f32.mrb[107].mxu0 }
 0x1de   : > { %v3874_v46 = vadd.f32 %v7721_v38, %v9952_v0  ;;  %v7724_v56 = vadd.f32 %v7723_v47, %v7722_v54  ;;  %v7787_v53 = vpop.f32.mrb[107].mxu1 }
 0x1df   : > { %v7788_v61 = vadd.f32 %v7787_v53, %v7786_v1 }
 0x1e0   : > { %v10023_v43 = vadd.f32 %v7785_v48, %v3874_v46  ;;  %v3877_v36 = vadd.f32 %v7724_v56, %v9957_v10 }
 0x1e2   : > { %v10026_v52 = vadd.f32 %v7788_v61, %v3877_v36  ;;  %v7725_v7 = vpop.f32.mrb[108].mxu0 }
 0x1e3   : > { %v7789_v57 = vpop.f32.mrb[108].mxu1  ;;  %v7726_v37 = vpop.f32.mrb[109].mxu0 }
 0x1e4   : > { %v7727_v50 = vadd.f32 %v7726_v37, %v7725_v7  ;;  %v7790_v59 = vpop.f32.mrb[109].mxu1  ;;  %v7728_v14 = vpop.f32.mrb[110].mxu0 }
 0x1e5   : > { %v7791_v62 = vadd.f32 %v7790_v59, %v7789_v57  ;;  %v7792_v41 = vpop.f32.mrb[110].mxu1  ;;  %v7729_v63 = vpop.f32.mrb[111].mxu0 }
 0x1e6   : > { %v3882_v0 = vadd.f32 %v7727_v50, %v9962_v28  ;;  %v7730_v2 = vadd.f32 %v7729_v63, %v7728_v14  ;;  %v7793_v4 = vpop.f32.mrb[111].mxu1 }
 0x1e7   : > { %v7794_v42 = vadd.f32 %v7793_v4, %v7792_v41 }
 0x1e8   : > { %v10029_v8 = vadd.f32 %v7791_v62, %v3882_v0  ;;  %v3885_v10 = vadd.f32 %v7730_v2, %v9965_v32 }
 0x1ea   : > { %v10032_v15 = vadd.f32 %v7794_v42, %v3885_v10  ;;  %v7731_v6 = vpop.f32.mrb[112].mxu0 }
 0x1eb   : > { %v7795_v13 = vpop.f32.mrb[112].mxu1  ;;  %v7732_v16 = vpop.f32.mrb[113].mxu0 }
 0x1ec   : > { %v7733_v19 = vadd.f32 %v7732_v16, %v7731_v6  ;;  %v7796_v20 = vpop.f32.mrb[113].mxu1  ;;  %v7734_v3 = vpop.f32.mrb[114].mxu0 }
 0x1ed   : > { %v7797_v22 = vadd.f32 %v7796_v20, %v7795_v13  ;;  %v7798_v39 = vpop.f32.mrb[114].mxu1  ;;  %v7735_v24 = vpop.f32.mrb[115].mxu0 }
 0x1ee   : > { %v3890_v28 = vadd.f32 %v7733_v19, %v9974_v58  ;;  %v7736_v60 = vadd.f32 %v7735_v24, %v7734_v3  ;;  %v7799_v21 = vpop.f32.mrb[115].mxu1 }
 0x1ef   : > { %v7800_v23 = vadd.f32 %v7799_v21, %v7798_v39 }
 0x1f0   : > { %v10035_v40 = vadd.f32 %v7797_v22, %v3890_v28  ;;  %v3893_v32 = vadd.f32 %v7736_v60, %v9977_v49 }
 0x1f2   : > { %v10038_v25 = vadd.f32 %v7800_v23, %v3893_v32  ;;  %v7737_v45 = vpop.f32.mrb[116].mxu0 }
 0x1f3   : > { %v7801_v11 = vpop.f32.mrb[116].mxu1  ;;  %v7738_v9 = vpop.f32.mrb[117].mxu0 }
 0x1f4   : > { %v7739_v33 = vadd.f32 %v7738_v9, %v7737_v45  ;;  %v7802_v51 = vpop.f32.mrb[117].mxu1  ;;  %v7740_v35 = vpop.f32.mrb[118].mxu0 }
 0x1f5   : > { %v7803_v38 = vadd.f32 %v7802_v51, %v7801_v11  ;;  %v7804_v44 = vpop.f32.mrb[118].mxu1  ;;  %v7741_v54 = vpop.f32.mrb[119].mxu0 }
 0x1f6   : > { %v3898_v58 = vadd.f32 %v7739_v33, %v9980_v17  ;;  %v7742_v48 = vadd.f32 %v7741_v54, %v7740_v35  ;;  %v7805_v1 = vpop.f32.mrb[119].mxu1 }
 0x1f7   : > { %v7806_v47 = vadd.f32 %v7805_v1, %v7804_v44 }
 0x1f8   : > { %v10041_v46 = vadd.f32 %v7803_v38, %v3898_v58  ;;  %v3901_v49 = vadd.f32 %v7742_v48, %v9983_v18 }
 0x1fa   : > { %v10044_v56 = vadd.f32 %v7806_v47, %v3901_v49  ;;  %v7743_v53 = vpop.f32.mrb[120].mxu0 }
 0x1fb   : > { %v7807_v61 = vpop.f32.mrb[120].mxu1  ;;  %v7744_v36 = vpop.f32.mrb[121].mxu0 }
 0x1fc   : > { %v7745_v7 = vadd.f32 %v7744_v36, %v7743_v53  ;;  %v7808_v57 = vpop.f32.mrb[121].mxu1  ;;  %v7746_v37 = vpop.f32.mrb[122].mxu0 }
 0x1fd   : > { %v7809_v50 = vadd.f32 %v7808_v57, %v7807_v61  ;;  %v7810_v59 = vpop.f32.mrb[122].mxu1  ;;  %v7747_v14 = vpop.f32.mrb[123].mxu0 }
 0x1fe   : > { %v3906_v17 = vadd.f32 %v7745_v7, %v9992_v30  ;;  %v7748_v62 = vadd.f32 %v7747_v14, %v7746_v37  ;;  %v7811_v41 = vpop.f32.mrb[123].mxu1 }
 0x1ff   : > { %v7812_v63 = vadd.f32 %v7811_v41, %v7810_v59 }
 0x200   : > { %v10047_v0 = vadd.f32 %v7809_v50, %v3906_v17  ;;  %v3909_v18 = vadd.f32 %v7748_v62, %v9995_v34 }
 0x202   : > { %v10050_v2 = vadd.f32 %v7812_v63, %v3909_v18  ;;  %v7749_v4 = vpop.f32.mrb[124].mxu0 }
 0x203   : > { %v7813_v42 = vpop.f32.mrb[124].mxu1  ;;  %v7750_v10 = vpop.f32.mrb[125].mxu0 }
 0x204   : > { %v7751_v6 = vadd.f32 %v7750_v10, %v7749_v4  ;;  %v7814_v13 = vpop.f32.mrb[125].mxu1  ;;  %v7752_v16 = vpop.f32.mrb[126].mxu0 }
 0x205   : > { %v7815_v19 = vadd.f32 %v7814_v13, %v7813_v42  ;;  %v7816_v20 = vpop.f32.mrb[126].mxu1  ;;  %v7753_v3 = vpop.f32.mrb[127].mxu0 }
 0x206   : > { %v3914_v30 = vadd.f32 %v7751_v6, %v9998_v55  ;;  %v7754_v22 = vadd.f32 %v7753_v3, %v7752_v16  ;;  %v7817_v39 = vpop.f32.mrb[127].mxu1 }
 0x207   : > { %v7818_v24 = vadd.f32 %v7817_v39, %v7816_v20 }
 0x208   : > { %v10053_v28 = vadd.f32 %v7815_v19, %v3914_v30  ;;  %v3917_v34 = vadd.f32 %v7754_v22, %v10001_v31 }
 0x20a   : > { %v10056_v60 = vadd.f32 %v7818_v24, %v3917_v34  ;;  %v7835_v21 = vpop.f32.mrb[128].mxu0 }
 0x20b   : > { %v7899_v23 = vpop.f32.mrb[128].mxu1  ;;  %v7836_v32 = vpop.f32.mrb[129].mxu0 }
 0x20c   : > { %v7837_v45 = vadd.f32 %v7836_v32, %v7835_v21  ;;  %v7900_v11 = vpop.f32.mrb[129].mxu1  ;;  %v7838_v9 = vpop.f32.mrb[130].mxu0 }
 0x20d   : > { %v7901_v33 = vadd.f32 %v7900_v11, %v7899_v23  ;;  %v7902_v51 = vpop.f32.mrb[130].mxu1  ;;  %v7839_v35 = vpop.f32.mrb[131].mxu0 }
 0x20e   : > { %v4052_v55 = vadd.f32 %v7837_v45, %v10010_v12  ;;  %v7840_v38 = vadd.f32 %v7839_v35, %v7838_v9  ;;  %v7903_v44 = vpop.f32.mrb[131].mxu1 }
 0x20f   : > { %v7904_v54 = vadd.f32 %v7903_v44, %v7902_v51 }
 0x210   : > { %v10059_v58 = vadd.f32 %v7901_v33, %v4052_v55  ;;  %v4055_v31 = vadd.f32 %v7840_v38, %v10013_v26 }
 0x212   : > { %v10062_v48 = vadd.f32 %v7904_v54, %v4055_v31  ;;  %v7841_v1 = vpop.f32.mrb[132].mxu0 }
 0x213   : > { %v7905_v47 = vpop.f32.mrb[132].mxu1  ;;  %v7842_v49 = vpop.f32.mrb[133].mxu0 }
 0x214   : > { %v7843_v53 = vadd.f32 %v7842_v49, %v7841_v1  ;;  %v7906_v61 = vpop.f32.mrb[133].mxu1  ;;  %v7844_v36 = vpop.f32.mrb[134].mxu0 }
 0x215   : > { %v7907_v7 = vadd.f32 %v7906_v61, %v7905_v47  ;;  %v7908_v57 = vpop.f32.mrb[134].mxu1  ;;  %v7845_v37 = vpop.f32.mrb[135].mxu0 }
 0x216   : > { %v4060_v12 = vadd.f32 %v7843_v53, %v10017_v5  ;;  %v7846_v50 = vadd.f32 %v7845_v37, %v7844_v36  ;;  %v7909_v59 = vpop.f32.mrb[135].mxu1 }
 0x217   : > { %v7910_v14 = vadd.f32 %v7909_v59, %v7908_v57 }
 0x218   : > { %v10065_v17 = vadd.f32 %v7907_v7, %v4060_v12  ;;  %v4063_v26 = vadd.f32 %v7846_v50, %v10020_v29 }
 0x21a   : > { %v10068_v62 = vadd.f32 %v7910_v14, %v4063_v26  ;;  %v7847_v41 = vpop.f32.mrb[136].mxu0 }
 0x21b   : > { %v7911_v63 = vpop.f32.mrb[136].mxu1  ;;  %v7848_v18 = vpop.f32.mrb[137].mxu0 }
 0x21c   : > { %v7849_v4 = vadd.f32 %v7848_v18, %v7847_v41  ;;  %v7912_v42 = vpop.f32.mrb[137].mxu1  ;;  %v7850_v10 = vpop.f32.mrb[138].mxu0 }
 0x21d   : > { %v7913_v6 = vadd.f32 %v7912_v42, %v7911_v63  ;;  %v7914_v13 = vpop.f32.mrb[138].mxu1  ;;  %v7851_v16 = vpop.f32.mrb[139].mxu0 }
 0x21e   : > { %v4068_v5 = vadd.f32 %v7849_v4, %v10023_v43  ;;  %v7852_v19 = vadd.f32 %v7851_v16, %v7850_v10  ;;  %v7915_v20 = vpop.f32.mrb[139].mxu1 }
 0x21f   : > { %v7916_v3 = vadd.f32 %v7915_v20, %v7914_v13 }
 0x220   : > { %v10071_v30 = vadd.f32 %v7913_v6, %v4068_v5  ;;  %v4071_v29 = vadd.f32 %v7852_v19, %v10026_v52 }
 0x222   : > { %v10074_v22 = vadd.f32 %v7916_v3, %v4071_v29  ;;  %v7853_v39 = vpop.f32.mrb[140].mxu0 }
 0x223   : > { %v7917_v24 = vpop.f32.mrb[140].mxu1  ;;  %v7854_v34 = vpop.f32.mrb[141].mxu0 }
 0x224   : > { %v7855_v21 = vadd.f32 %v7854_v34, %v7853_v39  ;;  %v7918_v23 = vpop.f32.mrb[141].mxu1  ;;  %v7856_v32 = vpop.f32.mrb[142].mxu0 }
 0x225   : > { %v7919_v45 = vadd.f32 %v7918_v23, %v7917_v24  ;;  %v7920_v11 = vpop.f32.mrb[142].mxu1  ;;  %v7857_v9 = vpop.f32.mrb[143].mxu0 }
 0x226   : > { %v4076_v43 = vadd.f32 %v7855_v21, %v10029_v8  ;;  %v7858_v33 = vadd.f32 %v7857_v9, %v7856_v32  ;;  %v7921_v51 = vpop.f32.mrb[143].mxu1 }
 0x227   : > { %v7922_v35 = vadd.f32 %v7921_v51, %v7920_v11 }
 0x228   : > { %v10077_v55 = vadd.f32 %v7919_v45, %v4076_v43  ;;  %v4079_v52 = vadd.f32 %v7858_v33, %v10032_v15 }
 0x22a   : > { %v10080_v38 = vadd.f32 %v7922_v35, %v4079_v52  ;;  %v7859_v44 = vpop.f32.mrb[144].mxu0 }
 0x22b   : > { %v7923_v54 = vpop.f32.mrb[144].mxu1  ;;  %v7860_v31 = vpop.f32.mrb[145].mxu0 }
 0x22c   : > { %v7861_v1 = vadd.f32 %v7860_v31, %v7859_v44  ;;  %v7924_v47 = vpop.f32.mrb[145].mxu1  ;;  %v7862_v49 = vpop.f32.mrb[146].mxu0 }
 0x22d   : > { %v7925_v53 = vadd.f32 %v7924_v47, %v7923_v54  ;;  %v7926_v61 = vpop.f32.mrb[146].mxu1  ;;  %v7863_v36 = vpop.f32.mrb[147].mxu0 }
 0x22e   : > { %v4084_v8 = vadd.f32 %v7861_v1, %v10035_v40  ;;  %v7864_v7 = vadd.f32 %v7863_v36, %v7862_v49  ;;  %v7927_v57 = vpop.f32.mrb[147].mxu1 }
 0x22f   : > { %v7928_v37 = vadd.f32 %v7927_v57, %v7926_v61 }
 0x230   : > { %v10083_v12 = vadd.f32 %v7925_v53, %v4084_v8  ;;  %v4087_v15 = vadd.f32 %v7864_v7, %v10038_v25 }
 0x232   : > { %v10086_v50 = vadd.f32 %v7928_v37, %v4087_v15  ;;  %v7865_v59 = vpop.f32.mrb[148].mxu0 }
 0x233   : > { %v7929_v14 = vpop.f32.mrb[148].mxu1  ;;  %v7866_v26 = vpop.f32.mrb[149].mxu0 }
 0x234   : > { %v7867_v41 = vadd.f32 %v7866_v26, %v7865_v59  ;;  %v7930_v63 = vpop.f32.mrb[149].mxu1  ;;  %v7868_v18 = vpop.f32.mrb[150].mxu0 }
 0x235   : > { %v7931_v4 = vadd.f32 %v7930_v63, %v7929_v14  ;;  %v7932_v42 = vpop.f32.mrb[150].mxu1  ;;  %v7869_v10 = vpop.f32.mrb[151].mxu0 }
 0x236   : > { %v4092_v40 = vadd.f32 %v7867_v41, %v10041_v46  ;;  %v7870_v6 = vadd.f32 %v7869_v10, %v7868_v18  ;;  %v7933_v13 = vpop.f32.mrb[151].mxu1 }
 0x237   : > { %v7934_v16 = vadd.f32 %v7933_v13, %v7932_v42 }
 0x238   : > { %v10089_v5 = vadd.f32 %v7931_v4, %v4092_v40  ;;  %v4095_v25 = vadd.f32 %v7870_v6, %v10044_v56 }
 0x23a   : > { %v10092_v19 = vadd.f32 %v7934_v16, %v4095_v25  ;;  %v7871_v20 = vpop.f32.mrb[152].mxu0 }
 0x23b   : > { %v7935_v3 = vpop.f32.mrb[152].mxu1  ;;  %v7872_v29 = vpop.f32.mrb[153].mxu0 }
 0x23c   : > { %v7873_v39 = vadd.f32 %v7872_v29, %v7871_v20  ;;  %v7936_v24 = vpop.f32.mrb[153].mxu1  ;;  %v7874_v34 = vpop.f32.mrb[154].mxu0 }
 0x23d   : > { %v7937_v21 = vadd.f32 %v7936_v24, %v7935_v3  ;;  %v7938_v23 = vpop.f32.mrb[154].mxu1  ;;  %v7875_v32 = vpop.f32.mrb[155].mxu0 }
 0x23e   : > { %v4100_v46 = vadd.f32 %v7873_v39, %v10047_v0  ;;  %v7876_v45 = vadd.f32 %v7875_v32, %v7874_v34  ;;  %v7939_v11 = vpop.f32.mrb[155].mxu1 }
 0x23f   : > { %v7940_v9 = vadd.f32 %v7939_v11, %v7938_v23 }
 0x240   : > { %v10095_v43 = vadd.f32 %v7937_v21, %v4100_v46  ;;  %v4103_v56 = vadd.f32 %v7876_v45, %v10050_v2 }
 0x242   : > { %v10098_v33 = vadd.f32 %v7940_v9, %v4103_v56  ;;  %v7877_v51 = vpop.f32.mrb[156].mxu0 }
 0x243   : > { %v7941_v35 = vpop.f32.mrb[156].mxu1  ;;  %v7878_v52 = vpop.f32.mrb[157].mxu0 }
 0x244   : > { %v7879_v44 = vadd.f32 %v7878_v52, %v7877_v51  ;;  %v7942_v54 = vpop.f32.mrb[157].mxu1  ;;  %v7880_v31 = vpop.f32.mrb[158].mxu0 }
 0x245   : > { %v7943_v1 = vadd.f32 %v7942_v54, %v7941_v35  ;;  %v7944_v47 = vpop.f32.mrb[158].mxu1  ;;  %v7881_v49 = vpop.f32.mrb[159].mxu0 }
 0x246   : > { %v4108_v0 = vadd.f32 %v7879_v44, %v10053_v28  ;;  %v7882_v53 = vadd.f32 %v7881_v49, %v7880_v31  ;;  %v7945_v61 = vpop.f32.mrb[159].mxu1 }
 0x247   : > { %v7946_v36 = vadd.f32 %v7945_v61, %v7944_v47 }
 0x248   : > { %v10101_v8 = vadd.f32 %v7943_v1, %v4108_v0  ;;  %v4111_v2 = vadd.f32 %v7882_v53, %v10056_v60 }
 0x24a   : > { %v10104_v7 = vadd.f32 %v7946_v36, %v4111_v2  ;;  %v7963_v57 = vpop.f32.mrb[160].mxu0 }
 0x24b   : > { %v8027_v37 = vpop.f32.mrb[160].mxu1  ;;  %v7964_v15 = vpop.f32.mrb[161].mxu0 }
 0x24c   : > { %v7965_v59 = vadd.f32 %v7964_v15, %v7963_v57  ;;  %v8028_v14 = vpop.f32.mrb[161].mxu1  ;;  %v7966_v26 = vpop.f32.mrb[162].mxu0 }
 0x24d   : > { %v8029_v41 = vadd.f32 %v8028_v14, %v8027_v37  ;;  %v8030_v63 = vpop.f32.mrb[162].mxu1  ;;  %v7967_v18 = vpop.f32.mrb[163].mxu0 }
 0x24e   : > { %v4246_v28 = vadd.f32 %v7965_v59, %v10059_v58  ;;  %v7968_v4 = vadd.f32 %v7967_v18, %v7966_v26  ;;  %v8031_v42 = vpop.f32.mrb[163].mxu1 }
 0x24f   : > { %v8032_v10 = vadd.f32 %v8031_v42, %v8030_v63 }
 0x250   : > { %v10107_v40 = vadd.f32 %v8029_v41, %v4246_v28  ;;  %v4249_v60 = vadd.f32 %v7968_v4, %v10062_v48 }
 0x252   : > { %v10110_v6 = vadd.f32 %v8032_v10, %v4249_v60  ;;  %v7969_v13 = vpop.f32.mrb[164].mxu0 }
 0x253   : > { %v8033_v16 = vpop.f32.mrb[164].mxu1  ;;  %v7970_v25 = vpop.f32.mrb[165].mxu0 }
 0x254   : > { %v4405_v20 = vpack.c.bf16 %v10110_v6, %v10107_v40  ;;  %v7971_v3 = vadd.f32 %v7970_v25, %v7969_v13  ;;  %v8034_v29 = vpop.f32.mrb[165].mxu1  ;;  %v7972_v39 = vpop.f32.mrb[166].mxu0 }
 0x255   : > { %v8035_v58 = vadd.f32 %v8034_v29, %v8033_v16  ;;  %v8036_v24 = vpop.f32.mrb[166].mxu1  ;;  %v7973_v34 = vpop.f32.mrb[167].mxu0 }
 0x256   : > { %v4254_v21 = vadd.f32 %v7971_v3, %v10065_v17  ;;  %v7974_v23 = vadd.f32 %v7973_v34, %v7972_v39  ;;  %v8037_v32 = vpop.f32.mrb[167].mxu1  ;;  %7204 = vmatmul.mubr.msk.bf16.vlgmr.msra.gmra.mrb[192].mxu0 %vm4473_vm0, %v4405_v20 }
 0x257   : > { %v8038_v48 = vadd.f32 %v8037_v32, %v8036_v24  ;;  %4540 = vmatprep.mubr.bf16.mxu0 %v8842_v27 }
 0x258   : > { %v10117_v46 = vadd.f32 %v8035_v58, %v4254_v21  ;;  %v4257_v45 = vadd.f32 %v7974_v23, %v10068_v62 }
 0x25a   : > { %v10120_v11 = vadd.f32 %v8038_v48, %v4257_v45  ;;  %v7975_v9 = vpop.f32.mrb[168].mxu0 }
 0x25b   : > { %v8039_v56 = vpop.f32.mrb[168].mxu1  ;;  %v7976_v51 = vpop.f32.mrb[169].mxu0 }
 0x25c   : > { %v4406_v35 = vpack.c.bf16 %v10120_v11, %v10117_v46  ;;  %v7977_v17 = vadd.f32 %v7976_v51, %v7975_v9  ;;  %v8040_v52 = vpop.f32.mrb[169].mxu1  ;;  %v7978_v44 = vpop.f32.mrb[170].mxu0 }
 0x25d   : > { %v8041_v54 = vadd.f32 %v8040_v52, %v8039_v56  ;;  %v8042_v31 = vpop.f32.mrb[170].mxu1  ;;  %v7979_v1 = vpop.f32.mrb[171].mxu0 }
 0x25e   : > { %v4262_v47 = vadd.f32 %v7977_v17, %v10071_v30  ;;  %v7980_v49 = vadd.f32 %v7979_v1, %v7978_v44  ;;  %v8043_v0 = vpop.f32.mrb[171].mxu1  ;;  %7205 = vmatmul.mubr.msk.bf16.gmra.mrb[196].mxu0 %vm4473_vm0, %v4406_v35 }
 0x25f   : > { %v8044_v62 = vadd.f32 %v8043_v0, %v8042_v31  ;;  %4550 = vmatprep.mubr.bf16.mxu0 %v8842_v27 }
 0x260   : > { %v10127_v53 = vadd.f32 %v8041_v54, %v4262_v47  ;;  %v4265_v61 = vadd.f32 %v7980_v49, %v10074_v22 }
 0x262   : > { %v10130_v36 = vadd.f32 %v8044_v62, %v4265_v61  ;;  %v7981_v2 = vpop.f32.mrb[172].mxu0 }
 0x263   : > { %v8045_v57 = vpop.f32.mrb[172].mxu1  ;;  %v7982_v37 = vpop.f32.mrb[173].mxu0 }
 0x264   : > { %v4407_v15 = vpack.c.bf16 %v10130_v36, %v10127_v53  ;;  %v7983_v30 = vadd.f32 %v7982_v37, %v7981_v2  ;;  %v8046_v59 = vpop.f32.mrb[173].mxu1  ;;  %v7984_v14 = vpop.f32.mrb[174].mxu0 }
 0x265   : > { %v8047_v26 = vadd.f32 %v8046_v59, %v8045_v57  ;;  %v8048_v41 = vpop.f32.mrb[174].mxu1  ;;  %v7985_v63 = vpop.f32.mrb[175].mxu0 }
 0x266   : > { %v4270_v18 = vadd.f32 %v7983_v30, %v10077_v55  ;;  %v7986_v28 = vadd.f32 %v7985_v63, %v7984_v14  ;;  %v8049_v4 = vpop.f32.mrb[175].mxu1  ;;  %7206 = vmatmul.mubr.msk.bf16.gmra.mrb[200].mxu0 %vm4473_vm0, %v4407_v15 }
 0x267   : > { %v8050_v22 = vadd.f32 %v8049_v4, %v8048_v41  ;;  %4560 = vmatprep.mubr.bf16.mxu0 %v8842_v27 }
 0x268   : > { %v10137_v42 = vadd.f32 %v8047_v26, %v4270_v18  ;;  %v4273_v10 = vadd.f32 %v7986_v28, %v10080_v38 }
 0x26a   : > { %v10140_v60 = vadd.f32 %v8050_v22, %v4273_v10  ;;  %v7987_v13 = vpop.f32.mrb[176].mxu0 }
 0x26b   : > { %v8051_v16 = vpop.f32.mrb[176].mxu1  ;;  %v7988_v25 = vpop.f32.mrb[177].mxu0 }
 0x26c   : > { %v4408_v20 = vpack.c.bf16 %v10140_v60, %v10137_v42  ;;  %v7989_v55 = vadd.f32 %v7988_v25, %v7987_v13  ;;  %v8052_v3 = vpop.f32.mrb[177].mxu1  ;;  %v7990_v29 = vpop.f32.mrb[178].mxu0 }
 0x26d   : > { %v8053_v39 = vadd.f32 %v8052_v3, %v8051_v16  ;;  %v8054_v58 = vpop.f32.mrb[178].mxu1  ;;  %v7991_v24 = vpop.f32.mrb[179].mxu0 }
 0x26e   : > { %v4278_v34 = vadd.f32 %v7989_v55, %v10083_v12  ;;  %v7992_v21 = vadd.f32 %v7991_v24, %v7990_v29  ;;  %v8055_v23 = vpop.f32.mrb[179].mxu1  ;;  %7207 = vmatmul.mubr.msk.bf16.gmra.mrb[204].mxu0 %vm4473_vm0, %v4408_v20 }
 0x26f   : > { %v8056_v38 = vadd.f32 %v8055_v23, %v8054_v58  ;;  %4570 = vmatprep.mubr.bf16.mxu0 %v8842_v27 }
 0x270   : > { %v10147_v32 = vadd.f32 %v8053_v39, %v4278_v34  ;;  %v4281_v48 = vadd.f32 %v7992_v21, %v10086_v50 }
 0x272   : > { %v10150_v45 = vadd.f32 %v8056_v38, %v4281_v48  ;;  %v7993_v9 = vpop.f32.mrb[180].mxu0 }
 0x273   : > { %v8057_v56 = vpop.f32.mrb[180].mxu1  ;;  %v7994_v51 = vpop.f32.mrb[181].mxu0 }
 0x274   : > { %v4409_v35 = vpack.c.bf16 %v10150_v45, %v10147_v32  ;;  %v7995_v12 = vadd.f32 %v7994_v51, %v7993_v9  ;;  %v8058_v17 = vpop.f32.mrb[181].mxu1  ;;  %v7996_v52 = vpop.f32.mrb[182].mxu0 }
 0x275   : > { %v8059_v44 = vadd.f32 %v8058_v17, %v8057_v56  ;;  %v8060_v54 = vpop.f32.mrb[182].mxu1  ;;  %v7997_v31 = vpop.f32.mrb[183].mxu0  ;;  %v4423_v56 = vlaneseq }
 0x276   : > { %v4286_v1 = vadd.f32 %v7995_v12, %v10089_v5  ;;  %v7998_v47 = vadd.f32 %v7997_v31, %v7996_v52  ;;  %v8061_v49 = vpop.f32.mrb[183].mxu1  ;;  %7208 = vmatmul.mubr.msk.bf16.gmra.mrb[208].mxu0 %vm4473_vm0, %v4409_v35  ;;  %v4421_v35 = vld [vmem:[%s11175_s4] sm:$0x3] }
 0x277   : > { %v8062_v50 = vadd.f32 %v8061_v49, %v8060_v54  ;;  %4580 = vmatprep.mubr.bf16.mxu0 %v8842_v27 }
 0x278   : > { %v10157_v0 = vadd.f32 %v8059_v44, %v4286_v1  ;;  %v4289_v62 = vadd.f32 %v7998_v47, %v10092_v19 }
 0x27a   : > { %v10160_v61 = vadd.f32 %v8062_v50, %v4289_v62  ;;  %v7999_v2 = vpop.f32.mrb[184].mxu0 }
 0x27b   : > { %v8063_v57 = vpop.f32.mrb[184].mxu1  ;;  %v8000_v37 = vpop.f32.mrb[185].mxu0 }
 0x27c   : > { %v4410_v15 = vpack.c.bf16 %v10160_v61, %v10157_v0  ;;  %v8001_v5 = vadd.f32 %v8000_v37, %v7999_v2  ;;  %v8064_v30 = vpop.f32.mrb[185].mxu1  ;;  %v8002_v59 = vpop.f32.mrb[186].mxu0 }
 0x27d   : > { %v8065_v14 = vadd.f32 %v8064_v30, %v8063_v57  ;;  %v8066_v26 = vpop.f32.mrb[186].mxu1  ;;  %v8003_v41 = vpop.f32.mrb[187].mxu0 }
 0x27e   : > { %v4294_v63 = vadd.f32 %v8001_v5, %v10095_v43  ;;  %v8004_v18 = vadd.f32 %v8003_v41, %v8002_v59  ;;  %v8067_v28 = vpop.f32.mrb[187].mxu1  ;;  %7209 = vmatmul.mubr.msk.bf16.gmra.mrb[212].mxu0 %vm4473_vm0, %v4410_v15 }
 0x27f   : > { %v8068_v19 = vadd.f32 %v8067_v28, %v8066_v26  ;;  %4590 = vmatprep.mubr.bf16.mxu0 %v8842_v27 }
 0x280   : > { %v10167_v4 = vadd.f32 %v8065_v14, %v4294_v63  ;;  %v4297_v22 = vadd.f32 %v8004_v18, %v10098_v33 }
 0x282   : > { %v10170_v10 = vadd.f32 %v8068_v19, %v4297_v22  ;;  %v8005_v13 = vpop.f32.mrb[188].mxu0 }
 0x283   : > { %v8069_v16 = vpop.f32.mrb[188].mxu1  ;;  %v8006_v25 = vpop.f32.mrb[189].mxu0 }
 0x284   : > { %v4411_v20 = vpack.c.bf16 %v10170_v10, %v10167_v4  ;;  %v8007_v43 = vadd.f32 %v8006_v25, %v8005_v13  ;;  %v8070_v55 = vpop.f32.mrb[189].mxu1  ;;  %v8008_v3 = vpop.f32.mrb[190].mxu0 }
 0x285   : > { %v8071_v29 = vadd.f32 %v8070_v55, %v8069_v16  ;;  %v8072_v39 = vpop.f32.mrb[190].mxu1  ;;  %v8009_v58 = vpop.f32.mrb[191].mxu0 }
 0x286   : > { %v4302_v24 = vadd.f32 %v8007_v43, %v10101_v8  ;;  %v8010_v34 = vadd.f32 %v8009_v58, %v8008_v3  ;;  %v8073_v21 = vpop.f32.mrb[191].mxu1  ;;  %7210 = vmatmul.mubr.msk.bf16.gmra.mrb[216].mxu0 %vm4473_vm0, %v4411_v20  ;;  %v10185_v8 = vshrl.u32 %v4423_v56, 7 }
 0x287   : > { %v8074_v33 = vadd.f32 %v8073_v21, %v8072_v39  ;;  %4600 = vmatprep.mubr.bf16.mxu0 %v8842_v27 }
 0x288   : > { %v10177_v23 = vadd.f32 %v8071_v29, %v4302_v24  ;;  %v4305_v38 = vadd.f32 %v8010_v34, %v10104_v7  ;;  %v4425_v51 = vsub.s32 0, %v10185_v8  ;;  %v4429_v12 = vsub.s32 1, %v10185_v8 }
 0x28a   : > { %v10180_v48 = vadd.f32 %v8074_v33, %v4305_v38  ;;  %v10194_v7 = vrot.slane %v4421_v35, %v4425_v51  ;;  %v10198_v52 = vrot.slane %v4421_v35, %v4429_v12 }
 0x28c   : > { %v4412_v9 = vpack.c.bf16 %v10180_v48, %v10177_v23 }
 0x28e   : > { %7211 = vmatmul.mubr.msk.bf16.gmra.mrb[220].mxu0 %vm4473_vm0, %v4412_v9 }
 0x329   : > { %v4532_v17 = vpop.f32.mrb[192].mxu0 }
 0x32a   : > { %v4534_v44 = vpop.f32.mrb[193].mxu0  ;;  %v4533_v31 = vadd.f32 %v4532_v17, %v10194_v7 }
 0x32b   : > { %v4536_v54 = vpop.f32.mrb[194].mxu0  ;;  %v4535_v49 = vadd.f32 %v4534_v44, %v10198_v52 }
 0x32c   : > { %v4537_v1 = vadd.f32 %v4536_v54, %v10194_v7  ;;  %v4538_v47 = vpop.f32.mrb[195].mxu0 }
 0x32d   : > { %v4539_v50 = vadd.f32 %v4538_v47, %v10198_v52 }
 0x32e   : > { %v4612_v62 = vpack.c.bf16 %v4537_v1, %v4533_v31 }
 0x32f   : > { %v10204_v2 = vpack.c.bf16 %v4539_v50, %v4535_v49 }
 0x330   : > { %4642 = vrot.lane.b32.xlu0 %v4612_v62, %s8843_s1  ;;  %8227 = vmatprep.mubr.msk.bf16.mxu1 %vm4473_vm0, %v4612_v62 }
 0x331   : > { %v4542_v57 = vpop.f32.mrb[196].mxu0 }
 0x332   : > { %v4544_v37 = vpop.f32.mrb[197].mxu0  ;;  %v4543_v5 = vadd.f32 %v4542_v57, %v10194_v7 }
 0x333   : > { %v4546_v15 = vpop.f32.mrb[198].mxu0  ;;  %v4545_v14 = vadd.f32 %v4544_v37, %v10198_v52 }
 0x334   : > { %v4547_v30 = vadd.f32 %v4546_v15, %v10194_v7  ;;  %v4548_v59 = vpop.f32.mrb[199].mxu0 }
 0x335   : > { %v4549_v26 = vadd.f32 %v4548_v59, %v10198_v52 }
 0x336   : > { %v10212_v41 = vpack.c.bf16 %v4547_v30, %v4543_v5 }
 0x337   : > { %v10214_v63 = vpack.c.bf16 %v4549_v26, %v4545_v14 }
 0x338   : > { %4644 = vrot.lane.b32.xlu0 %v10212_v41, %s8843_s1 }
 0x339   : > { %v4552_v18 = vpop.f32.mrb[200].mxu0 }
 0x33a   : > { %v4554_v28 = vpop.f32.mrb[201].mxu0  ;;  %v4553_v22 = vadd.f32 %v4552_v18, %v10194_v7 }
 0x33b   : > { %v4556_v19 = vpop.f32.mrb[202].mxu0  ;;  %v4555_v25 = vadd.f32 %v4554_v28, %v10198_v52 }
 0x33c   : > { %v4557_v13 = vadd.f32 %v4556_v19, %v10194_v7  ;;  %v4558_v16 = vpop.f32.mrb[203].mxu0 }
 0x33d   : > { %v4559_v20 = vadd.f32 %v4558_v16, %v10198_v52 }
 0x33e   : > { %v10222_v43 = vpack.c.bf16 %v4557_v13, %v4553_v22 }
 0x33f   : > { %v10224_v55 = vpack.c.bf16 %v4559_v20, %v4555_v25 }
 0x340   : > { %4646 = vrot.lane.b32.xlu1 %v10222_v43, %s8843_s1 }
 0x341   : > { %v4562_v3 = vpop.f32.mrb[204].mxu0 }
 0x342   : > { %v4564_v29 = vpop.f32.mrb[205].mxu0  ;;  %v4563_v58 = vadd.f32 %v4562_v3, %v10194_v7 }
 0x343   : > { %v4566_v39 = vpop.f32.mrb[206].mxu0  ;;  %v4565_v21 = vadd.f32 %v4564_v29, %v10198_v52 }
 0x344   : > { %v4567_v24 = vadd.f32 %v4566_v39, %v10194_v7  ;;  %v4568_v34 = vpop.f32.mrb[207].mxu0 }
 0x345   : > { %v4569_v33 = vadd.f32 %v4568_v34, %v10198_v52 }
 0x346   : > { %v10232_v38 = vpack.c.bf16 %v4567_v24, %v4563_v58 }
 0x347   : > { %v10234_v9 = vpack.c.bf16 %v4569_v33, %v4565_v21 }
 0x348   : > { %4648 = vrot.lane.b32.xlu1 %v10232_v38, %s8843_s1 }
 0x349   : > { %v4572_v56 = vpop.f32.mrb[208].mxu0 }
 0x34a   : > { %v4574_v35 = vpop.f32.mrb[209].mxu0  ;;  %v4573_v44 = vadd.f32 %v4572_v56, %v10194_v7 }
 0x34b   : > { %v4576_v17 = vpop.f32.mrb[210].mxu0  ;;  %v4575_v1 = vadd.f32 %v4574_v35, %v10198_v52 }
 0x34c   : > { %v4577_v54 = vadd.f32 %v4576_v17, %v10194_v7  ;;  %v4578_v31 = vpop.f32.mrb[211].mxu0 }
 0x34d   : > { %v4579_v47 = vadd.f32 %v4578_v31, %v10198_v52 }
 0x34e   : > { %v10242_v49 = vpack.c.bf16 %v4577_v54, %v4573_v44 }
 0x34f   : > { %v10244_v50 = vpack.c.bf16 %v4579_v47, %v4575_v1 }
 0x350   : > { %4650 = vrot.lane.b32.xlu0 %v10242_v49, %s8843_s1 }
 0x351   : > { %v4582_v62 = vpop.f32.mrb[212].mxu0 }
 0x352   : > { %v4584_v57 = vpop.f32.mrb[213].mxu0  ;;  %v4583_v15 = vadd.f32 %v4582_v62, %v10194_v7 }
 0x353   : > { %v4586_v37 = vpop.f32.mrb[214].mxu0  ;;  %v4585_v59 = vadd.f32 %v4584_v57, %v10198_v52 }
 0x354   : > { %v4587_v5 = vadd.f32 %v4586_v37, %v10194_v7  ;;  %v4588_v30 = vpop.f32.mrb[215].mxu0 }
 0x355   : > { %v4589_v14 = vadd.f32 %v4588_v30, %v10198_v52 }
 0x356   : > { %v10252_v26 = vpack.c.bf16 %v4587_v5, %v4583_v15 }
 0x357   : > { %v10254_v18 = vpack.c.bf16 %v4589_v14, %v4585_v59 }
 0x358   : > { %4652 = vrot.lane.b32.xlu1 %v10252_v26, %s8843_s1 }
 0x359   : > { %v4592_v28 = vpop.f32.mrb[216].mxu0 }
 0x35a   : > { %v4594_v19 = vpop.f32.mrb[217].mxu0  ;;  %v4593_v13 = vadd.f32 %v4592_v28, %v10194_v7 }
 0x35b   : > { %v4596_v22 = vpop.f32.mrb[218].mxu0  ;;  %v4595_v20 = vadd.f32 %v4594_v19, %v10198_v52 }
 0x35c   : > { %v4597_v16 = vadd.f32 %v4596_v22, %v10194_v7  ;;  %v4598_v25 = vpop.f32.mrb[219].mxu0 }
 0x35d   : > { %v4599_v3 = vadd.f32 %v4598_v25, %v10198_v52 }
 0x35e   : > { %v4618_v29 = vpack.c.bf16 %v4597_v16, %v4593_v13 }
 0x35f   : > { %v10262_v39 = vpack.c.bf16 %v4599_v3, %v4595_v20 }
 0x360   : > { %4654 = vrot.lane.b32.xlu0 %v4618_v29, %s8843_s1 }
 0x361   : > { %v4602_v58 = vpop.f32.mrb[220].mxu0 }
 0x362   : > { %v4604_v24 = vpop.f32.mrb[221].mxu0  ;;  %v4603_v21 = vadd.f32 %v4602_v58, %v10194_v7 }
 0x363   : > { %v4606_v34 = vpop.f32.mrb[222].mxu0  ;;  %v4605_v35 = vadd.f32 %v4604_v24, %v10198_v52 }
 0x364   : > { %v4607_v33 = vadd.f32 %v4606_v34, %v10194_v7  ;;  %v4608_v56 = vpop.f32.mrb[223].mxu0 }
 0x365   : > { %v4609_v17 = vadd.f32 %v4608_v56, %v10198_v52 }
 0x366   : > { %v4619_v44 = vpack.c.bf16 %v4607_v33, %v4603_v21 }
 0x367   : > { %v4627_v54 = vpack.c.bf16 %v4609_v17, %v4605_v35 }
 0x368   : > { %4656 = vrot.lane.b32.xlu1 %v4619_v44, %s8843_s1 }
 0x3a2   : > { %v4643_v31 = vpop.permute.xlu0 %4642 }
 0x3a3   : > { %v4683_v1 = vsel %vm4473_vm0, %v4643_v31, 0  ;;  %8371 = vmatprep.subr.msk.bf16.mxu1 %vm4473_vm0, %v4643_v31 }
 0x3a4   : > { %8212 = vmatpush3.bf16.xpose.msra.mxu1 %v4683_v1 }
 0x3aa   : > { %v4645_v47 = vpop.permute.xlu0 %4644 }
 0x3ab   : > { %v4686_v62 = vsel %vm4473_vm0, %v4645_v47, 0  ;;  %8372 = vmatprep.subr.msk.bf16.mxu1 %vm4473_vm0, %v4645_v47 }
 0x3ac   : > { %8214 = vmatpush3.bf16.xpose.msra.mxu1 %v4686_v62 }
 0x3b2   : > { %v4647_v7 = vpop.permute.xlu1 %4646 }
 0x3b3   : > { %v4689_v57 = vsel %vm4473_vm0, %v4647_v7, 0  ;;  %8373 = vmatprep.subr.msk.bf16.mxu1 %vm4473_vm0, %v4647_v7 }
 0x3b4   : > { %8216 = vmatpush3.bf16.xpose.msra.mxu1 %v4689_v57 }
 0x3ba   : > { %v4649_v52 = vpop.permute.xlu1 %4648 }
 0x3bb   : > { %v4692_v37 = vsel %vm4473_vm0, %v4649_v52, 0  ;;  %8374 = vmatprep.subr.msk.bf16.mxu1 %vm4473_vm0, %v4649_v52 }
 0x3bc   : > { %8218 = vmatpush3.bf16.xpose.msra.mxu1 %v4692_v37 }
 0x3c2   : > { %v4651_v15 = vpop.permute.xlu0 %4650 }
 0x3c3   : > { %v4695_v5 = vsel %vm4473_vm0, %v4651_v15, 0  ;;  %8375 = vmatprep.subr.msk.bf16.mxu1 %vm4473_vm0, %v4651_v15 }
 0x3c4   : > { %8220 = vmatpush3.bf16.xpose.msra.mxu1 %v4695_v5 }
 0x3ca   : > { %v4653_v30 = vpop.permute.xlu1 %4652 }
 0x3cb   : > { %v4698_v59 = vsel %vm4473_vm0, %v4653_v30, 0  ;;  %8376 = vmatprep.subr.msk.bf16.mxu1 %vm4473_vm0, %v4653_v30 }
 0x3cc   : > { %8222 = vmatpush3.bf16.xpose.msra.mxu1 %v4698_v59 }
 0x3d2   : > { %v4655_v14 = vpop.permute.xlu0 %4654 }
 0x3d3   : > { %v4701_v28 = vsel %vm4473_vm0, %v4655_v14, 0  ;;  %8377 = vmatprep.subr.msk.bf16.mxu1 %vm4473_vm0, %v4655_v14 }
 0x3d4   : > { %8224 = vmatpush3.bf16.xpose.msra.mxu1 %v4701_v28 }
 0x3da   : > { %v4657_v19 = vpop.permute.xlu1 %4656 }
 0x3db   : > { %v4704_v22 = vsel %vm4473_vm0, %v4657_v19, 0  ;;  %8378 = vmatprep.subr.msk.bf16.mxu1 %vm4473_vm0, %v4657_v19 }
 0x3dc   : > { %8226 = vmatpush3.bf16.xpose.msra.mxu1 %v4704_v22 }
 0x3dd   : > { %8243 = vmatprep.subr.bf16.mxu1 %v10204_v2 }
 0x3e3   : > { %8228 = vmatmul.mubr.msk.bf16.vlgmr.msra.gmra.mrb[192].mxu1 %vm4473_vm0, %v10212_v41 }
 0x3e4   : > { %8231 = vmatprep.mubr.msk.bf16.mxu1 %vm4473_vm0, %v10222_v43  ;;  %8244 = vmatpush3.bf16.msra.mxu1 %v10204_v2  ;;  %v7212_v2 = vld [vmem:[%s11186_s15] ss:$0 sm:$0xff] }
 0x3e5   : > { %8245 = vmatprep.subr.bf16.mxu1 %v10214_v63 }
 0x3e8   : > { %8246 = vmatpush3.bf16.msra.mxu1 %v10214_v63 }
 0x3e9   : > { %8247 = vmatprep.subr.bf16.mxu1 %v10224_v55 }
 0x3eb   : > { %8232 = vmatmul.mubr.msk.bf16.gmra.mrb[196].mxu1 %vm4473_vm0, %v10232_v38 }
 0x3ec   : > { %8235 = vmatprep.mubr.msk.bf16.mxu1 %vm4473_vm0, %v10242_v49  ;;  %8248 = vmatpush3.bf16.msra.mxu1 %v10224_v55 }
 0x3ed   : > { %8249 = vmatprep.subr.bf16.mxu1 %v10234_v9 }
 0x3f0   : > { %8250 = vmatpush3.bf16.msra.mxu1 %v10234_v9 }
 0x3f1   : > { %8251 = vmatprep.subr.bf16.mxu1 %v10244_v50 }
 0x3f3   : > { %8236 = vmatmul.mubr.msk.bf16.gmra.mrb[200].mxu1 %vm4473_vm0, %v10252_v26 }
 0x3f4   : > { %8239 = vmatprep.mubr.msk.bf16.mxu1 %vm4473_vm0, %v4618_v29  ;;  %8252 = vmatpush3.bf16.msra.mxu1 %v10244_v50 }
 0x3f5   : > { %8253 = vmatprep.subr.bf16.mxu1 %v10254_v18 }
 0x3f8   : > { %8254 = vmatpush3.bf16.msra.mxu1 %v10254_v18 }
 0x3f9   : > { %8255 = vmatprep.subr.bf16.mxu1 %v10262_v39 }
 0x3fb   : > { %8240 = vmatmul.mubr.msk.bf16.gmra.mrb[204].mxu1 %vm4473_vm0, %v4619_v44 }
 0x3fc   : > { %8256 = vmatpush3.bf16.msra.mxu1 %v10262_v39 }
 0x3fd   : > { %8257 = vmatprep.subr.bf16.mxu1 %v4627_v54 }
 0x400   : > { %8258 = vmatpush3.bf16.msra.mxu1 %v4627_v54 }
 0x4b6   : > { %v8229_v41 = vpop.f32.mrb[192].mxu1 }
 0x4b7   : > { %v4740_v63 = vpop.f32.mrb[193].mxu1  ;;  %v4749_v49 = vadd.f32 %v8229_v41, %v7212_v2 }
 0x4b8   : > { %v4741_v43 = vadd.f32 %v7212_v2, %v4740_v63  ;;  %v8230_v55 = vpop.f32.mrb[194].mxu1 }
 0x4b9   : > { %v4743_v38 = vpop.f32.mrb[195].mxu1  ;;  %v4752_v18 = vadd.f32 %v8230_v55, %v7212_v2 }
 0x4ba   : > { %v4744_v9 = vadd.f32 %v7212_v2, %v4743_v38  ;;  %4803 = vmax.xlane.f32.xlu0 %v4741_v43 }
 0x4bc   : > { %4805 = vmax.xlane.f32.xlu1 %v4744_v9 }
 0x4be   : > { %v8233_v50 = vpop.f32.mrb[196].mxu1  ;;  %4807 = vmax.xlane.f32.xlu0 %v4749_v49 }
 0x4bf   : > { %v4756_v26 = vpop.f32.mrb[197].mxu1  ;;  %v4765_v20 = vadd.f32 %v8233_v50, %v7212_v2 }
 0x4c0   : > { %v4757_v13 = vadd.f32 %v7212_v2, %v4756_v26  ;;  %v8234_v16 = vpop.f32.mrb[198].mxu1 }
 0x4c1   : > { %v4759_v25 = vpop.f32.mrb[199].mxu1  ;;  %v10315_v58 = vadd.f32 %v8234_v16, %v7212_v2 }
 0x4c2   : > { %4811 = vmax.xlane.f32.xlu1 %v4757_v13  ;;  %4809 = vmax.xlane.f32.xlu0 %v4752_v18  ;;  %v4760_v3 = vadd.f32 %v7212_v2, %v4759_v25 }
 0x4c6   : > { %v8237_v29 = vpop.f32.mrb[200].mxu1  ;;  %4815 = vmax.xlane.f32.xlu1 %v4765_v20  ;;  %4813 = vmax.xlane.f32.xlu0 %v4760_v3 }
 0x4c7   : > { %v4772_v39 = vpop.f32.mrb[201].mxu1  ;;  %v10318_v33 = vadd.f32 %v8237_v29, %v7212_v2 }
 0x4c8   : > { %v4773_v24 = vadd.f32 %v7212_v2, %v4772_v39  ;;  %v8238_v34 = vpop.f32.mrb[202].mxu1 }
 0x4c9   : > { %v4775_v21 = vpop.f32.mrb[203].mxu1  ;;  %v10324_v44 = vadd.f32 %v8238_v34, %v7212_v2 }
 0x4ca   : > { %4819 = vmax.xlane.f32.xlu1 %v4773_v24  ;;  %4817 = vmax.xlane.f32.xlu0 %v10315_v58  ;;  %v10320_v56 = vadd.f32 %v7212_v2, %v4775_v21 }
 0x4ce   : > { %v8241_v35 = vpop.f32.mrb[204].mxu1  ;;  %4823 = vmax.xlane.f32.xlu1 %v10318_v33  ;;  %4821 = vmax.xlane.f32.xlu0 %v10320_v56 }
 0x4cf   : > { %v4788_v17 = vpop.f32.mrb[205].mxu1  ;;  %v10330_v47 = vadd.f32 %v8241_v35, %v7212_v2 }
 0x4d0   : > { %v10326_v54 = vadd.f32 %v7212_v2, %v4788_v17  ;;  %v8242_v31 = vpop.f32.mrb[206].mxu1 }
 0x4d1   : > { %v4791_v1 = vpop.f32.mrb[207].mxu1  ;;  %v10336_v7 = vadd.f32 %v8242_v31, %v7212_v2 }
 0x4d2   : > { %4827 = vmax.xlane.f32.xlu1 %v10326_v54  ;;  %4825 = vmax.xlane.f32.xlu0 %v10324_v44  ;;  %v10332_v62 = vadd.f32 %v7212_v2, %v4791_v1 }
 0x4d6   : > { %4831 = vmax.xlane.f32.xlu1 %v10330_v47  ;;  %4829 = vmax.xlane.f32.xlu0 %v10332_v62 }
 0x4da   : > { %4833 = vmax.xlane.f32.xlu0 %v10336_v7 }
 0x547   : > { %v4804_v57 = vpop.xlane.xlu0 %4803 }
 0x548   : > { %v4835_v52 = vsub.f32 %v4741_v43, %v4804_v57 }
 0x549   : > { %v4806_v37 = vpop.xlane.xlu1 %4805 }
 0x54a   : > { %v4851_v15 = vmul.f32 1.442695, %v4835_v52  ;;  %v4836_v5 = vsub.f32 %v4744_v9, %v4806_v37 }
 0x54b   : > { %v4808_v30 = vpop.xlane.xlu0 %4807 }
 0x54c   : > { %8640 = vpow2.f32 %v4851_v15  ;;  %v4853_v59 = vmul.f32 1.442695, %v4836_v5  ;;  %v4837_v14 = vsub.f32 %v4749_v49, %v4808_v30 }
 0x54e   : > { %8642 = vpow2.f32 %v4853_v59  ;;  %v4855_v28 = vmul.f32 1.442695, %v4837_v14 }
 0x54f   : > { %v4812_v19 = vpop.xlane.xlu1 %4811  ;;  %v4810_v22 = vpop.xlane.xlu0 %4809 }
 0x550   : > { %8644 = vpow2.f32 %v4855_v28  ;;  %v4839_v41 = vsub.f32 %v4757_v13, %v4812_v19  ;;  %v4838_v63 = vsub.f32 %v4752_v18, %v4810_v22 }
 0x552   : > { %v4859_v2 = vmul.f32 1.442695, %v4839_v41  ;;  %v4857_v55 = vmul.f32 1.442695, %v4838_v63 }
 0x553   : > { %v4816_v38 = vpop.xlane.xlu1 %4815  ;;  %v4814_v50 = vpop.xlane.xlu0 %4813 }
 0x554   : > { %8646 = vpow2.f32 %v4859_v2  ;;  %v4841_v43 = vsub.f32 %v4765_v20, %v4816_v38  ;;  %v4840_v26 = vsub.f32 %v4760_v3, %v4814_v50 }
 0x555   : > { %8648 = vpow2.f32 %v4857_v55 }
 0x556   : > { %v8641_v9 = vpop.eup %8640  ;;  %v4863_v16 = vmul.f32 1.442695, %v4841_v43  ;;  %v4861_v25 = vmul.f32 1.442695, %v4840_v26 }
 0x557   : > { %v4820_v29 = vpop.xlane.xlu1 %4819  ;;  %4883 = vadd.xlane.f32.xlu1 %v8641_v9  ;;  %v4818_v49 = vpop.xlane.xlu0 %4817 }
 0x558   : > { %v8643_v39 = vpop.eup %8642  ;;  %8650 = vpow2.f32 %v4863_v16  ;;  %v4843_v34 = vsub.f32 %v4773_v24, %v4820_v29  ;;  %v4842_v13 = vsub.f32 %v10315_v58, %v4818_v49 }
 0x559   : > { %8652 = vpow2.f32 %v4861_v25  ;;  %4885 = vadd.xlane.f32.xlu0 %v8643_v39  ;;  %v4915_v18 = vpack.c.bf16 %v8643_v39, %v8641_v9 }
 0x55a   : > { %v8645_v21 = vpop.eup %8644  ;;  %v4867_v35 = vmul.f32 1.442695, %v4843_v34  ;;  %v4865_v17 = vmul.f32 1.442695, %v4842_v13 }
 0x55b   : > { %v4824_v20 = vpop.xlane.xlu1 %4823  ;;  %8259 = vmatprep.mubr.bf16.mxu1 %v4915_v18  ;;  %4887 = vadd.xlane.f32.xlu1 %v8645_v21  ;;  %v4822_v3 = vpop.xlane.xlu0 %4821 }
 0x55c   : > { %8654 = vpow2.f32 %v4867_v35  ;;  %v4845_v31 = vsub.f32 %v10318_v33, %v4824_v20  ;;  %v4844_v1 = vsub.f32 %v10320_v56, %v4822_v3  ;;  %v8597_v35 = vld [vmem:[%s11176_s5 + $0x8] sm:$0xff]   ;;  %v8599_v20 = vld [vmem:[%s11176_s5 + $0x18] sm:$0xff]  }
 0x55d   : > { %8656 = vpow2.f32 %v4865_v17  ;;  %v8598_v17 = vld [vmem:[%s11176_s5 + $0x10] sm:$0xff]   ;;  %v8600_v3 = vld [vmem:[%s11178_s7] ss:$8 sps:$4 sm:$0xff]  }
 0x55e   : > { %v8647_v57 = vpop.eup %8646  ;;  %v4871_v24 = vmul.f32 1.442695, %v4845_v31  ;;  %v4869_v52 = vmul.f32 1.442695, %v4844_v1  ;;  %v8602_v31 = vld [vmem:[%s11178_s7 + $0x4] ss:$8 sps:$4 sm:$0xff]  }
 0x55f   : > { %v8649_v58 = vpop.eup %8648  ;;  %v4828_v37 = vpop.xlane.xlu1 %4827  ;;  %4891 = vadd.xlane.f32.xlu1 %v8647_v57  ;;  %v8605_v1 = vld [vmem:[%s11178_s7 + $0x14] ss:$8 sps:$4 sm:$0xff]   ;;  %5344 = vmatprep.subr.bf16.mxu1 %v8602_v31 }
 0x560   : > { %v4826_v15 = vpop.xlane.xlu0 %4825  ;;  %8658 = vpow2.f32 %v4871_v24  ;;  %v4847_v5 = vsub.f32 %v10326_v54, %v4828_v37  ;;  %4889 = vadd.xlane.f32.xlu0 %v8649_v58  ;;  %v4916_v59 = vpack.c.bf16 %v8649_v58, %v8645_v21  ;;  %v8596_v21 = vld [vmem:[%s11176_s5] sm:$0xff]  }
 0x561   : > { %v4846_v30 = vsub.f32 %v10324_v44, %v4826_v15  ;;  %8660 = vpow2.f32 %v4869_v52  ;;  %8275 = vmatprep.subr.bf16.mxu0 %v8596_v21  ;;  %v8608_v24 = vld [vmem:[%s11178_s7 + $0x24] ss:$8 sps:$4 sm:$0xff]   ;;  %v8606_v52 = vld [vmem:[%s11178_s7 + $0x20] ss:$8 sps:$4 sm:$0xff]  }
 0x562   : > { %v8651_v14 = vpop.eup %8650  ;;  %v4875_v33 = vmul.f32 1.442695, %v4847_v5  ;;  %8260 = vmatmul.mubr.bf16.vlgmr.msra.gmra.mrb[208].mxu1 %v4916_v59  ;;  %8276 = vmatpush3.bf16.msra.mxu0 %v8596_v21 }
 0x563   : > { %v4873_v28 = vmul.f32 1.442695, %v4846_v30  ;;  %v8653_v56 = vpop.eup %8652  ;;  %v4832_v19 = vpop.xlane.xlu1 %4831  ;;  %4895 = vadd.xlane.f32.xlu1 %v8651_v14  ;;  %8277 = vmatprep.subr.bf16.mxu0 %v8597_v35 }
 0x564   : > { %v4830_v22 = vpop.xlane.xlu0 %4829  ;;  %8662 = vpow2.f32 %v4875_v33  ;;  %v4849_v41 = vsub.f32 %v10330_v47, %v4832_v19  ;;  %4893 = vadd.xlane.f32.xlu0 %v8653_v56  ;;  %v4917_v54 = vpack.c.bf16 %v8653_v56, %v8647_v57  ;;  %5345 = vmatpush1.bf16.msra.mxu1 %v8600_v3  ;;  %v8603_v57 = vld [vmem:[%s11178_s7 + $0x10] ss:$8 sps:$4 sm:$0xff]  }
 0x565   : > { %v4848_v63 = vsub.f32 %v10332_v62, %v4830_v22  ;;  %8664 = vpow2.f32 %v4873_v28  ;;  %5346 = vmatprep.subr.bf16.mxu1 %v8605_v1 }
 0x566   : > { %v8655_v2 = vpop.eup %8654  ;;  %v4879_v44 = vmul.f32 1.442695, %v4849_v41  ;;  %8263 = vmatprep.mubr.bf16.mxu1 %v4917_v54  ;;  %8278 = vmatpush3.bf16.msra.mxu0 %v8597_v35 }
 0x567   : > { %v4877_v55 = vmul.f32 1.442695, %v4848_v63  ;;  %v8657_v38 = vpop.eup %8656  ;;  %4899 = vadd.xlane.f32.xlu1 %v8655_v2  ;;  %8279 = vmatprep.subr.bf16.mxu0 %v8598_v17 }
 0x568   : > { %v4834_v50 = vpop.xlane.xlu0 %4833  ;;  %8666 = vpow2.f32 %v4879_v44  ;;  %4897 = vadd.xlane.f32.xlu0 %v8657_v38  ;;  %v4918_v26 = vpack.c.bf16 %v8657_v38, %v8651_v14  ;;  %5347 = vmatpush1.bf16.msra.mxu1 %v8603_v57 }
 0x569   : > { %v4850_v43 = vsub.f32 %v10336_v7, %v4834_v50  ;;  %8668 = vpow2.f32 %v4877_v55  ;;  %5348 = vmatprep.subr.bf16.mxu1 %v8608_v24 }
 0x56a   : > { %v8659_v9 = vpop.eup %8658  ;;  %8264 = vmatmul.mubr.bf16.gmra.mrb[212].mxu1 %v4918_v26  ;;  %8280 = vmatpush3.bf16.msra.mxu0 %v8598_v17 }
 0x56b   : > { %v4881_v47 = vmul.f32 1.442695, %v4850_v43  ;;  %v8661_v16 = vpop.eup %8660  ;;  %4903 = vadd.xlane.f32.xlu1 %v8659_v9  ;;  %8281 = vmatprep.subr.bf16.mxu0 %v8599_v20 }
 0x56c   : > { %4901 = vadd.xlane.f32.xlu0 %v8661_v16  ;;  %v4919_v62 = vpack.c.bf16 %v8661_v16, %v8655_v2  ;;  %5349 = vmatpush1.bf16.msra.mxu1 %v8606_v52 }
 0x56d   : > { %8670 = vpow2.f32 %v4881_v47 }
 0x56e   : > { %v8663_v25 = vpop.eup %8662  ;;  %8267 = vmatprep.mubr.bf16.mxu1 %v4919_v62  ;;  %8282 = vmatpush3.bf16.msra.mxu0 %v8599_v20 }
 0x56f   : > { %v8665_v29 = vpop.eup %8664  ;;  %4907 = vadd.xlane.f32.xlu1 %v8663_v25 }
 0x570   : > { %4905 = vadd.xlane.f32.xlu0 %v8665_v29  ;;  %v4920_v49 = vpack.c.bf16 %v8665_v29, %v8659_v9 }
 0x572   : > { %v8667_v39 = vpop.eup %8666  ;;  %8268 = vmatmul.mubr.bf16.gmra.mrb[216].mxu1 %v4920_v49 }
 0x573   : > { %v8669_v34 = vpop.eup %8668  ;;  %4911 = vadd.xlane.f32.xlu1 %v8667_v39 }
 0x574   : > { %4909 = vadd.xlane.f32.xlu0 %v8669_v34  ;;  %v4921_v7 = vpack.c.bf16 %v8669_v34, %v8663_v25 }
 0x576   : > { %8271 = vmatprep.mubr.bf16.mxu1 %v4921_v7 }
 0x577   : > { %v8671_v13 = vpop.eup %8670 }
 0x578   : > { %v4922_v18 = vpack.c.bf16 %v8671_v13, %v8667_v39  ;;  %4913 = vadd.xlane.f32.xlu0 %v8671_v13 }
 0x57a   : > { %8272 = vmatmul.mubr.bf16.gmra.mrb[220].mxu1 %v4922_v18 }
 0x57b   : > { %5376 = vmatprep.mubr.bf16.mxu1 %v8842_v27 }
 0x5e4   : > { %v4884_v58 = vpop.xlane.xlu1 %4883 }
 0x5e5   : > { %8672 = vrcp.f32 %v4884_v58 }
 0x5e6   : > { %v4886_v37 = vpop.xlane.xlu0 %4885 }
 0x5e8   : > { %v4888_v15 = vpop.xlane.xlu1 %4887 }
 0x5e9   : > { %8674 = vrcp.f32 %v4888_v15 }
 0x5ec   : > { %v4892_v30 = vpop.xlane.xlu1 %4891 }
 0x5ed   : > { %v4890_v5 = vpop.xlane.xlu0 %4889 }
 0x5ee   : > { %8676 = vrcp.f32 %v4890_v5 }
 0x5ef   : > { %8678 = vrcp.f32 %v4886_v37  ;;  %v8673_v19 = vpop.eup %8672 }
 0x5f0   : > { %v4896_v14 = vpop.xlane.xlu1 %4895  ;;  %8680 = vrcp.f32 %v4892_v30 }
 0x5f1   : > { %v4894_v59 = vpop.xlane.xlu0 %4893  ;;  %8682 = vrcp.f32 %v4896_v14 }
 0x5f3   : > { %v8675_v63 = vpop.eup %8674 }
 0x5f4   : > { %v4900_v28 = vpop.xlane.xlu1 %4899 }
 0x5f5   : > { %v4898_v33 = vpop.xlane.xlu0 %4897 }
 0x5f6   : > { %8684 = vrcp.f32 %v4898_v33 }
 0x5f7   : > { %8686 = vrcp.f32 %v4894_v59 }
 0x5f8   : > { %v4904_v22 = vpop.xlane.xlu1 %4903  ;;  %v8677_v44 = vpop.eup %8676  ;;  %8688 = vrcp.f32 %v4900_v28 }
 0x5f9   : > { %v4902_v56 = vpop.xlane.xlu0 %4901  ;;  %v8679_v38 = vpop.eup %8678  ;;  %8690 = vrcp.f32 %v4904_v22 }
 0x5fa   : > { %v8681_v49 = vpop.eup %8680 }
 0x5fb   : > { %v8683_v34 = vpop.eup %8682 }
 0x5fc   : > { %v4908_v62 = vpop.xlane.xlu1 %4907 }
 0x5fd   : > { %v4906_v54 = vpop.xlane.xlu0 %4905 }
 0x5fe   : > { %8692 = vrcp.f32 %v4906_v54 }
 0x5ff   : > { %8694 = vrcp.f32 %v4902_v56 }
 0x600   : > { %v8685_v13 = vpop.eup %8684  ;;  %v4912_v3 = vpop.xlane.xlu1 %4911  ;;  %8696 = vrcp.f32 %v4908_v62 }
 0x601   : > { %v4910_v29 = vpop.xlane.xlu0 %4909  ;;  %v8687_v21 = vpop.eup %8686  ;;  %8698 = vrcp.f32 %v4912_v3 }
 0x602   : > { %v8689_v58 = vpop.eup %8688 }
 0x603   : > { %v8691_v15 = vpop.eup %8690 }
 0x605   : > { %v4914_v57 = vpop.xlane.xlu0 %4913 }
 0x606   : > { %8700 = vrcp.f32 %v4914_v57 }
 0x607   : > { %8702 = vrcp.f32 %v4910_v29 }
 0x608   : > { %v8693_v30 = vpop.eup %8692 }
 0x609   : > { %v8695_v14 = vpop.eup %8694 }
 0x60a   : > { %v8697_v54 = vpop.eup %8696 }
 0x635   : > { %v8261_v41 = vpop.f32.mrb[208].mxu1 }
 0x636   : > { %v4957_v2 = vpop.f32.mrb[209].mxu1  ;;  %v5038_v50 = vmul.f32 %v8675_v63, %v8261_v41 }
 0x637   : > { %v8262_v55 = vpop.f32.mrb[210].mxu1  ;;  %v5036_v9 = vmul.f32 %v8673_v19, %v4957_v2 }
 0x638   : > { %v5039_v43 = vmul.f32 %v8677_v44, %v8262_v55  ;;  %v4960_v26 = vpop.f32.mrb[211].mxu1  ;;  %v8699_v44 = vpop.eup %8698 }
 0x639   : > { %v5037_v47 = vmul.f32 %v8679_v38, %v4960_v26  ;;  %v8701_v38 = vpop.eup %8700 }
 0x63a   : > { %v5053_v16 = vpack.c.bf16 %v5039_v43, %v5038_v50  ;;  %v8703_v43 = vpop.eup %8702 }
 0x63b   : > { %v5052_v25 = vpack.c.bf16 %v5037_v47, %v5036_v9 }
 0x63d   : > { %v8265_v39 = vpop.f32.mrb[212].mxu1  ;;  %8283 = vmatprep.mubr.msk.bf16.mxu0 %vm4473_vm0, %v5052_v25 }
 0x63e   : > { %v4973_v7 = vpop.f32.mrb[213].mxu1  ;;  %8284 = vmatmul.mubr.msk.bf16.vlgmr.msra.gmra.mrb[224].mxu0 %vm4473_vm0, %v5053_v16  ;;  %v5042_v35 = vmul.f32 %v8683_v34, %v8265_v39  ;;  %v8609_v39 = vld [vmem:[%s11178_s7 + $0x30] ss:$8 sps:$4 sm:$0xff]  }
 0x63f   : > { %v8266_v18 = vpop.f32.mrb[214].mxu1  ;;  %v5040_v31 = vmul.f32 %v8681_v49, %v4973_v7  ;;  %v8611_v49 = vld [vmem:[%s11178_s7 + $0x34] ss:$8 sps:$4 sm:$0xff]  }
 0x640   : > { %v5043_v17 = vmul.f32 %v8685_v13, %v8266_v18  ;;  %v4976_v20 = vpop.f32.mrb[215].mxu1  ;;  %5350 = vmatprep.subr.bf16.mxu1 %v8611_v49 }
 0x641   : > { %v5041_v1 = vmul.f32 %v8687_v21, %v4976_v20  ;;  %5351 = vmatpush1.bf16.msra.mxu1 %v8609_v39  ;;  %v10396_v21 = vld [vmem:[%s11177_s6] ss:$0 sm:$0xff]  ;;  %v8615_v39 = vld [vmem:[%s11180_s9 + $0x8] sm:$0xff]  }
 0x642   : > { %v5055_v24 = vpack.c.bf16 %v5043_v17, %v5042_v35 }
 0x643   : > { %v5054_v52 = vpack.c.bf16 %v5041_v1, %v5040_v31 }
 0x645   : > { %v8269_v37 = vpop.f32.mrb[216].mxu1  ;;  %8287 = vmatprep.mubr.msk.bf16.mxu0 %vm4473_vm0, %v5054_v52 }
 0x646   : > { %v4989_v5 = vpop.f32.mrb[217].mxu1  ;;  %8288 = vmatmul.mubr.msk.bf16.gmra.mrb[228].mxu0 %vm4473_vm0, %v5055_v24  ;;  %v5046_v33 = vmul.f32 %v8691_v15, %v8269_v37 }
 0x647   : > { %v8270_v59 = vpop.f32.mrb[218].mxu1  ;;  %v5044_v19 = vmul.f32 %v8689_v58, %v4989_v5 }
 0x648   : > { %v5047_v28 = vmul.f32 %v8693_v30, %v8270_v59  ;;  %v4992_v56 = vpop.f32.mrb[219].mxu1 }
 0x649   : > { %v5045_v22 = vmul.f32 %v8695_v14, %v4992_v56 }
 0x64a   : > { %v5057_v41 = vpack.c.bf16 %v5047_v28, %v5046_v33 }
 0x64b   : > { %v5056_v63 = vpack.c.bf16 %v5045_v22, %v5044_v19 }
 0x64d   : > { %v8273_v2 = vpop.f32.mrb[220].mxu1  ;;  %8291 = vmatprep.mubr.msk.bf16.mxu0 %vm4473_vm0, %v5056_v63 }
 0x64e   : > { %v5005_v55 = vpop.f32.mrb[221].mxu1  ;;  %8292 = vmatmul.mubr.msk.bf16.gmra.mrb[232].mxu0 %vm4473_vm0, %v5057_v41  ;;  %v5050_v26 = vmul.f32 %v8699_v44, %v8273_v2 }
 0x64f   : > { %v8274_v50 = vpop.f32.mrb[222].mxu1  ;;  %v5048_v16 = vmul.f32 %v8697_v54, %v5005_v55 }
 0x650   : > { %v5051_v9 = vmul.f32 %v8701_v38, %v8274_v50  ;;  %v5008_v47 = vpop.f32.mrb[223].mxu1 }
 0x651   : > { %v5049_v62 = vmul.f32 %v8703_v43, %v5008_v47 }
 0x652   : > { %v5059_v25 = vpack.c.bf16 %v5051_v9, %v5050_v26 }
 0x653   : > { %v5058_v29 = vpack.c.bf16 %v5049_v62, %v5048_v16 }
 0x655   : > { %8295 = vmatprep.mubr.msk.bf16.mxu0 %vm4473_vm0, %v5058_v29 }
 0x656   : > { %8296 = vmatmul.mubr.msk.bf16.gmra.mrb[236].mxu0 %vm4473_vm0, %v5059_v25 }
 0x711   : > { %v8285_v34 = vpop.f32.mrb[224].mxu0 }
 0x712   : > { %v5150_v7 = vpop.f32.mrb[225].mxu0  ;;  %v5215_v24 = vadd.f32 %v8285_v34, %v10117_v46  ;;  %v8616_v34 = vld [vmem:[%s11180_s9 + $0x50] sm:$0xff]  }
 0x713   : > { %v5213_v13 = vadd.f32 %v5150_v7, %v10107_v40  ;;  %v8286_v18 = vpop.f32.mrb[226].mxu0  ;;  %v8617_v7 = vld [vmem:[%s11180_s9 + $0x10] sm:$0xff]  }
 0x714   : > { %v5153_v35 = vpop.f32.mrb[227].mxu0  ;;  %v5216_v31 = vadd.f32 %v8286_v18, %v10120_v11  ;;  %v10415_v37 = vadd.f32 %v10396_v21, %v5215_v24  ;;  %v8619_v18 = vld [vmem:[%s11180_s9 + $0x18] sm:$0xff]  }
 0x715   : > { %v5214_v17 = vadd.f32 %v5153_v35, %v10110_v6  ;;  %v10400_v20 = vadd.f32 %v10396_v21, %v5213_v13  ;;  %v8618_v13 = vld [vmem:[%s11180_s9 + $0x58] sm:$0xff]   ;;  %v8621_v35 = vld [vmem:[%s11180_s9 + $0x20] sm:$0xff]  }
 0x716   : > { %v10412_v6 = vadd.f32 %v10396_v21, %v5216_v31  ;;  %v8623_v31 = vld [vmem:[%s11180_s9 + $0x28] sm:$0xff]   ;;  %v8627_v24 = vld [vmem:[%s11180_s9 + $0x38] sm:$0xff]  }
 0x717   : > { %v10403_v3 = vadd.f32 %v10396_v21, %v5214_v17  ;;  %v8622_v17 = vld [vmem:[%s11180_s9 + $0x68] sm:$0xff]  }
 0x718   : > { %v5253_v11 = vpack.c.bf16 %v10412_v6, %v10415_v37 }
 0x719   : > { %v5252_v40 = vpack.c.bf16 %v10403_v3, %v10400_v20  ;;  %v8289_v1 = vpop.f32.mrb[228].mxu0 }
 0x71a   : > { %v5166_v57 = vpop.f32.mrb[229].mxu0 }
 0x71b   : > { %v8290_v52 = vpop.f32.mrb[230].mxu0  ;;  %7242 = vmatmul.mubr.msk.bf16.vlgmr.msra.gmra.mrb[224].mxu1 %vm4473_vm0, %v5252_v40  ;;  %v5217_v46 = vadd.f32 %v5166_v57, %v10127_v53  ;;  %v5219_v53 = vadd.f32 %v8289_v1, %v10137_v42  ;;  %v8624_v40 = vld [vmem:[%s11180_s9 + $0x70] sm:$0xff]   ;;  %v8626_v57 = vld [vmem:[%s11180_s9 + $0x78] sm:$0xff]  }
 0x71c   : > { %v5169_v58 = vpop.f32.mrb[231].mxu0  ;;  %5386 = vmatprep.mubr.bf16.mxu1 %v8842_v27  ;;  %v5220_v56 = vadd.f32 %v8290_v52, %v10140_v60  ;;  %v8625_v1 = vld [vmem:[%s11180_s9 + $0x30] sm:$0xff]   ;;  %v5268_v52 = vld [vmem:[%s11179_s8] sm:$0x3] }
 0x71d   : > { %v5218_v15 = vadd.f32 %v5169_v58, %v10130_v36  ;;  %v10427_v28 = vadd.f32 %v10396_v21, %v5217_v46  ;;  %v10439_v2 = vadd.f32 %v10396_v21, %v5219_v53  ;;  %v10545_v58 = vrot.slane %v5268_v52, %v4425_v51 }
 0x71e   : > { %v10436_v54 = vadd.f32 %v10396_v21, %v5220_v56 }
 0x71f   : > { %v10424_v33 = vadd.f32 %v10396_v21, %v5218_v15 }
 0x720   : > { %v5255_v60 = vpack.c.bf16 %v10436_v54, %v10439_v2 }
 0x721   : > { %v8293_v5 = vpop.f32.mrb[232].mxu0  ;;  %v5254_v36 = vpack.c.bf16 %v10424_v33, %v10427_v28 }
 0x722   : > { %v5182_v30 = vpop.f32.mrb[233].mxu0  ;;  %v5223_v26 = vadd.f32 %v8293_v5, %v10157_v0 }
 0x723   : > { %v8294_v59 = vpop.f32.mrb[234].mxu0  ;;  %7243 = vmatmul.mubr.msk.bf16.gmra.mrb[228].mxu1 %vm4473_vm0, %v5253_v11  ;;  %v5221_v55 = vadd.f32 %v5182_v30, %v10147_v32  ;;  %v10549_v11 = vrot.slane %v5268_v52, %v4429_v12 }
 0x724   : > { %v5185_v14 = vpop.f32.mrb[235].mxu0  ;;  %5396 = vmatprep.mubr.bf16.mxu1 %v8842_v27  ;;  %v5224_v50 = vadd.f32 %v8294_v59, %v10160_v61 }
 0x725   : > { %v5222_v44 = vadd.f32 %v5185_v14, %v10150_v45  ;;  %v10451_v38 = vadd.f32 %v10396_v21, %v5221_v55  ;;  %v10463_v45 = vadd.f32 %v10396_v21, %v5223_v26 }
 0x726   : > { %v10460_v32 = vadd.f32 %v10396_v21, %v5224_v50 }
 0x727   : > { %v10448_v42 = vadd.f32 %v10396_v21, %v5222_v44  ;;  %11203 = vst [vmem:[#allocation4_spill] sm:$0xff] %v10463_v45 }
 0x728   : > { %11202 = vst [vmem:[#allocation3_spill] sm:$0xff] %v10460_v32  ;;  %v5257_v9 = vpack.c.bf16 %v10460_v32, %v10463_v45 }
 0x729   : > { %v8297_v19 = vpop.f32.mrb[236].mxu0  ;;  %11201 = vst [vmem:[#allocation2_spill] sm:$0xff] %v10448_v42  ;;  %v5256_v43 = vpack.c.bf16 %v10448_v42, %v10451_v38 }
 0x72a   : > { %v5198_v22 = vpop.f32.mrb[237].mxu0  ;;  %v5227_v29 = vadd.f32 %v8297_v19, %v10177_v23  ;;  %v8613_v23 = vld [vmem:[%s11180_s9] sm:$0xff]  }
 0x72b   : > { %v8298_v41 = vpop.f32.mrb[238].mxu0  ;;  %7244 = vmatmul.mubr.msk.bf16.gmra.mrb[232].mxu1 %vm4473_vm0, %v5254_v36  ;;  %v5225_v47 = vadd.f32 %v5198_v22, %v10167_v4 }
 0x72c   : > { %v5201_v63 = vpop.f32.mrb[239].mxu0  ;;  %5406 = vmatprep.mubr.bf16.mxu1 %v8842_v27  ;;  %v5228_v62 = vadd.f32 %v8298_v41, %v10180_v48  ;;  %v8612_v48 = vld [vmem:[%s11180_s9 + $0x40] sm:$0xff]  }
 0x72d   : > { %v5226_v61 = vadd.f32 %v5201_v63, %v10170_v10  ;;  %v10475_v16 = vadd.f32 %v10396_v21, %v5225_v47  ;;  %v10487_v10 = vadd.f32 %v10396_v21, %v5227_v29  ;;  %8119 = vmatprep.subr.bf16.mxu0 %v8612_v48  ;;  %8355 = vmatprep.subr.bf16.mxu1 %v8612_v48 }
 0x72e   : > { %v10484_v4 = vadd.f32 %v10396_v21, %v5228_v62  ;;  %8120 = vmatpush3.bf16.msra.mxu0 %v8613_v23  ;;  %8363 = vmatpush3.bf16.msra.mxu1 %v8613_v23 }
 0x72f   : > { %v10472_v0 = vadd.f32 %v10396_v21, %v5226_v61  ;;  %11205 = vst [vmem:[#allocation6_spill] sm:$0xff] %v10475_v16  ;;  %11207 = vst [vmem:[#allocation8_spill] sm:$0xff] %v10487_v10  ;;  %v8620_v21 = vld [vmem:[%s11180_s9 + $0x60] sm:$0xff]  }
 0x730   : > { %11206 = vst [vmem:[#allocation7_spill] sm:$0xff] %v10484_v4  ;;  %v5259_v49 = vpack.c.bf16 %v10484_v4, %v10487_v10 }
 0x731   : > { %11204 = vst [vmem:[#allocation5_spill] sm:$0xff] %v10472_v0  ;;  %v5258_v25 = vpack.c.bf16 %v10472_v0, %v10475_v16 }
 0x733   : > { %7245 = vmatmul.mubr.msk.bf16.gmra.mrb[236].mxu1 %vm4473_vm0, %v5255_v60 }
 0x734   : > { %5416 = vmatprep.mubr.bf16.mxu1 %v8842_v27 }
 0x73b   : > { %7246 = vmatmul.mubr.msk.bf16.gmra.mrb[240].mxu1 %vm4473_vm0, %v5256_v43 }
 0x73c   : > { %5426 = vmatprep.mubr.bf16.mxu1 %v8842_v27 }
 0x743   : > { %7247 = vmatmul.mubr.msk.bf16.gmra.mrb[244].mxu1 %vm4473_vm0, %v5257_v9 }
 0x744   : > { %5436 = vmatprep.mubr.bf16.mxu1 %v8842_v27 }
 0x74b   : > { %7248 = vmatmul.mubr.msk.bf16.gmra.mrb[248].mxu1 %vm4473_vm0, %v5258_v25 }
 0x74c   : > { %5446 = vmatprep.mubr.bf16.mxu1 %v8842_v27  ;;  %v8614_v27 = vld [vmem:[%s11180_s9 + $0x48] sm:$0xff]  }
 0x74d   : > { %8121 = vmatprep.subr.bf16.mxu0 %v8614_v27  ;;  %8356 = vmatprep.subr.bf16.mxu1 %v8614_v27 }
 0x74e   : > { %8122 = vmatpush3.bf16.msra.mxu0 %v8615_v39  ;;  %8364 = vmatpush3.bf16.msra.mxu1 %v8615_v39 }
 0x74f   : > { %8123 = vmatprep.subr.bf16.mxu0 %v8616_v34  ;;  %8357 = vmatprep.subr.bf16.mxu1 %v8616_v34 }
 0x752   : > { %8124 = vmatpush3.bf16.msra.mxu0 %v8617_v7  ;;  %8365 = vmatpush3.bf16.msra.mxu1 %v8617_v7 }
 0x753   : > { %7249 = vmatmul.mubr.msk.bf16.gmra.mrb[252].mxu1 %vm4473_vm0, %v5259_v49  ;;  %8125 = vmatprep.subr.bf16.mxu0 %v8618_v13 }
 0x754   : > { %8358 = vmatprep.subr.bf16.mxu1 %v8618_v13 }
 0x756   : > { %8126 = vmatpush3.bf16.msra.mxu0 %v8619_v18  ;;  %8366 = vmatpush3.bf16.msra.mxu1 %v8619_v18 }
 0x757   : > { %8127 = vmatprep.subr.bf16.mxu0 %v8620_v21  ;;  %8359 = vmatprep.subr.bf16.mxu1 %v8620_v21 }
 0x75a   : > { %8128 = vmatpush3.bf16.msra.mxu0 %v8621_v35  ;;  %8367 = vmatpush3.bf16.msra.mxu1 %v8621_v35 }
 0x75b   : > { %8129 = vmatprep.subr.bf16.mxu0 %v8622_v17  ;;  %8360 = vmatprep.subr.bf16.mxu1 %v8622_v17 }
 0x75e   : > { %8130 = vmatpush3.bf16.msra.mxu0 %v8623_v31  ;;  %8368 = vmatpush3.bf16.msra.mxu1 %v8623_v31 }
 0x75f   : > { %8131 = vmatprep.subr.bf16.mxu0 %v8624_v40  ;;  %8361 = vmatprep.subr.bf16.mxu1 %v8624_v40 }
 0x762   : > { %8132 = vmatpush3.bf16.msra.mxu0 %v8625_v1  ;;  %8369 = vmatpush3.bf16.msra.mxu1 %v8625_v1 }
 0x763   : > { %8133 = vmatprep.subr.bf16.mxu0 %v8626_v57  ;;  %8362 = vmatprep.subr.bf16.mxu1 %v8626_v57 }
 0x766   : > { %8134 = vmatpush3.bf16.msra.mxu0 %v8627_v24  ;;  %8370 = vmatpush3.bf16.msra.mxu1 %v8627_v24 }
 0x7ee   : > { %v5378_v15 = vpop.f32.mrb[224].mxu1 }
 0x7ef   : > { %v10552_v5 = vadd.f32 %v5378_v15, %v10545_v58  ;;  %v5380_v30 = vpop.f32.mrb[225].mxu1 }
 0x7f0   : > { %v10555_v46 = vadd.f32 %v5380_v30, %v10549_v11  ;;  %v5382_v59 = vpop.f32.mrb[226].mxu1 }
 0x7f1   : > { %v5457_v14 = vmul.f32 %v10552_v5, %v10552_v5  ;;  %v10560_v56 = vadd.f32 %v5382_v59, %v10545_v58  ;;  %v5384_v51 = vpop.f32.mrb[227].mxu1 }
 0x7f2   : > { %v5458_v8 = vmul.f32 %v10555_v46, %v10555_v46  ;;  %v10565_v12 = vadd.f32 %v5384_v51, %v10549_v11 }
 0x7f3   : > { %v5489_v36 = vmul.f32 %v5457_v14, %v10552_v5  ;;  %v5459_v19 = vmul.f32 %v10560_v56, %v10560_v56 }
 0x7f4   : > { %v5490_v22 = vmul.f32 %v5458_v8, %v10555_v46  ;;  %v5460_v53 = vmul.f32 %v10565_v12, %v10565_v12 }
 0x7f5   : > { %v5521_v41 = vmul.f32 0.044715, %v5489_v36  ;;  %v5491_v63 = vmul.f32 %v5459_v19, %v10560_v56 }
 0x7f6   : > { %v5522_v60 = vmul.f32 0.044715, %v5490_v22  ;;  %v5492_v44 = vmul.f32 %v5460_v53, %v10565_v12  ;;  %v5388_v55 = vpop.f32.mrb[228].mxu1 }
 0x7f7   : > { %v5553_v50 = vadd.f32 %v5521_v41, %v10552_v5  ;;  %v5523_v43 = vmul.f32 0.044715, %v5491_v63  ;;  %v10577_v26 = vadd.f32 %v5388_v55, %v10545_v58  ;;  %v5390_v9 = vpop.f32.mrb[229].mxu1 }
 0x7f8   : > { %v5554_v61 = vadd.f32 %v5522_v60, %v10555_v46  ;;  %v5524_v47 = vmul.f32 0.044715, %v5492_v44  ;;  %v10581_v62 = vadd.f32 %v5390_v9, %v10549_v11  ;;  %v5392_v25 = vpop.f32.mrb[230].mxu1 }
 0x7f9   : > { %v5585_v29 = vmul.f32 0.7978846, %v5553_v50  ;;  %v5555_v49 = vadd.f32 %v5523_v43, %v10560_v56  ;;  %v5461_v48 = vmul.f32 %v10577_v26, %v10577_v26  ;;  %v10587_v23 = vadd.f32 %v5392_v25, %v10545_v58  ;;  %v5394_v27 = vpop.f32.mrb[231].mxu1 }
 0x7fa   : > { %v5586_v39 = vmul.f32 0.7978846, %v5554_v61  ;;  %v5556_v34 = vadd.f32 %v5524_v47, %v10565_v12  ;;  %v5462_v7 = vmul.f32 %v10581_v62, %v10581_v62  ;;  %v10593_v13 = vadd.f32 %v5394_v27, %v10549_v11 }
 0x7fb   : > { %8704 = vtanh.f32 %v5585_v29  ;;  %v5587_v18 = vmul.f32 0.7978846, %v5555_v49  ;;  %v5493_v21 = vmul.f32 %v5461_v48, %v10577_v26  ;;  %v5463_v35 = vmul.f32 %v10587_v23, %v10587_v23 }
 0x7fc   : > { %8706 = vtanh.f32 %v5586_v39  ;;  %v5588_v17 = vmul.f32 0.7978846, %v5556_v34  ;;  %v5494_v31 = vmul.f32 %v5462_v7, %v10581_v62  ;;  %v5464_v40 = vmul.f32 %v10593_v13, %v10593_v13 }
 0x7fd   : > { %8708 = vtanh.f32 %v5587_v18  ;;  %v5525_v1 = vmul.f32 0.044715, %v5493_v21  ;;  %v5495_v57 = vmul.f32 %v5463_v35, %v10587_v23 }
 0x7fe   : > { %v5526_v24 = vmul.f32 0.044715, %v5494_v31  ;;  %v5496_v52 = vmul.f32 %v5464_v40, %v10593_v13  ;;  %v5398_v15 = vpop.f32.mrb[232].mxu1  ;;  %8710 = vtanh.f32 %v5588_v17 }
 0x7ff   : > { %v5557_v30 = vadd.f32 %v5525_v1, %v10577_v26  ;;  %v5527_v59 = vmul.f32 0.044715, %v5495_v57  ;;  %v10605_v14 = vadd.f32 %v5398_v15, %v10545_v58  ;;  %v5400_v51 = vpop.f32.mrb[233].mxu1 }
 0x800   : > { %v5558_v8 = vadd.f32 %v5526_v24, %v10581_v62  ;;  %v5528_v36 = vmul.f32 0.044715, %v5496_v52  ;;  %v10609_v19 = vadd.f32 %v5400_v51, %v10549_v11  ;;  %v5402_v22 = vpop.f32.mrb[234].mxu1 }
 0x801   : > { %v5589_v53 = vmul.f32 0.7978846, %v5557_v30  ;;  %v5559_v41 = vadd.f32 %v5527_v59, %v10587_v23  ;;  %v5465_v63 = vmul.f32 %v10605_v14, %v10605_v14  ;;  %v10615_v60 = vadd.f32 %v5402_v22, %v10545_v58  ;;  %v5404_v44 = vpop.f32.mrb[235].mxu1 }
 0x802   : > { %v5590_v55 = vmul.f32 0.7978846, %v5558_v8  ;;  %v5560_v50 = vadd.f32 %v5528_v36, %v10593_v13  ;;  %v5466_v43 = vmul.f32 %v10609_v19, %v10609_v19  ;;  %v10621_v9 = vadd.f32 %v5404_v44, %v10549_v11 }
 0x803   : > { %8712 = vtanh.f32 %v5589_v53  ;;  %v5591_v61 = vmul.f32 0.7978846, %v5559_v41  ;;  %v5497_v47 = vmul.f32 %v5465_v63, %v10605_v14  ;;  %v5467_v25 = vmul.f32 %v10615_v60, %v10615_v60 }
 0x804   : > { %8714 = vtanh.f32 %v5590_v55  ;;  %v5592_v29 = vmul.f32 0.7978846, %v5560_v50  ;;  %v5498_v49 = vmul.f32 %v5466_v43, %v10609_v19  ;;  %v5468_v48 = vmul.f32 %v10621_v9, %v10621_v9 }
 0x805   : > { %v8705_v27 = vpop.eup %8704  ;;  %8716 = vtanh.f32 %v5591_v61  ;;  %v5529_v39 = vmul.f32 0.044715, %v5497_v47  ;;  %v5499_v34 = vmul.f32 %v5467_v25, %v10615_v60 }
 0x806   : > { %v8707_v7 = vpop.eup %8706  ;;  %v5649_v18 = vadd.f32 1.0, %v8705_v27  ;;  %8718 = vtanh.f32 %v5592_v29  ;;  %v5530_v21 = vmul.f32 0.044715, %v5498_v49  ;;  %v5500_v35 = vmul.f32 %v5468_v48, %v10621_v9  ;;  %v5408_v17 = vpop.f32.mrb[236].mxu1 }
 0x807   : > { %v8709_v31 = vpop.eup %8708  ;;  %v5561_v40 = vadd.f32 %v5529_v39, %v10605_v14  ;;  %v5531_v1 = vmul.f32 0.044715, %v5499_v34  ;;  %v10633_v57 = vadd.f32 %v5408_v17, %v10545_v58  ;;  %v5410_v24 = vpop.f32.mrb[237].mxu1  ;;  %v5650_v52 = vadd.f32 1.0, %v8707_v7 }
 0x808   : > { %v5681_v15 = vmul.f32 0.5, %v5649_v18  ;;  %v5651_v30 = vadd.f32 1.0, %v8709_v31  ;;  %v5562_v59 = vadd.f32 %v5530_v21, %v10609_v19  ;;  %v5532_v51 = vmul.f32 0.044715, %v5500_v35  ;;  %v5412_v8 = vpop.f32.mrb[238].mxu1  ;;  %v8711_v44 = vpop.eup %8710 }
 0x809   : > { %v5593_v36 = vmul.f32 0.7978846, %v5561_v40  ;;  %v5563_v22 = vadd.f32 %v5531_v1, %v10615_v60  ;;  %v5469_v53 = vmul.f32 %v10633_v57, %v10633_v57  ;;  %v10640_v41 = vadd.f32 %v5410_v24, %v10549_v11  ;;  %v5414_v63 = vpop.f32.mrb[239].mxu1 }
 0x80a   : > { %v10643_v55 = vmul.f32 %v5681_v15, %v10552_v5  ;;  %v5683_v50 = vmul.f32 0.5, %v5651_v30  ;;  %v5594_v43 = vmul.f32 0.7978846, %v5562_v59  ;;  %v5564_v61 = vadd.f32 %v5532_v51, %v10621_v9 }
 0x80b   : > { %8720 = vtanh.f32 %v5593_v36  ;;  %v5595_v47 = vmul.f32 0.7978846, %v5563_v22  ;;  %v5501_v25 = vmul.f32 %v5469_v53, %v10633_v57  ;;  %v5470_v29 = vmul.f32 %v10640_v41, %v10640_v41 }
 0x80c   : > { %v10650_v49 = vmul.f32 %v5683_v50, %v10560_v56  ;;  %8722 = vtanh.f32 %v5594_v43  ;;  %v5596_v48 = vmul.f32 0.7978846, %v5564_v61  ;;  %v10653_v27 = vadd.f32 %v5412_v8, %v10545_v58 }
 0x80d   : > { %v10655_v5 = vpop.eup %8712  ;;  %8724 = vtanh.f32 %v5595_v47  ;;  %v5533_v39 = vmul.f32 0.044715, %v5501_v25  ;;  %v5502_v34 = vmul.f32 %v5470_v29, %v10640_v41  ;;  %v10659_v7 = vadd.f32 %v5414_v63, %v10549_v11 }
 0x80e   : > { %v10661_v18 = vpop.eup %8714  ;;  %8726 = vtanh.f32 %v5596_v48  ;;  %v5471_v21 = vmul.f32 %v10653_v27, %v10653_v27  ;;  %v5418_v35 = vpop.f32.mrb[240].mxu1  ;;  %v5652_v17 = vadd.f32 1.0, %v8711_v44  ;;  %v5682_v22 = vmul.f32 0.5, %v5650_v52 }
 0x80f   : > { %v10667_v31 = vpop.eup %8716  ;;  %v5565_v40 = vadd.f32 %v5533_v39, %v10633_v57  ;;  %v5534_v1 = vmul.f32 0.044715, %v5502_v34  ;;  %v5472_v24 = vmul.f32 %v10659_v7, %v10659_v7  ;;  %v10673_v15 = vadd.f32 %v5418_v35, %v10545_v58  ;;  %v5420_v30 = vpop.f32.mrb[241].mxu1 }
 0x810   : > { %v10675_v59 = vpop.eup %8718  ;;  %v5503_v51 = vmul.f32 %v5471_v21, %v10653_v27  ;;  %v10679_v8 = vadd.f32 %v5420_v30, %v10549_v11  ;;  %v5422_v36 = vpop.f32.mrb[242].mxu1  ;;  %v5684_v53 = vmul.f32 0.5, %v5652_v17 }
 0x811   : > { %v5597_v63 = vmul.f32 0.7978846, %v5565_v40  ;;  %v5566_v44 = vadd.f32 %v5534_v1, %v10640_v41  ;;  %v5504_v50 = vmul.f32 %v5472_v24, %v10659_v7  ;;  %v5473_v43 = vmul.f32 %v10673_v15, %v10673_v15  ;;  %v5424_v61 = vpop.f32.mrb[243].mxu1 }
 0x812   : > { %v5535_v47 = vmul.f32 0.044715, %v5503_v51  ;;  %v5474_v25 = vmul.f32 %v10679_v8, %v10679_v8  ;;  %v10688_v29 = vadd.f32 %v5422_v36, %v10545_v58  ;;  %v10691_v48 = vadd.f32 %v5424_v61, %v10549_v11 }
 0x813   : > { %8728 = vtanh.f32 %v5597_v63  ;;  %v5598_v52 = vmul.f32 0.7978846, %v5566_v44  ;;  %v5536_v39 = vmul.f32 0.044715, %v5504_v50  ;;  %v5505_v34 = vmul.f32 %v5473_v43, %v10673_v15 }
 0x814   : > { %v5567_v21 = vadd.f32 %v5535_v47, %v10653_v27  ;;  %v5506_v35 = vmul.f32 %v5474_v25, %v10679_v8  ;;  %v5475_v17 = vmul.f32 %v10688_v29, %v10688_v29  ;;  %v5476_v40 = vmul.f32 %v10691_v48, %v10691_v48 }
 0x815   : > { %v10700_v1 = vpop.eup %8720  ;;  %8730 = vtanh.f32 %v5598_v52  ;;  %v5568_v24 = vadd.f32 %v5536_v39, %v10659_v7  ;;  %v5537_v30 = vmul.f32 0.044715, %v5505_v34  ;;  %v5714_v51 = vmul.f32 %v5682_v22, %v10555_v46 }
 0x816   : > { %v10704_v36 = vpop.eup %8722  ;;  %v5599_v63 = vmul.f32 0.7978846, %v5567_v21  ;;  %v5538_v44 = vmul.f32 0.044715, %v5506_v35  ;;  %v5507_v50 = vmul.f32 %v5475_v17, %v10688_v29  ;;  %v5508_v43 = vmul.f32 %v5476_v40, %v10691_v48  ;;  %v5428_v61 = vpop.f32.mrb[244].mxu1 }
 0x817   : > { %v10708_v47 = vpop.eup %8724  ;;  %v5600_v25 = vmul.f32 0.7978846, %v5568_v24  ;;  %v5569_v56 = vadd.f32 %v5537_v30, %v10673_v15  ;;  %v5716_v52 = vmul.f32 %v5684_v53, %v10565_v12  ;;  %v10713_v39 = vadd.f32 %v5428_v61, %v10545_v58  ;;  %v5430_v46 = vpop.f32.mrb[245].mxu1 }
 0x818   : > { %v10715_v22 = vpop.eup %8726  ;;  %8732 = vtanh.f32 %v5599_v63  ;;  %v5570_v34 = vadd.f32 %v5538_v44, %v10679_v8  ;;  %v5539_v21 = vmul.f32 0.044715, %v5507_v50  ;;  %v5540_v35 = vmul.f32 0.044715, %v5508_v43  ;;  %v5432_v17 = vpop.f32.mrb[246].mxu1 }
 0x819   : > { %8734 = vtanh.f32 %v5600_v25  ;;  %v5601_v40 = vmul.f32 0.7978846, %v5569_v56  ;;  %v5746_v4 = vpack.c.bf16 %v5716_v52, %v5714_v51  ;;  %v5477_v24 = vmul.f32 %v10713_v39, %v10713_v39  ;;  %v5434_v30 = vpop.f32.mrb[247].mxu1 }
 0x81a   : > { %v5602_v12 = vmul.f32 0.7978846, %v5570_v34  ;;  %v5571_v53 = vadd.f32 %v5539_v21, %v10688_v29  ;;  %v5572_v61 = vadd.f32 %v5540_v35, %v10691_v48  ;;  %v10723_v10 = vadd.f32 %v5430_v46, %v10549_v11 }
 0x81b   : > { %8736 = vtanh.f32 %v5601_v40  ;;  %5921 = vmatprep.mubr.bf16.mxu0 %v5746_v4  ;;  %v5509_v63 = vmul.f32 %v5477_v24, %v10713_v39  ;;  %v10727_v44 = vadd.f32 %v5432_v17, %v10545_v58  ;;  %v10730_v56 = vadd.f32 %v5434_v30, %v10549_v11 }
 0x81c   : > { %8738 = vtanh.f32 %v5602_v12  ;;  %v5603_v51 = vmul.f32 0.7978846, %v5571_v53  ;;  %v5604_v50 = vmul.f32 0.7978846, %v5572_v61  ;;  %v11208_v43 = vpack.c.bf16 %v10650_v49, %v10643_v55 }
 0x81d   : > { %v5478_v25 = vmul.f32 %v10723_v10, %v10723_v10  ;;  %v10737_v52 = vpop.eup %8728  ;;  %v5541_v4 = vmul.f32 0.044715, %v5509_v63  ;;  %v5479_v46 = vmul.f32 %v10727_v44, %v10727_v44  ;;  %v5480_v34 = vmul.f32 %v10730_v56, %v10730_v56 }
 0x81e   : > { %5922 = vmatmul.mubr.bf16.vlgmr.msra.gmra.mrb[240].mxu0 %v11208_v43  ;;  %v5654_v21 = vadd.f32 1.0, %v10661_v18  ;;  %8740 = vtanh.f32 %v5603_v51  ;;  %v5656_v55 = vadd.f32 1.0, %v10675_v59  ;;  %v5653_v49 = vadd.f32 1.0, %v10655_v5  ;;  %v5438_v17 = vpop.f32.mrb[248].mxu1 }
 0x81f   : > { %v5510_v35 = vmul.f32 %v5478_v25, %v10723_v10  ;;  %v10747_v40 = vpop.eup %8730  ;;  %8742 = vtanh.f32 %v5604_v50  ;;  %v5573_v24 = vadd.f32 %v5541_v4, %v10713_v39  ;;  %v5511_v30 = vmul.f32 %v5479_v46, %v10727_v44  ;;  %v5440_v53 = vpop.f32.mrb[249].mxu1 }
 0x820   : > { %v5512_v12 = vmul.f32 %v5480_v34, %v10730_v56  ;;  %v5686_v18 = vmul.f32 0.5, %v5654_v21  ;;  %v5688_v63 = vmul.f32 0.5, %v5656_v55  ;;  %v5655_v51 = vadd.f32 1.0, %v10667_v31  ;;  %v5442_v43 = vpop.f32.mrb[250].mxu1 }
 0x821   : > { %v5542_v61 = vmul.f32 0.044715, %v5510_v35  ;;  %v5605_v59 = vmul.f32 0.7978846, %v5573_v24  ;;  %v5543_v25 = vmul.f32 0.044715, %v5511_v30  ;;  %v10754_v32 = vadd.f32 %v5438_v17, %v10545_v58 }
 0x822   : > { %v5544_v5 = vmul.f32 0.044715, %v5512_v12  ;;  %v10756_v50 = vpop.eup %8732  ;;  %v5718_v46 = vmul.f32 %v5686_v18, %v10581_v62  ;;  %v5720_v34 = vmul.f32 %v5688_v63, %v10593_v13  ;;  %v5685_v35 = vmul.f32 0.5, %v5653_v49  ;;  %v5444_v21 = vpop.f32.mrb[251].mxu1 }
 0x823   : > { %v5574_v4 = vadd.f32 %v5542_v61, %v10723_v10  ;;  %v10761_v55 = vpop.eup %8734  ;;  %8744 = vtanh.f32 %v5605_v59  ;;  %v5575_v31 = vadd.f32 %v5543_v25, %v10727_v44  ;;  %v5687_v30 = vmul.f32 0.5, %v5655_v51 }
 0x824   : > { %v5576_v24 = vadd.f32 %v5544_v5, %v10730_v56  ;;  %v5748_v12 = vpack.c.bf16 %v5720_v34, %v5718_v46  ;;  %v5717_v45 = vmul.f32 %v5685_v35, %v10577_v26  ;;  %v5481_v61 = vmul.f32 %v10754_v32, %v10754_v32 }
 0x825   : > { %v5606_v17 = vmul.f32 0.7978846, %v5574_v4  ;;  %v8737_v62 = vpop.eup %8736  ;;  %v5607_v18 = vmul.f32 0.7978846, %v5575_v31  ;;  %v5719_v49 = vmul.f32 %v5687_v30, %v10587_v23  ;;  %v10770_v63 = vadd.f32 %v5440_v53, %v10549_v11 }
 0x826   : > { %v5608_v13 = vmul.f32 0.7978846, %v5576_v24  ;;  %v10772_v59 = vpop.eup %8738  ;;  %v5665_v25 = vadd.f32 1.0, %v8737_v62  ;;  %5929 = vmatprep.mubr.bf16.mxu0 %v5748_v12  ;;  %v5513_v51 = vmul.f32 %v5481_v61, %v10754_v32  ;;  %v10776_v26 = vadd.f32 %v5442_v43, %v10545_v58  ;;  %v5448_v5 = vpop.f32.mrb[252].mxu1 }
 0x827   : > { %8746 = vtanh.f32 %v5606_v17  ;;  %v5747_v4 = vpack.c.bf16 %v5719_v49, %v5717_v45  ;;  %v5482_v46 = vmul.f32 %v10770_v63, %v10770_v63  ;;  %v10781_v23 = vadd.f32 %v5444_v21, %v10549_v11  ;;  %v5450_v53 = vpop.f32.mrb[253].mxu1 }
 0x828   : > { %8748 = vtanh.f32 %v5607_v18  ;;  %v8741_v34 = vpop.eup %8740  ;;  %v5697_v35 = vmul.f32 0.5, %v5665_v25  ;;  %v5545_v31 = vmul.f32 0.044715, %v5513_v51  ;;  %v5483_v24 = vmul.f32 %v10776_v26, %v10776_v26  ;;  %v5452_v30 = vpop.f32.mrb[254].mxu1 }
 0x829   : > { %8750 = vtanh.f32 %v5608_v13  ;;  %v10785_v43 = vpop.eup %8742  ;;  %v5667_v17 = vadd.f32 1.0, %v8741_v34  ;;  %5930 = vmatmul.mubr.bf16.gmra.mrb[244].mxu0 %v5747_v4  ;;  %v5514_v45 = vmul.f32 %v5482_v46, %v10770_v63  ;;  %v5484_v12 = vmul.f32 %v10781_v23, %v10781_v23  ;;  %v5454_v61 = vpop.f32.mrb[255].mxu1 }
 0x82a   : > { %v5658_v21 = vadd.f32 1.0, %v10704_v36  ;;  %v10792_v62 = vmul.f32 %v5697_v35, %v10673_v15  ;;  %v5577_v18 = vadd.f32 %v5545_v31, %v10754_v32  ;;  %v5515_v13 = vmul.f32 %v5483_v24, %v10776_v26 }
 0x82b   : > { %v5660_v49 = vadd.f32 1.0, %v10715_v22  ;;  %v5699_v25 = vmul.f32 0.5, %v5667_v17  ;;  %v5546_v51 = vmul.f32 0.044715, %v5514_v45  ;;  %v5516_v4 = vmul.f32 %v5484_v12, %v10781_v23 }
 0x82c   : > { %v5690_v46 = vmul.f32 0.5, %v5658_v21  ;;  %v5609_v34 = vmul.f32 0.7978846, %v5577_v18  ;;  %v5547_v0 = vmul.f32 0.044715, %v5515_v13  ;;  %v5657_v36 = vadd.f32 1.0, %v10700_v1 }
 0x82d   : > { %v5692_v42 = vmul.f32 0.5, %v5660_v49  ;;  %v8745_v16 = vpop.eup %8744  ;;  %v10800_v15 = vmul.f32 %v5699_v25, %v10688_v29  ;;  %v5578_v35 = vadd.f32 %v5546_v51, %v10770_v63  ;;  %v5548_v31 = vmul.f32 0.044715, %v5516_v4 }
 0x82e   : > { %v5722_v24 = vmul.f32 %v5690_v46, %v10609_v19  ;;  %v5669_v22 = vadd.f32 1.0, %v8745_v16  ;;  %8752 = vtanh.f32 %v5609_v34  ;;  %v5579_v17 = vadd.f32 %v5547_v0, %v10776_v26 }
 0x82f   : > { %v5724_v45 = vmul.f32 %v5692_v42, %v10621_v9  ;;  %v5753_v12 = vpack.c.bf16 %v10800_v15, %v10792_v62  ;;  %v5610_v21 = vmul.f32 0.7978846, %v5578_v35  ;;  %v5580_v1 = vadd.f32 %v5548_v31, %v10781_v23 }
 0x830   : > { %v5659_v29 = vadd.f32 1.0, %v10708_v47  ;;  %v5701_v13 = vmul.f32 0.5, %v5669_v22  ;;  %v5611_v49 = vmul.f32 0.7978846, %v5579_v17  ;;  %v5689_v19 = vmul.f32 0.5, %v5657_v36 }
 0x831   : > { %v10810_v18 = vpop.eup %8746  ;;  %v5750_v25 = vpack.c.bf16 %v5724_v45, %v5722_v24  ;;  %8754 = vtanh.f32 %v5610_v21  ;;  %v5612_v51 = vmul.f32 0.7978846, %v5580_v1  ;;  %v10813_v42 = vadd.f32 %v5448_v5, %v10545_v58 }
 0x832   : > { %v8749_v16 = vpop.eup %8748  ;;  %v5691_v0 = vmul.f32 0.5, %v5659_v29  ;;  %v10818_v4 = vmul.f32 %v5701_v13, %v10713_v39  ;;  %8756 = vtanh.f32 %v5611_v49  ;;  %v5721_v47 = vmul.f32 %v5689_v19, %v10605_v14 }
 0x833   : > { %v10815_v9 = vpop.eup %8750  ;;  %v5671_v46 = vadd.f32 1.0, %v8749_v16  ;;  %5937 = vmatprep.mubr.bf16.mxu0 %v5750_v25  ;;  %8758 = vtanh.f32 %v5612_v51  ;;  %v5485_v36 = vmul.f32 %v10813_v42, %v10813_v42  ;;  %v10825_v35 = vadd.f32 %v5450_v53, %v10549_v11 }
 0x834   : > { %v5723_v34 = vmul.f32 %v5691_v0, %v10615_v60  ;;  %v10828_v31 = vadd.f32 %v5452_v30, %v10545_v58  ;;  %v10831_v39 = vadd.f32 %v5454_v61, %v10549_v11  ;;  %v5662_v24 = vadd.f32 1.0, %v10747_v40 }
 0x835   : > { %v5703_v5 = vmul.f32 0.5, %v5671_v46  ;;  %v5517_v14 = vmul.f32 %v5485_v36, %v10813_v42  ;;  %v5486_v60 = vmul.f32 %v10825_v35, %v10825_v35  ;;  %v5664_v17 = vadd.f32 1.0, %v10761_v55 }
 0x836   : > { %v5749_v22 = vpack.c.bf16 %v5723_v34, %v5721_v47  ;;  %v5487_v58 = vmul.f32 %v10828_v31, %v10828_v31  ;;  %v5488_v11 = vmul.f32 %v10831_v39, %v10831_v39  ;;  %v5694_v30 = vmul.f32 0.5, %v5662_v24 }
 0x837   : > { %v10839_v53 = vmul.f32 %v5703_v5, %v10727_v44  ;;  %v5549_v40 = vmul.f32 0.044715, %v5517_v14  ;;  %v5518_v61 = vmul.f32 %v5486_v60, %v10825_v35  ;;  %v5696_v45 = vmul.f32 0.5, %v5664_v17 }
 0x838   : > { %5938 = vmatmul.mubr.bf16.gmra.mrb[248].mxu0 %v5749_v22  ;;  %v5661_v21 = vadd.f32 1.0, %v10737_v52  ;;  %v8753_v1 = vpop.eup %8752  ;;  %v5519_v44 = vmul.f32 %v5487_v58, %v10828_v31  ;;  %v5520_v29 = vmul.f32 %v5488_v11, %v10831_v39  ;;  %v5726_v13 = vmul.f32 %v5694_v30, %v10640_v41 }
 0x839   : > { %v5755_v55 = vpack.c.bf16 %v10839_v53, %v10818_v4  ;;  %v5673_v49 = vadd.f32 1.0, %v8753_v1  ;;  %v5581_v25 = vadd.f32 %v5549_v40, %v10813_v42  ;;  %v5550_v19 = vmul.f32 0.044715, %v5518_v61  ;;  %v8630_v4 = vld [vmem:[%s11182_s11 + $0x10] sm:$0xff]  }
 0x83a   : > { %v5728_v16 = vmul.f32 %v5696_v45, %v10659_v7  ;;  %v5551_v51 = vmul.f32 0.044715, %v5519_v44  ;;  %v5552_v0 = vmul.f32 0.044715, %v5520_v29  ;;  %v5663_v52 = vadd.f32 1.0, %v10756_v50  ;;  %v8634_v53 = vld [vmem:[%s11184_s13 + $0x10] sm:$0xff]  }
 0x83b   : > { %v5693_v46 = vmul.f32 0.5, %v5661_v21  ;;  %v8755_v47 = vpop.eup %8754  ;;  %v5705_v34 = vmul.f32 0.5, %v5673_v49  ;;  %v5613_v36 = vmul.f32 0.7978846, %v5581_v25  ;;  %v5582_v5 = vadd.f32 %v5550_v19, %v10825_v35 }
 0x83c   : > { %v5752_v24 = vpack.c.bf16 %v5728_v16, %v5726_v13  ;;  %v8757_v22 = vpop.eup %8756  ;;  %v5583_v41 = vadd.f32 %v5551_v51, %v10828_v31  ;;  %v5584_v14 = vadd.f32 %v5552_v0, %v10831_v39  ;;  %v5695_v60 = vmul.f32 0.5, %v5663_v52 }
 0x83d   : > { %v5725_v17 = vmul.f32 %v5693_v46, %v10633_v57  ;;  %v8759_v7 = vpop.eup %8758  ;;  %v5737_v58 = vmul.f32 %v5705_v34, %v10754_v32  ;;  %v5675_v11 = vadd.f32 1.0, %v8757_v22  ;;  %8760 = vtanh.f32 %v5613_v36 }
 0x83e   : > { %v5614_v50 = vmul.f32 0.7978846, %v5582_v5  ;;  %5945 = vmatprep.mubr.bf16.mxu0 %v5752_v24  ;;  %v5615_v30 = vmul.f32 0.7978846, %v5583_v41  ;;  %v5616_v40 = vmul.f32 0.7978846, %v5584_v14  ;;  %v5727_v61 = vmul.f32 %v5695_v60, %v10653_v27 }
 0x83f   : > { %v5666_v45 = vadd.f32 1.0, %v10772_v59  ;;  %v5707_v21 = vmul.f32 0.5, %v5675_v11  ;;  %v5668_v1 = vadd.f32 1.0, %v10785_v43  ;;  %v5670_v44 = vadd.f32 1.0, %v10810_v18  ;;  %v8628_v11 = vld [vmem:[%s11182_s11] sm:$0xff]  }
 0x840   : > { %8762 = vtanh.f32 %v5614_v50  ;;  %v5751_v57 = vpack.c.bf16 %v5727_v61, %v5725_v17  ;;  %v5672_v32 = vadd.f32 1.0, %v10815_v9  ;;  %v5674_v19 = vadd.f32 1.0, %v8755_v47  ;;  %8299 = vmatprep.subr.bf16.mxu1 %v8628_v11  ;;  %v8636_v50 = vld [vmem:[%s11184_s13 + $0x20] sm:$0xff]  }
 0x841   : > { %8764 = vtanh.f32 %v5615_v30  ;;  %v5698_v29 = vmul.f32 0.5, %v5666_v45  ;;  %v5739_v13 = vmul.f32 %v5707_v21, %v10776_v26  ;;  %v5700_v49 = vmul.f32 0.5, %v5668_v1  ;;  %v8637_v30 = vld [vmem:[%s11184_s13 + $0x28] sm:$0xff]  }
 0x842   : > { %8766 = vtanh.f32 %v5616_v40  ;;  %v5702_v25 = vmul.f32 0.5, %v5670_v44  ;;  %5946 = vmatmul.mubr.bf16.gmra.mrb[252].mxu0 %v5751_v57  ;;  %v5704_v27 = vmul.f32 0.5, %v5672_v32  ;;  %v5676_v59 = vadd.f32 1.0, %v8759_v7 }
 0x843   : > { %v5757_v16 = vpack.c.bf16 %v5739_v13, %v5737_v58  ;;  %v5730_v51 = vmul.f32 %v5698_v29, %v10679_v8  ;;  %v5732_v43 = vmul.f32 %v5700_v49, %v10691_v48  ;;  %v5706_v52 = vmul.f32 0.5, %v5674_v19  ;;  %v10916_v29 = vld [vmem:[%s11181_s10] ss:$0 sm:$0xff] }
 0x844   : > { %v5734_v18 = vmul.f32 %v5702_v25, %v10723_v10  ;;  %v5736_v0 = vmul.f32 %v5704_v27, %v10730_v56  ;;  %v5708_v9 = vmul.f32 0.5, %v5676_v59 }
 0x845   : > { %v5754_v46 = vpack.c.bf16 %v5732_v43, %v5730_v51  ;;  %v5738_v34 = vmul.f32 %v5706_v52, %v10770_v63 }
 0x846   : > { %v5756_v26 = vpack.c.bf16 %v5736_v0, %v5734_v18  ;;  %v5740_v36 = vmul.f32 %v5708_v9, %v10781_v23 }
 0x847   : > { %v8761_v5 = vpop.eup %8760  ;;  %5953 = vmatprep.mubr.bf16.mxu0 %v5754_v46 }
 0x848   : > { %v5677_v47 = vadd.f32 1.0, %v8761_v5  ;;  %v5758_v24 = vpack.c.bf16 %v5740_v36, %v5738_v34 }
 0x84a   : > { %v8763_v22 = vpop.eup %8762  ;;  %5954 = vmatmul.mubr.bf16.gmra.mrb[0].mxu0 %v5753_v12  ;;  %5969 = vmatprep.mubr.bf16.mxu1 %v5758_v24  ;;  %v5709_v56 = vmul.f32 0.5, %v5677_v47 }
 0x84b   : > { %v8765_v8 = vpop.eup %8764  ;;  %v5678_v10 = vadd.f32 1.0, %v8763_v22  ;;  %5961 = vmatprep.mubr.bf16.mxu0 %v5756_v26  ;;  %5970 = vmatmul.mubr.bf16.vlgmr.msra.gmra.mrb[0].mxu1 %v5757_v16 }
 0x84c   : > { %v8767_v48 = vpop.eup %8766  ;;  %v5679_v41 = vadd.f32 1.0, %v8765_v8  ;;  %v5741_v17 = vmul.f32 %v5709_v56, %v10813_v42  ;;  %8300 = vmatpush3.bf16.msra.mxu1 %v8628_v11  ;;  %v8629_v42 = vld [vmem:[%s11182_s11 + $0x8] sm:$0xff]  }
 0x84d   : > { %v5680_v63 = vadd.f32 1.0, %v8767_v48  ;;  %v5710_v14 = vmul.f32 0.5, %v5678_v10  ;;  %8301 = vmatprep.subr.bf16.mxu1 %v8629_v42 }
 0x84e   : > { %v5711_v23 = vmul.f32 0.5, %v5679_v41 }
 0x84f   : > { %v5712_v60 = vmul.f32 0.5, %v5680_v63  ;;  %v5742_v58 = vmul.f32 %v5710_v14, %v10825_v35  ;;  %v8631_v35 = vld [vmem:[%s11182_s11 + $0x18] sm:$0xff]  }
 0x850   : > { %v5743_v7 = vmul.f32 %v5711_v23, %v10828_v31  ;;  %8302 = vmatpush3.bf16.msra.mxu1 %v8629_v42  ;;  %v8632_v31 = vld [vmem:[%s11184_s13] sm:$0xff]  }
 0x851   : > { %v5744_v62 = vmul.f32 %v5712_v60, %v10831_v39  ;;  %8303 = vmatprep.subr.bf16.mxu1 %v8630_v4  ;;  %v8633_v39 = vld [vmem:[%s11184_s13 + $0x8] sm:$0xff]   ;;  %8323 = vmatprep.subr.bf16.mxu0 %v8632_v31 }
 0x852   : > { %v5759_v15 = vpack.c.bf16 %v5743_v7, %v5741_v17  ;;  %5962 = vmatmul.mubr.bf16.gmra.mrb[4].mxu0 %v5755_v55  ;;  %v8635_v55 = vld [vmem:[%s11184_s13 + $0x18] sm:$0xff]  }
 0x853   : > { %v5760_v12 = vpack.c.bf16 %v5744_v62, %v5742_v58  ;;  %8324 = vmatpush3.bf16.msra.mxu0 %v8632_v31  ;;  %v11209_v31 = vld [vmem:[#allocation6_spill] sm:$0xff] }
 0x854   : > { %8304 = vmatpush3.bf16.msra.mxu1 %v8630_v4  ;;  %8325 = vmatprep.subr.bf16.mxu0 %v8633_v39 }
 0x855   : > { %5977 = vmatprep.mubr.bf16.mxu1 %v5760_v12  ;;  %8305 = vmatprep.subr.bf16.mxu1 %v8631_v35 }
 0x856   : > { %5978 = vmatmul.mubr.bf16.gmra.mrb[4].mxu1 %v5759_v15 }
 0x857   : > { %8326 = vmatpush3.bf16.msra.mxu0 %v8633_v39 }
 0x858   : > { %8306 = vmatpush3.bf16.msra.mxu1 %v8631_v35  ;;  %8327 = vmatprep.subr.bf16.mxu0 %v8634_v53 }
 0x85b   : > { %8328 = vmatpush3.bf16.msra.mxu0 %v8634_v53 }
 0x85c   : > { %8329 = vmatprep.subr.bf16.mxu0 %v8635_v55 }
 0x85f   : > { %8330 = vmatpush3.bf16.msra.mxu0 %v8635_v55  ;;  %v11210_v55 = vld [vmem:[#allocation2_spill] sm:$0xff] }
 0x860   : > { %8331 = vmatprep.subr.bf16.mxu0 %v8636_v50 }
 0x863   : > { %8332 = vmatpush3.bf16.msra.mxu0 %v8636_v50 }
 0x864   : > { %8333 = vmatprep.subr.bf16.mxu0 %v8637_v30 }
 0x867   : > { %8334 = vmatpush3.bf16.msra.mxu0 %v8637_v30  ;;  %v11211_v30 = vld [vmem:[#allocation5_spill] sm:$0xff] }
 0x8f1   : > { %v8135_v40 = vpop.f32.mrb[240].mxu0 }
 0x8f2   : > { %v8136_v61 = vpop.f32.mrb[241].mxu0 }
 0x8f3   : > { %v8137_v45 = vadd.f32 %v8136_v61, %v8135_v40  ;;  %v8138_v21 = vpop.f32.mrb[242].mxu0 }
 0x8f4   : > { %v8139_v1 = vpop.f32.mrb[243].mxu0 }
 0x8f5   : > { %v5986_v44 = vadd.f32 %v8137_v45, %v10400_v20  ;;  %v8140_v57 = vadd.f32 %v8139_v1, %v8138_v21 }
 0x8f7   : > { %v5987_v32 = vadd.f32 %v8140_v57, %v10403_v3  ;;  %v6009_v13 = vadd.f32 %v10916_v29, %v5986_v44 }
 0x8f9   : > { %v6010_v49 = vadd.f32 %v10916_v29, %v5987_v32 }
 0x8fb   : > { %v6025_v25 = vpack.c.bf16 %v6010_v49, %v6009_v13 }
 0x8fc   : > { %v8141_v27 = vpop.f32.mrb[244].mxu0 }
 0x8fd   : > { %8307 = vmatprep.mubr.msk.bf16.mxu1 %vm4473_vm0, %v6025_v25  ;;  %v8142_v19 = vpop.f32.mrb[245].mxu0 }
 0x8fe   : > { %v8143_v59 = vadd.f32 %v8142_v19, %v8141_v27  ;;  %v8144_v16 = vpop.f32.mrb[246].mxu0  ;;  %v11212_v19 = vld [vmem:[#allocation4_spill] sm:$0xff] }
 0x8ff   : > { %v8145_v20 = vpop.f32.mrb[247].mxu0 }
 0x900   : > { %v5988_v51 = vadd.f32 %v8143_v59, %v10415_v37  ;;  %v8146_v43 = vadd.f32 %v8145_v20, %v8144_v16 }
 0x902   : > { %v5989_v18 = vadd.f32 %v8146_v43, %v10412_v6  ;;  %v6011_v0 = vadd.f32 %v10916_v29, %v5988_v51 }
 0x904   : > { %v6012_v3 = vadd.f32 %v10916_v29, %v5989_v18  ;;  %v11213_v18 = vld [vmem:[#allocation3_spill] sm:$0xff] }
 0x906   : > { %v6026_v52 = vpack.c.bf16 %v6012_v3, %v6011_v0 }
 0x908   : > { %8308 = vmatmul.mubr.msk.bf16.vlgmr.msra.gmra.mrb[8].mxu1 %vm4473_vm0, %v6026_v52  ;;  %v11214_v52 = vld [vmem:[#allocation8_spill] sm:$0xff] }
 0x90b   : > { %v8147_v9 = vpop.f32.mrb[248].mxu0 }
 0x90c   : > { %v8148_v46 = vpop.f32.mrb[249].mxu0 }
 0x90d   : > { %v8149_v26 = vadd.f32 %v8148_v46, %v8147_v9  ;;  %v8150_v34 = vpop.f32.mrb[250].mxu0 }
 0x90e   : > { %v8151_v36 = vpop.f32.mrb[251].mxu0 }
 0x90f   : > { %v5990_v5 = vadd.f32 %v8149_v26, %v10427_v28  ;;  %v8152_v47 = vadd.f32 %v8151_v36, %v8150_v34  ;;  %v11215_v36 = vld [vmem:[#allocation7_spill] sm:$0xff] }
 0x911   : > { %v5991_v37 = vadd.f32 %v8152_v47, %v10424_v33  ;;  %v6013_v24 = vadd.f32 %v10916_v29, %v5990_v5 }
 0x913   : > { %v6014_v6 = vadd.f32 %v10916_v29, %v5991_v37 }
 0x915   : > { %v6027_v22 = vpack.c.bf16 %v6014_v6, %v6013_v24  ;;  %v8153_v8 = vpop.f32.mrb[252].mxu0 }
 0x916   : > { %v8154_v10 = vpop.f32.mrb[253].mxu0 }
 0x917   : > { %8311 = vmatprep.mubr.msk.bf16.mxu1 %vm4473_vm0, %v6027_v22  ;;  %v8155_v48 = vadd.f32 %v8154_v10, %v8153_v8  ;;  %v8156_v56 = vpop.f32.mrb[254].mxu0  ;;  %v8638_v22 = vld [vmem:[%s11184_s13 + $0x30] sm:$0xff]   ;;  %v8639_v8 = vld [vmem:[%s11184_s13 + $0x38] sm:$0xff]   ;;  %v6498_v10 = vld [vmem:[%s11187_s16 + $0x8] sm:$0xff] }
 0x918   : > { %v8157_v41 = vpop.f32.mrb[255].mxu0  ;;  %8335 = vmatprep.subr.bf16.mxu0 %v8638_v22  ;;  %6531 = vrot.lane.b32.xlu0 %v6498_v10, %s8844_s27 }
 0x919   : > { %v5992_v63 = vadd.f32 %v8155_v48, %v10439_v2  ;;  %v8158_v14 = vadd.f32 %v8157_v41, %v8156_v56  ;;  %8336 = vmatpush3.bf16.msra.mxu0 %v8638_v22  ;;  %v6499_v48 = vld [vmem:[%s11187_s16 + $0x10] sm:$0xff]  ;;  %v6501_v56 = vld [vmem:[%s11187_s16 + $0x20] sm:$0xff]  ;;  %v6500_v41 = vld [vmem:[%s11187_s16 + $0x18] sm:$0xff] }
 0x91a   : > { %8337 = vmatprep.subr.bf16.mxu0 %v8639_v8 }
 0x91b   : > { %v5993_v28 = vadd.f32 %v8158_v14, %v10436_v54  ;;  %v6015_v23 = vadd.f32 %v10916_v29, %v5992_v63  ;;  %v6503_v63 = vld [vmem:[%s11187_s16 + $0x30] sm:$0xff]  ;;  %v6502_v14 = vld [vmem:[%s11187_s16 + $0x28] sm:$0xff] }
 0x91c   : > { %6537 = vrot.lane.b32.xlu0 %v6501_v56, %s8844_s27 }
 0x91d   : > { %v6016_v33 = vadd.f32 %v10916_v29, %v5993_v28  ;;  %v8159_v60 = vpop.f32.mrb[0].mxu0  ;;  %8338 = vmatpush3.bf16.msra.mxu0 %v8639_v8  ;;  %v6505_v28 = vld [vmem:[%s11187_s16 + $0x40] sm:$0xff] }
 0x91e   : > { %v8160_v17 = vpop.f32.mrb[1].mxu0  ;;  %v8171_v7 = vpop.f32.mrb[0].mxu1 }
 0x91f   : > { %v6028_v58 = vpack.c.bf16 %v6016_v33, %v6015_v23  ;;  %v8161_v62 = vadd.f32 %v8160_v17, %v8159_v60  ;;  %v8162_v15 = vpop.f32.mrb[2].mxu0  ;;  %v8172_v12 = vpop.f32.mrb[1].mxu1  ;;  %v6504_v23 = vld [vmem:[%s11187_s16 + $0x38] sm:$0xff]  ;;  %v6507_v33 = vld [vmem:[%s11187_s16 + $0x50] sm:$0xff]  ;;  %v6506_v60 = vld [vmem:[%s11187_s16 + $0x48] sm:$0xff] }
 0x920   : > { %v8163_v11 = vpop.f32.mrb[3].mxu0  ;;  %v8173_v42 = vadd.f32 %v8172_v12, %v8171_v7  ;;  %v8174_v4 = vpop.f32.mrb[2].mxu1  ;;  %6541 = vrot.lane.b32.xlu0 %v6503_v63, %s8844_s27  ;;  %v6509_v17 = vld [vmem:[%s11187_s16 + $0x60] sm:$0xff]  ;;  %v6508_v7 = vld [vmem:[%s11187_s16 + $0x58] sm:$0xff] }
 0x921   : > { %v5994_v35 = vadd.f32 %v8161_v62, %v10451_v38  ;;  %v8164_v2 = vadd.f32 %v8163_v11, %v8162_v15  ;;  %8312 = vmatmul.mubr.msk.bf16.gmra.mrb[12].mxu1 %vm4473_vm0, %v6028_v58  ;;  %v8175_v54 = vpop.f32.mrb[3].mxu1  ;;  %v6511_v58 = vld [vmem:[%s11187_s16 + $0x70] sm:$0xff]  ;;  %v6510_v62 = vld [vmem:[%s11187_s16 + $0x68] sm:$0xff]  ;;  %v6512_v15 = vld [vmem:[%s11187_s16 + $0x78] sm:$0xff] }
 0x922   : > { %v5998_v39 = vadd.f32 %v8173_v42, %v11209_v31  ;;  %v8176_v53 = vadd.f32 %v8175_v54, %v8174_v4  ;;  %v7267_v12 = vld [vmem:[%s11183_s12] ss:$0 sm:$0xff] }
 0x923   : > { %v5995_v50 = vadd.f32 %v8164_v2, %v11210_v55  ;;  %v6017_v61 = vadd.f32 %v10916_v29, %v5994_v35 }
 0x924   : > { %v5999_v40 = vadd.f32 %v8176_v53, %v11211_v30  ;;  %v6021_v44 = vadd.f32 %v10916_v29, %v5998_v39  ;;  %6545 = vrot.lane.b32.xlu0 %v6505_v28, %s8844_s27 }
 0x925   : > { %v6018_v45 = vadd.f32 %v10916_v29, %v5995_v50  ;;  %v8165_v21 = vpop.f32.mrb[4].mxu0 }
 0x926   : > { %v8166_v1 = vpop.f32.mrb[5].mxu0  ;;  %v6022_v38 = vadd.f32 %v10916_v29, %v5999_v40 }
 0x927   : > { %v6029_v57 = vpack.c.bf16 %v6018_v45, %v6017_v61  ;;  %v8167_v32 = vadd.f32 %v8166_v1, %v8165_v21  ;;  %v8168_v13 = vpop.f32.mrb[6].mxu0 }
 0x928   : > { %v8169_v49 = vpop.f32.mrb[7].mxu0  ;;  %v6031_v25 = vpack.c.bf16 %v6022_v38, %v6021_v44  ;;  %6549 = vrot.lane.b32.xlu0 %v6507_v33, %s8844_s27  ;;  %v11033_v33 = vld [vmem:[%s11185_s14] ss:$0 sm:$0xff] }
 0x929   : > { %v8177_v27 = vpop.f32.mrb[4].mxu1  ;;  %v5996_v59 = vadd.f32 %v8167_v32, %v11212_v19  ;;  %v8170_v16 = vadd.f32 %v8169_v49, %v8168_v13  ;;  %8315 = vmatprep.mubr.msk.bf16.mxu1 %vm4473_vm0, %v6029_v57 }
 0x92a   : > { %v8178_v20 = vpop.f32.mrb[5].mxu1 }
 0x92b   : > { %v8179_v51 = vadd.f32 %v8178_v20, %v8177_v27  ;;  %v8180_v43 = vpop.f32.mrb[6].mxu1  ;;  %v5997_v0 = vadd.f32 %v8170_v16, %v11213_v18  ;;  %v6019_v26 = vadd.f32 %v10916_v29, %v5996_v59 }
 0x92c   : > { %v8181_v3 = vpop.f32.mrb[7].mxu1  ;;  %6553 = vrot.lane.b32.xlu0 %v6509_v17, %s8844_s27 }
 0x92d   : > { %v6000_v9 = vadd.f32 %v8179_v51, %v11214_v52  ;;  %v8182_v46 = vadd.f32 %v8181_v3, %v8180_v43  ;;  %v6020_v34 = vadd.f32 %v10916_v29, %v5997_v0 }
 0x92f   : > { %v6001_v5 = vadd.f32 %v8182_v46, %v11215_v36  ;;  %v6030_v47 = vpack.c.bf16 %v6020_v34, %v6019_v26  ;;  %v6023_v37 = vadd.f32 %v10916_v29, %v6000_v9 }
 0x930   : > { %6557 = vrot.lane.b32.xlu0 %v6511_v58, %s8844_s27 }
 0x931   : > { %v6024_v24 = vadd.f32 %v10916_v29, %v6001_v5  ;;  %8316 = vmatmul.mubr.msk.bf16.gmra.mrb[16].mxu1 %vm4473_vm0, %v6030_v47  ;;  %v6497_v29 = vld [vmem:[%s11187_s16] sm:$0xff] }
 0x932   : > { %8319 = vmatprep.mubr.msk.bf16.mxu1 %vm4473_vm0, %v6031_v25  ;;  %6529 = vrot.lane.b32.xlu1 %v6497_v29, %s8844_s27 }
 0x933   : > { %v6032_v6 = vpack.c.bf16 %v6024_v24, %v6023_v37 }
 0x936   : > { %6533 = vrot.lane.b32.xlu1 %v6499_v48, %s8844_s27 }
 0x939   : > { %8320 = vmatmul.mubr.msk.bf16.gmra.mrb[20].mxu1 %vm4473_vm0, %v6032_v6 }
 0x93a   : > { %6535 = vrot.lane.b32.xlu1 %v6500_v41, %s8844_s27 }
 0x93e   : > { %6539 = vrot.lane.b32.xlu1 %v6502_v14, %s8844_s27 }
 0x942   : > { %6543 = vrot.lane.b32.xlu1 %v6504_v23, %s8844_s27 }
 0x946   : > { %6547 = vrot.lane.b32.xlu1 %v6506_v60, %s8844_s27 }
 0x94a   : > { %6551 = vrot.lane.b32.xlu1 %v6508_v7, %s8844_s27 }
 0x94e   : > { %6555 = vrot.lane.b32.xlu1 %v6510_v62, %s8844_s27 }
 0x952   : > { %6559 = vrot.lane.b32.xlu1 %v6512_v15, %s8844_s27 }
 0x9db   : > { %v8309_v11 = vpop.f32.mrb[8].mxu1 }
 0x9dc   : > { %v6139_v42 = vadd.f32 %v8309_v11, %v7267_v12  ;;  %v6130_v4 = vpop.f32.mrb[9].mxu1 }
 0x9dd   : > { %v6131_v35 = vadd.f32 %v7267_v12, %v6130_v4  ;;  %v8310_v2 = vpop.f32.mrb[10].mxu1 }
 0x9de   : > { %v6142_v54 = vadd.f32 %v8310_v2, %v7267_v12  ;;  %v6133_v31 = vpop.f32.mrb[11].mxu1  ;;  %v6195_v53 = vmax.f32 %v6139_v42, 0.0 }
 0x9df   : > { %v6134_v39 = vadd.f32 %v7267_v12, %v6133_v31  ;;  %v6193_v50 = vmax.f32 %v6131_v35, 0.0 }
 0x9e0   : > { %v6196_v55 = vmax.f32 %v6142_v54, 0.0 }
 0x9e1   : > { %v6194_v30 = vmax.f32 %v6134_v39, 0.0 }
 0x9e2   : > { %v6210_v40 = vpack.c.bf16 %v6196_v55, %v6195_v53 }
 0x9e3   : > { %v6209_v61 = vpack.c.bf16 %v6194_v30, %v6193_v50 }
 0x9e5   : > { %8339 = vmatprep.mubr.bf16.mxu0 %v6209_v61  ;;  %v6530_v61 = vpop.permute.xlu1 %6529 }
 0x9e6   : > { %8340 = vmatmul.mubr.bf16.vlgmr.msra.gmra.mrb[8].mxu0 %v6210_v40 }
 0x9f4   : > { %v8313_v45 = vpop.f32.mrb[12].mxu1 }
 0x9f5   : > { %v6155_v21 = vadd.f32 %v8313_v45, %v7267_v12  ;;  %v6146_v1 = vpop.f32.mrb[13].mxu1 }
 0x9f6   : > { %v6147_v44 = vadd.f32 %v7267_v12, %v6146_v1  ;;  %v8314_v38 = vpop.f32.mrb[14].mxu1 }
 0x9f7   : > { %v6158_v57 = vadd.f32 %v8314_v38, %v7267_v12  ;;  %v6149_v32 = vpop.f32.mrb[15].mxu1  ;;  %v6199_v49 = vmax.f32 %v6155_v21, 0.0  ;;  %v6534_v21 = vpop.permute.xlu1 %6533 }
 0x9f8   : > { %v6150_v13 = vadd.f32 %v7267_v12, %v6149_v32  ;;  %v6197_v27 = vmax.f32 %v6147_v44, 0.0 }
 0x9f9   : > { %v6200_v25 = vmax.f32 %v6158_v57, 0.0 }
 0x9fa   : > { %v6198_v19 = vmax.f32 %v6150_v13, 0.0 }
 0x9fb   : > { %v6212_v59 = vpack.c.bf16 %v6200_v25, %v6199_v49 }
 0x9fc   : > { %v6211_v16 = vpack.c.bf16 %v6198_v19, %v6197_v27 }
 0x9fe   : > { %8343 = vmatprep.mubr.bf16.mxu0 %v6211_v16  ;;  %v6532_v16 = vpop.permute.xlu0 %6531 }
 0x9ff   : > { %8344 = vmatmul.mubr.bf16.gmra.mrb[12].mxu0 %v6212_v59 }
 0xa04   : > { %v8317_v20 = vpop.f32.mrb[16].mxu1 }
 0xa05   : > { %v6171_v51 = vadd.f32 %v8317_v20, %v7267_v12  ;;  %v6162_v43 = vpop.f32.mrb[17].mxu1 }
 0xa06   : > { %v6163_v18 = vadd.f32 %v7267_v12, %v6162_v43  ;;  %v8318_v0 = vpop.f32.mrb[18].mxu1 }
 0xa07   : > { %v6174_v3 = vadd.f32 %v8318_v0, %v7267_v12  ;;  %v6165_v52 = vpop.f32.mrb[19].mxu1  ;;  %v6203_v46 = vmax.f32 %v6171_v51, 0.0 }
 0xa08   : > { %v6166_v9 = vadd.f32 %v7267_v12, %v6165_v52  ;;  %v6201_v34 = vmax.f32 %v6163_v18, 0.0 }
 0xa09   : > { %v6204_v26 = vmax.f32 %v6174_v3, 0.0  ;;  %v6536_v3 = vpop.permute.xlu1 %6535 }
 0xa0a   : > { %v6202_v36 = vmax.f32 %v6166_v9, 0.0 }
 0xa0b   : > { %v6214_v5 = vpack.c.bf16 %v6204_v26, %v6203_v46 }
 0xa0c   : > { %v6213_v47 = vpack.c.bf16 %v6202_v36, %v6201_v34  ;;  %v8321_v37 = vpop.f32.mrb[20].mxu1 }
 0xa0d   : > { %v6187_v24 = vadd.f32 %v8321_v37, %v7267_v12  ;;  %v6178_v6 = vpop.f32.mrb[21].mxu1 }
 0xa0e   : > { %8347 = vmatprep.mubr.bf16.mxu0 %v6213_v47  ;;  %v6179_v22 = vadd.f32 %v7267_v12, %v6178_v6  ;;  %v8322_v8 = vpop.f32.mrb[22].mxu1 }
 0xa0f   : > { %8348 = vmatmul.mubr.bf16.gmra.mrb[16].mxu0 %v6214_v5  ;;  %v6190_v29 = vadd.f32 %v8322_v8, %v7267_v12  ;;  %v6181_v10 = vpop.f32.mrb[23].mxu1  ;;  %v6207_v56 = vmax.f32 %v6187_v24, 0.0 }
 0xa10   : > { %v6182_v48 = vadd.f32 %v7267_v12, %v6181_v10  ;;  %v6205_v63 = vmax.f32 %v6179_v22, 0.0 }
 0xa11   : > { %v6208_v41 = vmax.f32 %v6190_v29, 0.0 }
 0xa12   : > { %v6206_v14 = vmax.f32 %v6182_v48, 0.0 }
 0xa13   : > { %v6216_v28 = vpack.c.bf16 %v6208_v41, %v6207_v56 }
 0xa14   : > { %v6215_v23 = vpack.c.bf16 %v6206_v14, %v6205_v63 }
 0xa16   : > { %8351 = vmatprep.mubr.bf16.mxu0 %v6215_v23 }
 0xa17   : > { %8352 = vmatmul.mubr.bf16.gmra.mrb[20].mxu0 %v6216_v28 }
 0xab9   : > { %v8341_v60 = vpop.f32.mrb[8].mxu0 }
 0xaba   : > { %v11036_v17 = vadd.f32 %v8341_v60, %v11033_v33  ;;  %v6322_v7 = vpop.f32.mrb[9].mxu0 }
 0xabb   : > { %v11039_v58 = vadd.f32 %v11033_v33, %v6322_v7  ;;  %v8342_v62 = vpop.f32.mrb[10].mxu0 }
 0xabc   : > { %v7291_v15 = vmul.f32 -1.442695, %v11036_v17  ;;  %v11043_v12 = vadd.f32 %v8342_v62, %v11033_v33  ;;  %v6325_v11 = vpop.f32.mrb[11].mxu0 }
 0xabd   : > { %v7289_v42 = vmul.f32 -1.442695, %v11039_v58  ;;  %v11047_v4 = vadd.f32 %v11033_v33, %v6325_v11 }
 0xabe   : > { %8768 = vpow2.f32 %v7291_v15  ;;  %v7292_v35 = vmul.f32 -1.442695, %v11043_v12 }
 0xabf   : > { %8770 = vpow2.f32 %v7289_v42  ;;  %v7290_v2 = vmul.f32 -1.442695, %v11047_v4 }
 0xac0   : > { %8772 = vpow2.f32 %v7292_v35 }
 0xac1   : > { %8774 = vpow2.f32 %v7290_v2 }
 0xac8   : > { %v8769_v54 = vpop.eup %8768 }
 0xac9   : > { %v8771_v31 = vpop.eup %8770  ;;  %v6451_v39 = vadd.f32 1.0, %v8769_v54  ;;  %v6538_v54 = vpop.permute.xlu0 %6537 }
 0xaca   : > { %v8773_v53 = vpop.eup %8772  ;;  %v6449_v55 = vadd.f32 1.0, %v8771_v31 }
 0xacb   : > { %v8775_v50 = vpop.eup %8774  ;;  %8776 = vrcp.f32 %v6451_v39  ;;  %v6452_v30 = vadd.f32 1.0, %v8773_v53  ;;  %v6540_v39 = vpop.permute.xlu1 %6539 }
 0xacc   : > { %8778 = vrcp.f32 %v6449_v55  ;;  %v6450_v40 = vadd.f32 1.0, %v8775_v50 }
 0xacd   : > { %8780 = vrcp.f32 %v6452_v30 }
 0xace   : > { %8782 = vrcp.f32 %v6450_v40 }
 0xad2   : > { %v8345_v45 = vpop.f32.mrb[12].mxu0 }
 0xad3   : > { %v11052_v1 = vadd.f32 %v8345_v45, %v11033_v33  ;;  %v6338_v44 = vpop.f32.mrb[13].mxu0 }
 0xad4   : > { %v11055_v38 = vadd.f32 %v11033_v33, %v6338_v44  ;;  %v8346_v57 = vpop.f32.mrb[14].mxu0 }
 0xad5   : > { %v8777_v32 = vpop.eup %8776  ;;  %v7295_v13 = vmul.f32 -1.442695, %v11052_v1  ;;  %v11059_v49 = vadd.f32 %v8346_v57, %v11033_v33  ;;  %v6341_v25 = vpop.f32.mrb[15].mxu0 }
 0xad6   : > { %v8779_v27 = vpop.eup %8778  ;;  %v7293_v19 = vmul.f32 -1.442695, %v11055_v38  ;;  %v11063_v59 = vadd.f32 %v11033_v33, %v6341_v25  ;;  %v6579_v52 = vmul.f32 %v8777_v32, %v6534_v21 }
 0xad7   : > { %v8781_v20 = vpop.eup %8780  ;;  %8784 = vpow2.f32 %v7295_v13  ;;  %v7296_v51 = vmul.f32 -1.442695, %v11059_v49  ;;  %v6577_v43 = vmul.f32 %v8779_v27, %v6530_v61  ;;  %v6542_v13 = vpop.permute.xlu0 %6541 }
 0xad8   : > { %v8783_v18 = vpop.eup %8782  ;;  %8786 = vpow2.f32 %v7293_v19  ;;  %v7294_v0 = vmul.f32 -1.442695, %v11063_v59  ;;  %v6580_v26 = vmul.f32 %v8781_v20, %v6536_v3  ;;  %v6715_v5 = vsel %vm6711_vm1, %v6579_v52, 0.0 }
 0xad9   : > { %8788 = vpow2.f32 %v7296_v51  ;;  %v6578_v9 = vmul.f32 %v8783_v18, %v6532_v16  ;;  %6609 = vrot.lane.b32.xlu0 %v6577_v43, %s8845_s29  ;;  %v6712_v46 = vsel %vm6711_vm1, %v6577_v43, 0.0  ;;  %v6544_v51 = vpop.permute.xlu1 %6543 }
 0xada   : > { %8790 = vpow2.f32 %v7294_v0  ;;  %v6717_v37 = vsel %vm6711_vm1, %v6580_v26, 0.0 }
 0xadb   : > { %v6713_v34 = vsel %vm6711_vm1, %v6578_v9, 0.0  ;;  %6611 = vrot.lane.b32.xlu1 %v6578_v9, %s8845_s29 }
 0xadc   : > { %v6714_v36 = vadd.f32 %v6713_v34, %v6712_v46 }
 0xadd   : > { %6613 = vrot.lane.b32.xlu0 %v6579_v52, %s8845_s29 }
 0xade   : > { %v6716_v47 = vadd.f32 %v6715_v5, %v6714_v36 }
 0xadf   : > { %6615 = vrot.lane.b32.xlu1 %v6580_v26, %s8845_s29 }
 0xae0   : > { %v6718_v24 = vadd.f32 %v6717_v37, %v6716_v47 }
 0xae1   : > { %v8785_v6 = vpop.eup %8784 }
 0xae2   : > { %v8787_v22 = vpop.eup %8786  ;;  %v6455_v8 = vadd.f32 1.0, %v8785_v6  ;;  %v8349_v29 = vpop.f32.mrb[16].mxu0 }
 0xae3   : > { %v8789_v10 = vpop.eup %8788  ;;  %v6453_v48 = vadd.f32 1.0, %v8787_v22  ;;  %v11076_v56 = vadd.f32 %v8349_v29, %v11033_v33  ;;  %v6354_v41 = vpop.f32.mrb[17].mxu0 }
 0xae4   : > { %v8791_v63 = vpop.eup %8790  ;;  %8792 = vrcp.f32 %v6455_v8  ;;  %v6456_v14 = vadd.f32 1.0, %v8789_v10  ;;  %v11079_v28 = vadd.f32 %v11033_v33, %v6354_v41  ;;  %v8350_v23 = vpop.f32.mrb[18].mxu0 }
 0xae5   : > { %8794 = vrcp.f32 %v6453_v48  ;;  %v6454_v60 = vadd.f32 1.0, %v8791_v63  ;;  %v7299_v7 = vmul.f32 -1.442695, %v11076_v56  ;;  %v11083_v62 = vadd.f32 %v8350_v23, %v11033_v33  ;;  %v6357_v15 = vpop.f32.mrb[19].mxu0  ;;  %v6546_v29 = vpop.permute.xlu0 %6545 }
 0xae6   : > { %8796 = vrcp.f32 %v6456_v14  ;;  %v7297_v11 = vmul.f32 -1.442695, %v11079_v28  ;;  %v11087_v42 = vadd.f32 %v11033_v33, %v6357_v15  ;;  %v6548_v14 = vpop.permute.xlu1 %6547 }
 0xae7   : > { %8798 = vrcp.f32 %v6454_v60  ;;  %v7300_v35 = vmul.f32 -1.442695, %v11083_v62 }
 0xae8   : > { %8800 = vpow2.f32 %v7299_v7  ;;  %v7298_v2 = vmul.f32 -1.442695, %v11087_v42 }
 0xae9   : > { %8802 = vpow2.f32 %v7297_v11 }
 0xaea   : > { %8804 = vpow2.f32 %v7300_v35  ;;  %v8353_v31 = vpop.f32.mrb[20].mxu0  ;;  %v6550_v35 = vpop.permute.xlu0 %6549 }
 0xaeb   : > { %8806 = vpow2.f32 %v7298_v2  ;;  %v11092_v53 = vadd.f32 %v8353_v31, %v11033_v33  ;;  %v6370_v55 = vpop.f32.mrb[21].mxu0  ;;  %v6552_v31 = vpop.permute.xlu1 %6551 }
 0xaec   : > { %v11095_v50 = vadd.f32 %v11033_v33, %v6370_v55  ;;  %v8354_v30 = vpop.f32.mrb[22].mxu0 }
 0xaed   : > { %v7303_v40 = vmul.f32 -1.442695, %v11092_v53  ;;  %v11099_v61 = vadd.f32 %v8354_v30, %v11033_v33  ;;  %v6373_v45 = vpop.f32.mrb[23].mxu0 }
 0xaee   : > { %v8793_v21 = vpop.eup %8792  ;;  %v7301_v44 = vmul.f32 -1.442695, %v11095_v50  ;;  %v11103_v57 = vadd.f32 %v11033_v33, %v6373_v45 }
 0xaef   : > { %v8795_v32 = vpop.eup %8794  ;;  %8808 = vpow2.f32 %v7303_v40  ;;  %v7304_v25 = vmul.f32 -1.442695, %v11099_v61  ;;  %v6583_v3 = vmul.f32 %v8793_v21, %v6542_v13  ;;  %v6554_v40 = vpop.permute.xlu0 %6553 }
 0xaf0   : > { %v8797_v27 = vpop.eup %8796  ;;  %v6581_v19 = vmul.f32 %v8795_v32, %v6538_v54  ;;  %8810 = vpow2.f32 %v7301_v44  ;;  %v7302_v16 = vmul.f32 -1.442695, %v11103_v57  ;;  %v6556_v13 = vpop.permute.xlu1 %6555 }
 0xaf1   : > { %v8799_v20 = vpop.eup %8798  ;;  %8812 = vpow2.f32 %v7304_v25  ;;  %v6584_v36 = vmul.f32 %v8797_v27, %v6544_v51  ;;  %v6723_v22 = vsel %vm6711_vm1, %v6583_v3, 0.0 }
 0xaf2   : > { %v8801_v43 = vpop.eup %8800  ;;  %v6719_v18 = vsel %vm6711_vm1, %v6581_v19, 0.0  ;;  %v6582_v0 = vmul.f32 %v8799_v20, %v6540_v39  ;;  %6617 = vrot.lane.b32.xlu0 %v6581_v19, %s8845_s29  ;;  %8814 = vpow2.f32 %v7302_v16 }
 0xaf3   : > { %v8803_v33 = vpop.eup %8802  ;;  %v6459_v52 = vadd.f32 1.0, %v8801_v43  ;;  %v6720_v9 = vadd.f32 %v6719_v18, %v6718_v24  ;;  %v6725_v24 = vsel %vm6711_vm1, %v6584_v36, 0.0 }
 0xaf4   : > { %v8805_v46 = vpop.eup %8804  ;;  %v6457_v26 = vadd.f32 1.0, %v8803_v33  ;;  %v6721_v34 = vsel %vm6711_vm1, %v6582_v0, 0.0  ;;  %6619 = vrot.lane.b32.xlu1 %v6582_v0, %s8845_s29  ;;  %v6558_v0 = vpop.permute.xlu0 %6557 }
 0xaf5   : > { %v8807_v5 = vpop.eup %8806  ;;  %8816 = vrcp.f32 %v6459_v52  ;;  %v6460_v47 = vadd.f32 1.0, %v8805_v46  ;;  %v6722_v37 = vadd.f32 %v6721_v34, %v6720_v9  ;;  %v6560_v34 = vpop.permute.xlu1 %6559 }
 0xaf6   : > { %8818 = vrcp.f32 %v6457_v26  ;;  %v6458_v6 = vadd.f32 1.0, %v8807_v5  ;;  %6621 = vrot.lane.b32.xlu0 %v6583_v3, %s8845_s29 }
 0xaf7   : > { %8820 = vrcp.f32 %v6460_v47  ;;  %v6724_v8 = vadd.f32 %v6723_v22, %v6722_v37 }
 0xaf8   : > { %8822 = vrcp.f32 %v6458_v6  ;;  %6623 = vrot.lane.b32.xlu1 %v6584_v36, %s8845_s29 }
 0xaf9   : > { %v8809_v10 = vpop.eup %8808  ;;  %v6726_v48 = vadd.f32 %v6725_v24, %v6724_v8 }
 0xafa   : > { %v8811_v41 = vpop.eup %8810  ;;  %v6463_v63 = vadd.f32 1.0, %v8809_v10 }
 0xafb   : > { %v8813_v23 = vpop.eup %8812  ;;  %v6461_v60 = vadd.f32 1.0, %v8811_v41 }
 0xafc   : > { %v8815_v7 = vpop.eup %8814  ;;  %v6464_v15 = vadd.f32 1.0, %v8813_v23 }
 0xafd   : > { %8824 = vrcp.f32 %v6461_v60  ;;  %v6462_v11 = vadd.f32 1.0, %v8815_v7  ;;  %v6385_v7 = vmax.f32 %v11039_v58, 0.0 }
 0xafe   : > { %8826 = vrcp.f32 %v6463_v63 }
 0xaff   : > { %v8817_v2 = vpop.eup %8816  ;;  %8828 = vrcp.f32 %v6462_v11 }
 0xb00   : > { %v8819_v54 = vpop.eup %8818  ;;  %8830 = vrcp.f32 %v6464_v15  ;;  %v6587_v44 = vmul.f32 %v8817_v2, %v6550_v35  ;;  %v6386_v35 = vmax.f32 %v11047_v4, 0.0 }
 0xb01   : > { %v8821_v39 = vpop.eup %8820  ;;  %v6585_v55 = vmul.f32 %v8819_v54, %v6546_v29 }
 0xb02   : > { %v8823_v30 = vpop.eup %8822  ;;  %v6588_v27 = vmul.f32 %v8821_v39, %v6552_v31  ;;  %v6731_v20 = vsel %vm6711_vm1, %v6587_v44, 0.0  ;;  %v6387_v31 = vmax.f32 %v11036_v17, 0.0 }
 0xb03   : > { %v6727_v45 = vsel %vm6711_vm1, %v6585_v55, 0.0  ;;  %v6586_v21 = vmul.f32 %v8823_v30, %v6548_v14  ;;  %6625 = vrot.lane.b32.xlu0 %v6585_v55, %s8845_s29 }
 0xb04   : > { %v6728_v32 = vadd.f32 %v6727_v45, %v6726_v48  ;;  %v6733_v33 = vsel %vm6711_vm1, %v6588_v27, 0.0  ;;  %v6388_v45 = vmax.f32 %v11043_v12, 0.0  ;;  %v6391_v12 = vmax.f32 %v11052_v1, 0.0 }
 0xb05   : > { %v6729_v25 = vsel %vm6711_vm1, %v6586_v21, 0.0  ;;  %6627 = vrot.lane.b32.xlu1 %v6586_v21, %s8845_s29 }
 0xb06   : > { %v6730_v19 = vadd.f32 %v6729_v25, %v6728_v32 }
 0xb07   : > { %v8825_v16 = vpop.eup %8824  ;;  %6629 = vrot.lane.b32.xlu0 %v6587_v44, %s8845_s29 }
 0xb08   : > { %v8827_v51 = vpop.eup %8826  ;;  %v6732_v43 = vadd.f32 %v6731_v20, %v6730_v19  ;;  %v6589_v18 = vmul.f32 %v8825_v16, %v6554_v40  ;;  %v6390_v16 = vmax.f32 %v11063_v59, 0.0 }
 0xb09   : > { %v8829_v3 = vpop.eup %8828  ;;  %6631 = vrot.lane.b32.xlu1 %v6588_v27, %s8845_s29  ;;  %v6591_v36 = vmul.f32 %v8827_v51, %v6558_v0  ;;  %v6389_v27 = vmax.f32 %v11055_v38, 0.0 }
 0xb0a   : > { %v8831_v52 = vpop.eup %8830  ;;  %v6734_v9 = vadd.f32 %v6733_v33, %v6732_v43  ;;  %v6735_v46 = vsel %vm6711_vm1, %v6589_v18, 0.0  ;;  %v6590_v26 = vmul.f32 %v8829_v3, %v6556_v13 }
 0xb0b   : > { %6633 = vrot.lane.b32.xlu0 %v6589_v18, %s8845_s29  ;;  %v6592_v37 = vmul.f32 %v8831_v52, %v6560_v34  ;;  %v6739_v22 = vsel %vm6711_vm1, %v6591_v36, 0.0  ;;  %v6392_v52 = vmax.f32 %v11059_v49, 0.0  ;;  %v6395_v49 = vmax.f32 %v11076_v56, 0.0 }
 0xb0c   : > { %v6736_v5 = vadd.f32 %v6735_v46, %v6734_v9  ;;  %v6737_v47 = vsel %vm6711_vm1, %v6590_v26, 0.0  ;;  %v6398_v56 = vmax.f32 %v11103_v57, 0.0 }
 0xb0d   : > { %6635 = vrot.lane.b32.xlu1 %v6590_v26, %s8845_s29  ;;  %v6741_v24 = vsel %vm6711_vm1, %v6592_v37, 0.0 }
 0xb0e   : > { %v6738_v6 = vadd.f32 %v6737_v47, %v6736_v5  ;;  %v6393_v5 = vmax.f32 %v11079_v28, 0.0 }
 0xb0f   : > { %6637 = vrot.lane.b32.xlu0 %v6591_v36, %s8845_s29 }
 0xb10   : > { %v6740_v8 = vadd.f32 %v6739_v22, %v6738_v6 }
 0xb11   : > { %6639 = vrot.lane.b32.xlu1 %v6592_v37, %s8845_s29  ;;  %v6394_v37 = vmax.f32 %v11087_v42, 0.0  ;;  %v6397_v42 = vmax.f32 %v11095_v50, 0.0  ;;  %v6400_v50 = vmax.f32 %v11099_v61, 0.0 }
 0xb12   : > { %v6742_v29 = vadd.f32 %v6741_v24, %v6740_v8 }
 0xb14   : > { %v6743_v10 = vrot.slane %v6742_v29, 4 }
 0xb16   : > { %v6744_v48 = vadd.f32 %v6743_v10, %v6742_v29 }
 0xb18   : > { %v6745_v41 = vrot.slane %v6744_v48, 2 }
 0xb1a   : > { %v6746_v63 = vadd.f32 %v6745_v41, %v6744_v48  ;;  %v6396_v41 = vmax.f32 %v11083_v62, 0.0  ;;  %v6399_v62 = vmax.f32 %v11092_v53, 0.0 }
 0xb1c   : > { %v6747_v14 = vrot.slane %v6746_v63, 1 }
 0xb1e   : > { %v6748_v23 = vadd.f32 %v6747_v14, %v6746_v63 }
 0xb20   : > { %v6749_v60 = vadd.f32 1e-08, %v6748_v23 }
 0xb22   : > { %6751 = vrot.lane.b32.xlu0 %v6749_v60, %s8845_s29 }
 0xb4b   : > { %v6610_v15 = vpop.permute.xlu0 %6609 }
 0xb4c   : > { %v6657_v11 = vmul.f32 %v6610_v15, %v6385_v7 }
 0xb4d   : > { %v6612_v2 = vpop.permute.xlu1 %6611 }
 0xb4e   : > { %v6658_v54 = vmul.f32 %v6612_v2, %v6386_v35  ;;  %v6674_v55 = vsel %vm6673_vm2, %v6657_v11, 0.0 }
 0xb4f   : > { %v6614_v39 = vpop.permute.xlu0 %6613 }
 0xb50   : > { %v6675_v30 = vsel %vm6673_vm2, %v6658_v54, 0.0  ;;  %v6659_v40 = vmul.f32 %v6614_v39, %v6387_v31 }
 0xb51   : > { %v6676_v21 = vadd.f32 %v6675_v30, %v6674_v55  ;;  %v6616_v44 = vpop.permute.xlu1 %6615 }
 0xb52   : > { %v6677_v58 = vsel %vm6673_vm2, %v6659_v40, 0.0  ;;  %v6660_v32 = vmul.f32 %v6616_v44, %v6388_v45 }
 0xb53   : > { %v6678_v13 = vadd.f32 %v6677_v58, %v6676_v21 }
 0xb54   : > { %v6679_v4 = vsel %vm6673_vm2, %v6660_v32, 0.0 }
 0xb55   : > { %v6680_v25 = vadd.f32 %v6679_v4, %v6678_v13 }
 0xb64   : > { %v6618_v17 = vpop.permute.xlu0 %6617 }
 0xb65   : > { %v6661_v19 = vmul.f32 %v6618_v17, %v6389_v27 }
 0xb66   : > { %v6620_v20 = vpop.permute.xlu1 %6619 }
 0xb67   : > { %v6681_v51 = vsel %vm6673_vm2, %v6661_v19, 0.0  ;;  %v6662_v43 = vmul.f32 %v6620_v20, %v6390_v16 }
 0xb68   : > { %v6682_v18 = vadd.f32 %v6681_v51, %v6680_v25  ;;  %v6622_v0 = vpop.permute.xlu0 %6621 }
 0xb69   : > { %v6683_v3 = vsel %vm6673_vm2, %v6662_v43, 0.0  ;;  %v6663_v33 = vmul.f32 %v6622_v0, %v6391_v12 }
 0xb6a   : > { %v6684_v9 = vadd.f32 %v6683_v3, %v6682_v18  ;;  %v6624_v46 = vpop.permute.xlu1 %6623 }
 0xb6b   : > { %v6685_v38 = vsel %vm6673_vm2, %v6663_v33, 0.0  ;;  %v6664_v26 = vmul.f32 %v6624_v46, %v6392_v52 }
 0xb6c   : > { %v6686_v34 = vadd.f32 %v6685_v38, %v6684_v9 }
 0xb6d   : > { %v6687_v59 = vsel %vm6673_vm2, %v6664_v26, 0.0 }
 0xb6e   : > { %v6688_v36 = vadd.f32 %v6687_v59, %v6686_v34 }
 0xb75   : > { %v6626_v47 = vpop.permute.xlu0 %6625 }
 0xb76   : > { %v6665_v1 = vmul.f32 %v6626_v47, %v6393_v5 }
 0xb77   : > { %v6628_v6 = vpop.permute.xlu1 %6627 }
 0xb78   : > { %v6689_v22 = vsel %vm6673_vm2, %v6665_v1, 0.0  ;;  %v6666_v8 = vmul.f32 %v6628_v6, %v6394_v37 }
 0xb79   : > { %v6690_v24 = vadd.f32 %v6689_v22, %v6688_v36  ;;  %v6630_v29 = vpop.permute.xlu0 %6629 }
 0xb7a   : > { %v6691_v10 = vsel %vm6673_vm2, %v6666_v8, 0.0  ;;  %v6667_v48 = vmul.f32 %v6630_v29, %v6395_v49 }
 0xb7b   : > { %v6692_v63 = vadd.f32 %v6691_v10, %v6690_v24  ;;  %v6632_v14 = vpop.permute.xlu1 %6631 }
 0xb7c   : > { %v6693_v28 = vsel %vm6673_vm2, %v6667_v48, 0.0  ;;  %v6668_v23 = vmul.f32 %v6632_v14, %v6396_v41 }
 0xb7d   : > { %v6694_v60 = vadd.f32 %v6693_v28, %v6692_v63  ;;  %v6634_v7 = vpop.permute.xlu0 %6633 }
 0xb7e   : > { %v6695_v15 = vsel %vm6673_vm2, %v6668_v23, 0.0  ;;  %v6669_v11 = vmul.f32 %v6634_v7, %v6397_v42 }
 0xb7f   : > { %v6696_v35 = vadd.f32 %v6695_v15, %v6694_v60  ;;  %v6636_v2 = vpop.permute.xlu1 %6635 }
 0xb80   : > { %v6697_v54 = vsel %vm6673_vm2, %v6669_v11, 0.0  ;;  %v6670_v31 = vmul.f32 %v6636_v2, %v6398_v56 }
 0xb81   : > { %v6698_v39 = vadd.f32 %v6697_v54, %v6696_v35  ;;  %v6638_v55 = vpop.permute.xlu0 %6637 }
 0xb82   : > { %v6699_v30 = vsel %vm6673_vm2, %v6670_v31, 0.0  ;;  %v6671_v40 = vmul.f32 %v6638_v55, %v6399_v62 }
 0xb83   : > { %v6700_v45 = vadd.f32 %v6699_v30, %v6698_v39  ;;  %v6640_v21 = vpop.permute.xlu1 %6639 }
 0xb84   : > { %v6701_v44 = vsel %vm6673_vm2, %v6671_v40, 0.0  ;;  %v6672_v57 = vmul.f32 %v6640_v21, %v6400_v50 }
 0xb85   : > { %v6702_v58 = vadd.f32 %v6701_v44, %v6700_v45 }
 0xb86   : > { %v6703_v32 = vsel %vm6673_vm2, %v6672_v57, 0.0 }
 0xb87   : > { %v6704_v13 = vadd.f32 %v6703_v32, %v6702_v58 }
 0xb89   : > { %v6705_v4 = vrot.slane %v6704_v13, 4 }
 0xb8b   : > { %v6706_v25 = vadd.f32 %v6705_v4, %v6704_v13 }
 0xb8d   : > { %v6707_v53 = vrot.slane %v6706_v25, 2 }
 0xb8f   : > { %v6708_v17 = vadd.f32 %v6707_v53, %v6706_v25 }
 0xb91   : > { %v6709_v19 = vrot.slane %v6708_v17, 1 }
 0xb93   : > { %v6710_v16 = vadd.f32 %v6709_v19, %v6708_v17 }
 0xb94   : > { %v6752_v27 = vpop.permute.xlu0 %6751 }
 0xb95   : > { %8832 = vrcp.f32 %v6752_v27 }
 0xb9f   : > { %v8833_v20 = vpop.eup %8832 }
 0xba0   : > { %v6755_v61 = vmul.f32 %v8833_v20, %v6710_v16 }
 0xba2   : > { %6757 = vst.msk [vmem:[%s544_s19] sm:$0x1] %vm6756_vm3, %v6755_v61 }
 0xba3 PF: > { %s27_s24 = sadd.s32 1, %s8840_s24  }
 0xba4   : > { %p24_p4 = scmp.ge.s32.totalorder %s27_s24, 4  }
 0xba6   :  { %26 = sbr.rel (!%p24_p4) target bundleno = 3 (0x3), region = 118 }

</bundles_post_ra>
